<compile_context>
chip_gen: v7x
topology: tpu7x:2x2x1
jax: 0.10.0
libtpu: 0.0.40
codegen_flags: <defaults>
</compile_context>

<pallas_src>
import jax
import jax.numpy as jnp
from jax.experimental import pallas as pl
from jax.experimental.pallas import tpu as pltpu

# ----------------------- scaled-down T5 config -----------------------
D_MODEL = 32        # stands in for 768 of t5-base
N_HEADS = 4
D_KV = 8
HD = N_HEADS * D_KV  # 32
D_FF = 64
N_LAYERS = 2
VOCAB = 64
NUM_BUCKETS = 8
MAX_DISTANCE = 16
NUM_CLASSES = 2
EPS = 1e-6
NEG_INF = -1e9
LANE = 128          # lane-dense pad width for the lm_head output


# ----------------------- in-kernel helpers (trace-time) -----------------------
def _rms(x, g):
    # x: (M, D), g: (1, D)
    var = jnp.mean(x * x, axis=-1, keepdims=True)
    return x * jax.lax.rsqrt(var + EPS) * g


def _mha(q, kx, vx, wo, bias):
    """All heads in one batched score/softmax/context pass, fully in-register.

    q: (M, HD), kx/vx: (N, HD), wo: (HD, D_MODEL), bias: (H, M, N) additive
    (relative-position bias + padding/causal mask + block-diagonal batch mask,
    M = B*Sq, N = B*Sk rows stacked batch-major).  Returns (M, D_MODEL).
    Per-head contexts are lane-concatenated and folded into a single K=HD
    output projection (no narrow per-head matmuls, no HBM head tensor).
    """
    qh = jnp.stack([q[:, h * D_KV:(h + 1) * D_KV] for h in range(N_HEADS)], axis=0)
    kh = jnp.stack([kx[:, h * D_KV:(h + 1) * D_KV] for h in range(N_HEADS)], axis=0)
    vh = jnp.stack([vx[:, h * D_KV:(h + 1) * D_KV] for h in range(N_HEADS)], axis=0)
    # T5 attention: no 1/sqrt(d) scaling (folded into init)
    s = jnp.einsum("hmd,hnd->hmn", qh, kh, preferred_element_type=jnp.float32) + bias
    s = s - jnp.max(s, axis=-1, keepdims=True)
    p = jnp.exp(s)
    p = p / jnp.sum(p, axis=-1, keepdims=True)   # exact softmax (review note)
    ctx = jnp.einsum("hmn,hnd->hmd", p, vh, preferred_element_type=jnp.float32)
    ctx_all = jnp.concatenate([ctx[h] for h in range(N_HEADS)], axis=-1)  # (M, HD)
    return jnp.dot(ctx_all, wo, preferred_element_type=jnp.float32)


# ----------------------- Pallas kernels (one per stack) -----------------------
def _enc_stack_kernel(x_ref, bias_ref,
                      g_sa_ref, wqkv_ref, wo_sa_ref,
                      g_ff_ref, wi_ref, wo_ff_ref,
                      g_fin_ref,
                      o_ref, act_ref):
    """grid=(N_LAYERS,).  Activations resident in act_ref across grid steps;
    layer-k weight blocks selected by the BlockSpecs; final RMSNorm fused into
    the last step."""
    k = pl.program_id(0)

    @pl.when(k == 0)
    def _():
        act_ref[...] = x_ref[...]

    x = act_ref[...]                                            # (B*S, D)

    # --- self-attention sublayer (RMSNorm fused into the consumer) ---
    h = _rms(x, g_sa_ref[...])
    qkv = jnp.dot(h, wqkv_ref[...], preferred_element_type=jnp.float32)
    x = x + _mha(qkv[:, :HD], qkv[:, HD:2 * HD], qkv[:, 2 * HD:],
                 wo_sa_ref[...], bias_ref[...])

    # --- FFN sublayer (T5 default act: ReLU) ---
    h = _rms(x, g_ff_ref[...])
    ff = jnp.maximum(jnp.dot(h, wi_ref[...], preferred_element_type=jnp.float32), 0.0)
    x = x + jnp.dot(ff, wo_ff_ref[...], preferred_element_type=jnp.float32)

    act_ref[...] = x

    @pl.when(k == pl.num_programs(0) - 1)
    def _():
        o_ref[...] = _rms(x, g_fin_ref[...])                    # encoder final LN fused


def _dec_stack_kernel(y_ref, enc_ref, sbias_ref, cbias_ref,
                      g_sa_ref, wqkv_ref, wo_sa_ref,
                      g_ca_ref, wq_ca_ref, wkv_ca_ref, wo_ca_ref,
                      g_ff_ref, wi_ref, wo_ff_ref,
                      g_fin_ref, lm_w_ref, lm_b_ref,
                      logits_ref, act_ref):
    """grid=(N_LAYERS,).  Final RMSNorm + tie-embedding rescale + lm_head fused
    into the last step; writes a lane-dense (B*S, 128) logits slab."""
    k = pl.program_id(0)

    @pl.when(k == 0)
    def _():
        act_ref[...] = y_ref[...]

    y = act_ref[...]                                            # (B*Sd, D)
    enc = enc_ref[...]                                          # (B*Se, D), post final-LN

    # --- causal self-attention (pos bias + causal mask folded in sbias) ---
    h = _rms(y, g_sa_ref[...])
    qkv = jnp.dot(h, wqkv_ref[...], preferred_element_type=jnp.float32)
    y = y + _mha(qkv[:, :HD], qkv[:, HD:2 * HD], qkv[:, 2 * HD:],
                 wo_sa_ref[...], sbias_ref[...])

    # --- cross-attention: K/V from the final-RMSNormed encoder output (HF-exact) ---
    h = _rms(y, g_ca_ref[...])
    q = jnp.dot(h, wq_ca_ref[...], preferred_element_type=jnp.float32)
    kv = jnp.dot(enc, wkv_ca_ref[...], preferred_element_type=jnp.float32)
    y = y + _mha(q, kv[:, :HD], kv[:, HD:], wo_ca_ref[...], cbias_ref[...])

    # --- FFN sublayer ---
    h = _rms(y, g_ff_ref[...])
    ff = jnp.maximum(jnp.dot(h, wi_ref[...], preferred_element_type=jnp.float32), 0.0)
    y = y + jnp.dot(ff, wo_ff_ref[...], preferred_element_type=jnp.float32)

    act_ref[...] = y

    @pl.when(k == pl.num_programs(0) - 1)
    def _():
        # final decoder RMSNorm + HF tie_word_embeddings rescale + lm_head (bias),
        # lane-dense 128-wide slab (padded cols sliced off in JAX).
        hf = _rms(y, g_fin_ref[...]) * (D_MODEL ** -0.5)
        logits_ref[...] = (jnp.dot(hf, lm_w_ref[...], preferred_element_type=jnp.float32)
                           + lm_b_ref[...])


# ----------------------- pallas_call wrappers -----------------------
_ARB = pltpu.CompilerParams(dimension_semantics=("arbitrary",))
# TODO(synk): on v7x at real scale add a leading "parallel" M-tile axis
# (dimension_semantics=("parallel", "arbitrary")) so both TensorCores are used.


def _fixed_spec(arr):
    """Whole-array block, same at every grid step (fetched once)."""
    nd = arr.ndim
    return pl.BlockSpec(arr.shape, lambda k, _n=nd: (0,) * _n)


def _layer_spec(arr):
    """Stacked (L, ...) weight: grid step k gets layer k's block (leading dim squeezed)."""
    nd = arr.ndim - 1
    return pl.BlockSpec((None,) + arr.shape[1:], lambda k, _n=nd: (k,) + (0,) * _n)


def encoder_stack(x, bias, stk, g_fin):
    M, D = x.shape
    args = (x, bias, stk["g_sa"], stk["wqkv"], stk["wo_sa"],
            stk["g_ff"], stk["wi"], stk["wo_ff"], g_fin)
    in_specs = [_fixed_spec(x), _fixed_spec(bias),
                _layer_spec(stk["g_sa"]), _layer_spec(stk["wqkv"]), _layer_spec(stk["wo_sa"]),
                _layer_spec(stk["g_ff"]), _layer_spec(stk["wi"]), _layer_spec(stk["wo_ff"]),
                _fixed_spec(g_fin)]
    return pl.pallas_call(
        _enc_stack_kernel,
        grid=(N_LAYERS,),
        in_specs=in_specs,
        out_specs=pl.BlockSpec((M, D), lambda k: (0, 0)),
        out_shape=jax.ShapeDtypeStruct((M, D), jnp.float32),
        scratch_shapes=[pltpu.VMEM((M, D), jnp.float32)],
        compiler_params=_ARB,
    )(*args)


def decoder_stack(y, enc_out, sbias, cbias, stk, g_fin, lm_w_pad, lm_b_pad):
    M, _ = y.shape
    args = (y, enc_out, sbias, cbias,
            stk["g_sa"], stk["wqkv"], stk["wo_sa"],
            stk["g_ca"], stk["wq_ca"], stk["wkv_ca"], stk["wo_ca"],
            stk["g_ff"], stk["wi"], stk["wo_ff"],
            g_fin, lm_w_pad, lm_b_pad)
    in_specs = [_fixed_spec(y), _fixed_spec(enc_out), _fixed_spec(sbias), _fixed_spec(cbias),
                _layer_spec(stk["g_sa"]), _layer_spec(stk["wqkv"]), _layer_spec(stk["wo_sa"]),
                _layer_spec(stk["g_ca"]), _layer_spec(stk["wq_ca"]),
                _layer_spec(stk["wkv_ca"]), _layer_spec(stk["wo_ca"]),
                _layer_spec(stk["g_ff"]), _layer_spec(stk["wi"]), _layer_spec(stk["wo_ff"]),
                _fixed_spec(g_fin), _fixed_spec(lm_w_pad), _fixed_spec(lm_b_pad)]
    return pl.pallas_call(
        _dec_stack_kernel,
        grid=(N_LAYERS,),
        in_specs=in_specs,
        out_specs=pl.BlockSpec((M, LANE), lambda k: (0, 0)),
        out_shape=jax.ShapeDtypeStruct((M, LANE), jnp.float32),
        scratch_shapes=[pltpu.VMEM((M, D_MODEL), jnp.float32)],
        compiler_params=_ARB,
    )(*args)


# ----------------------- T5 glue (plain JAX, tiny/once-per-forward) -----------------------
def _relative_position_bucket(relative_position, bidirectional, num_buckets, max_distance):
    relative_buckets = jnp.zeros_like(relative_position)
    if bidirectional:
        num_buckets //= 2
        relative_buckets = relative_buckets + (relative_position > 0).astype(jnp.int32) * num_buckets
        relative_position = jnp.abs(relative_position)
    else:
        relative_position = -jnp.minimum(relative_position, 0)
    max_exact = num_buckets // 2
    is_small = relative_position < max_exact
    rp = jnp.maximum(relative_position, 1).astype(jnp.float32)
    rp_if_large = max_exact + (
        jnp.log(rp / max_exact)
        / jnp.log(float(max_distance) / max_exact)
        * (num_buckets - max_exact)
    ).astype(jnp.int32)
    rp_if_large = jnp.minimum(rp_if_large, num_buckets - 1)
    return relative_buckets + jnp.where(is_small, relative_position, rp_if_large)


def compute_position_bias(rel_emb, q_len, k_len, bidirectional):
    context = jnp.arange(q_len, dtype=jnp.int32)[:, None]
    memory = jnp.arange(k_len, dtype=jnp.int32)[None, :]
    rel_pos = memory - context
    buckets = _relative_position_bucket(rel_pos, bidirectional, NUM_BUCKETS, MAX_DISTANCE)
    bias = rel_emb[buckets]                      # (q, k, H)
    return jnp.transpose(bias, (2, 0, 1))        # (H, q, k)


def build_block_bias(per_bh, B, Sq, Sk):
    """per_bh broadcastable to (H, B, Sq, Sk) -> block-diagonal (H, B*Sq, B*Sk).

    Off-diagonal (cross-batch) entries get NEG_INF so the single batched softmax
    inside the kernel never mixes rows of different batch elements."""
    per_bh = jnp.broadcast_to(per_bh, (N_HEADS, B, Sq, Sk))
    same = jnp.eye(B, dtype=bool)[None, :, None, :, None]             # (1,B,1,B,1)
    bias5 = jnp.where(same, per_bh[:, :, :, None, :], NEG_INF)        # (H,B,Sq,B,Sk)
    return bias5.reshape(N_HEADS, B * Sq, B * Sk)


def t5_forward(params, input_ids, attention_mask):
    B, S = input_ids.shape

    # ---------------- encoder ----------------
    x = params["embed"][input_ids].reshape(B * S, D_MODEL)
    enc_pb = compute_position_bias(params["enc_rel_bias"], S, S, True)      # (H, S, S)
    add_mask = (1.0 - attention_mask.astype(jnp.float32)) * NEG_INF         # (B, S)
    enc_bias = build_block_bias(
        enc_pb[:, None, :, :] + add_mask[None, :, None, :], B, S, S)        # (H, BS, BS)
    enc_out = encoder_stack(x, enc_bias, params["enc_stack"], params["enc_final_ln"])

    # ---------------- decoder ----------------
    # decoder_start_token_id = 0 at every position (see TODO at top)
    y = jnp.broadcast_to(params["embed"][0][None, :], (B * S, D_MODEL))
    dec_pb = compute_position_bias(params["dec_rel_bias"], S, S, False)
    causal = jnp.where(
        jnp.arange(S)[None, :] <= jnp.arange(S)[:, None], 0.0, NEG_INF)
    self_bias = build_block_bias((dec_pb + causal[None])[:, None, :, :], B, S, S)
    cross_bias = build_block_bias(add_mask[None, :, None, :], B, S, S)
    logits_pad = decoder_stack(y, enc_out, self_bias, cross_bias, params["dec_stack"],
                               params["dec_final_ln"], params["lm_w_pad"], params["lm_b_pad"])
    return logits_pad.reshape(B, S, LANE)[:, :, :NUM_CLASSES]


# ----------------------- deterministic parameter init -----------------------
def init_params(key):
    keys = iter(jax.random.split(key, 512))

    def nrm(shape, scale=0.02):
        return (scale * jax.random.normal(next(keys), shape)).astype(jnp.float32)

    def enc_layer_params():
        return {
            "g_sa": jnp.ones((1, D_MODEL), jnp.float32),
            "wqkv": jnp.concatenate([nrm((D_MODEL, HD)) for _ in range(3)], axis=1),
            "wo_sa": nrm((HD, D_MODEL)),
            "g_ff": jnp.ones((1, D_MODEL), jnp.float32),
            "wi": nrm((D_MODEL, D_FF)),
            "wo_ff": nrm((D_FF, D_MODEL)),
        }

    def dec_layer_params():
        lp = enc_layer_params()
        lp.update({
            "g_ca": jnp.ones((1, D_MODEL), jnp.float32),
            "wq_ca": nrm((D_MODEL, HD)),
            "wkv_ca": jnp.concatenate([nrm((D_MODEL, HD)) for _ in range(2)], axis=1),
            "wo_ca": nrm((HD, D_MODEL)),
        })
        return lp

    def stack_layers(layers):
        # stack per-layer weights along a leading layer dim for the grid kernels
        return {k: jnp.stack([lp[k] for lp in layers], axis=0) for k in layers[0]}

    lm_w = nrm((D_MODEL, NUM_CLASSES))
    lm_b = jnp.zeros((NUM_CLASSES,), jnp.float32)
    lm_w_pad = jnp.zeros((D_MODEL, LANE), jnp.float32).at[:, :NUM_CLASSES].set(lm_w)
    lm_b_pad = jnp.zeros((1, LANE), jnp.float32).at[0, :NUM_CLASSES].set(lm_b)

    return {
        "embed": nrm((VOCAB, D_MODEL), 1.0),
        "enc_rel_bias": nrm((NUM_BUCKETS, N_HEADS)),
        "dec_rel_bias": nrm((NUM_BUCKETS, N_HEADS)),
        "enc_stack": stack_layers([enc_layer_params() for _ in range(N_LAYERS)]),
        "dec_stack": stack_layers([dec_layer_params() for _ in range(N_LAYERS)]),
        "enc_final_ln": jnp.ones((1, D_MODEL), jnp.float32),
        "dec_final_ln": jnp.ones((1, D_MODEL), jnp.float32),
        "lm_w_pad": lm_w_pad,
        "lm_b_pad": lm_b_pad,
    }


if __name__ == "__main__":
    key = jax.random.PRNGKey(0)
    pkey, ikey = jax.random.split(key)
    params = init_params(pkey)

    B, S = 2, 8
    input_ids = jax.random.randint(ikey, (B, S), 0, VOCAB, dtype=jnp.int32)
    attention_mask = jnp.ones((B, S), dtype=jnp.int32).at[1, 6:].set(0)

    fwd = jax.jit(t5_forward)
    logits = fwd(params, input_ids, attention_mask)
    logits = jax.block_until_ready(logits)
    assert logits.shape == (B, S, NUM_CLASSES)
    assert bool(jnp.all(jnp.isfinite(logits)))
    print("KERNEL_OK")
</pallas_src>

<mosaic_0001>
module attributes {stable_mosaic.version = 11 : i64} {
  func.func @_enc_stack_kernel(%arg0: i32, %arg1: memref<16x32xf32, #tpu.memory_space<vmem>>, %arg2: memref<4x16x16xf32, #tpu.memory_space<vmem>>, %arg3: memref<1x1x32xf32, #tpu.memory_space<vmem>>, %arg4: memref<1x32x96xf32, #tpu.memory_space<vmem>>, %arg5: memref<1x32x32xf32, #tpu.memory_space<vmem>>, %arg6: memref<1x1x32xf32, #tpu.memory_space<vmem>>, %arg7: memref<1x32x64xf32, #tpu.memory_space<vmem>>, %arg8: memref<1x64x32xf32, #tpu.memory_space<vmem>>, %arg9: memref<1x32xf32, #tpu.memory_space<vmem>>, %arg10: memref<16x32xf32, #tpu.memory_space<vmem>>, %arg11: memref<16x32xf32, #tpu.memory_space<vmem>>) attributes {dimension_semantics = [#tpu.dimension_semantics<arbitrary>], iteration_bounds = array<i64: 2>, scalar_prefetch = 0 : i64, scratch_operands = 1 : i64, tpu.core_type = #tpu.core_type<tc>, window_params = [{pipeline_mode = #tpu.pipeline_mode<synchronous>, transform_indices = @transform_0, window_bounds = array<i64: 16, 32>}, {pipeline_mode = #tpu.pipeline_mode<synchronous>, transform_indices = @transform_1, window_bounds = array<i64: 4, 16, 16>}, {transform_indices = @transform_2, window_bounds = array<i64: 1, 1, 32>}, {transform_indices = @transform_3, window_bounds = array<i64: 1, 32, 96>}, {transform_indices = @transform_4, window_bounds = array<i64: 1, 32, 32>}, {transform_indices = @transform_5, window_bounds = array<i64: 1, 1, 32>}, {transform_indices = @transform_6, window_bounds = array<i64: 1, 32, 64>}, {transform_indices = @transform_7, window_bounds = array<i64: 1, 64, 32>}, {pipeline_mode = #tpu.pipeline_mode<synchronous>, transform_indices = @transform_8, window_bounds = array<i64: 1, 32>}, {pipeline_mode = #tpu.pipeline_mode<synchronous>, transform_indices = @transform_9, window_bounds = array<i64: 16, 32>}]} {
    %c0_i32 = arith.constant 0 : i32
    %0 = arith.cmpi eq, %arg0, %c0_i32 : i32
    %1 = arith.extui %0 : i1 to i32
    %c0_i32_0 = arith.constant 0 : i32
    %2 = arith.cmpi ne, %1, %c0_i32_0 : i32
    scf.if %2 {
      %c0_40 = arith.constant 0 : index
      %c0_41 = arith.constant 0 : index
      %104 = vector.load %arg1[%c0_40, %c0_41] : memref<16x32xf32, #tpu.memory_space<vmem>>, vector<16x32xf32>
      %c0_42 = arith.constant 0 : index
      %c0_43 = arith.constant 0 : index
      %105 = vector.load %arg11[%c0_42, %c0_43] : memref<16x32xf32, #tpu.memory_space<vmem>>, vector<16x32xf32>
      tpu.vector_store %arg11[%c0_42, %c0_43], %104 {strides = array<i32>} : memref<16x32xf32, #tpu.memory_space<vmem>>, vector<16x32xf32>,
    } else {
    }
    %c0 = arith.constant 0 : index
    %c0_1 = arith.constant 0 : index
    %3 = vector.load %arg11[%c0, %c0_1] : memref<16x32xf32, #tpu.memory_space<vmem>>, vector<16x32xf32>
    %c0_2 = arith.constant 0 : index
    %c0_3 = arith.constant 0 : index
    %c0_4 = arith.constant 0 : index
    %4 = vector.load %arg3[%c0_2, %c0_3, %c0_4] : memref<1x1x32xf32, #tpu.memory_space<vmem>>, vector<1x1x32xf32>
    %5 = vector.shape_cast %4 : vector<1x1x32xf32> to vector<1x32xf32>
    %6 = arith.mulf %3, %3 : vector<16x32xf32>
    %cst = arith.constant dense<0.000000e+00> : vector<16xf32>
    %7 = vector.multi_reduction <add>, %6, %cst [1] : vector<16x32xf32> to vector<16xf32>
    %8 = vector.shape_cast %7 : vector<16xf32> to vector<16x1xf32>
    %cst_5 = arith.constant 3.200000e+01 : f32
    %9 = vector.broadcast %cst_5 : f32 to vector<16x1xf32>
    %10 = arith.divf %8, %9 : vector<16x1xf32>
    %cst_6 = arith.constant 9.99999997E-7 : f32
    %11 = vector.broadcast %cst_6 : f32 to vector<16x1xf32>
    %12 = arith.addf %10, %11 : vector<16x1xf32>
    %13 = math.rsqrt %12 : vector<16x1xf32>
    %14 = vector.broadcast %13 : vector<16x1xf32> to vector<16x32xf32>
    %15 = arith.mulf %3, %14 : vector<16x32xf32>
    %16 = vector.broadcast %5 : vector<1x32xf32> to vector<16x32xf32>
    %17 = arith.mulf %15, %16 : vector<16x32xf32>
    %c0_7 = arith.constant 0 : index
    %c0_8 = arith.constant 0 : index
    %c0_9 = arith.constant 0 : index
    %18 = vector.load %arg4[%c0_7, %c0_8, %c0_9] : memref<1x32x96xf32, #tpu.memory_space<vmem>>, vector<1x32x96xf32>
    %19 = vector.shape_cast %18 : vector<1x32x96xf32> to vector<32x96xf32>
    %cst_10 = arith.constant dense<0.000000e+00> : vector<16x96xf32>
    %20 = tpu.matmul %17, %19, %cst_10 {dimension_numbers = #tpu.dot_dimension_numbers<[1], [0], [0], [1], [0, 0, 1, 1], [], []>} : vector<16x32xf32>, vector<32x96xf32>, vector<16x96xf32> -> vector<16x96xf32>
    %21 = vector.extract_strided_slice %20 {offsets = [0, 0], sizes = [16, 32], strides = [1, 1]} : vector<16x96xf32> to vector<16x32xf32>
    %22 = vector.extract_strided_slice %20 {offsets = [0, 32], sizes = [16, 32], strides = [1, 1]} : vector<16x96xf32> to vector<16x32xf32>
    %23 = vector.extract_strided_slice %20 {offsets = [0, 64], sizes = [16, 32], strides = [1, 1]} : vector<16x96xf32> to vector<16x32xf32>
    %c0_11 = arith.constant 0 : index
    %c0_12 = arith.constant 0 : index
    %c0_13 = arith.constant 0 : index
    %24 = vector.load %arg5[%c0_11, %c0_12, %c0_13] : memref<1x32x32xf32, #tpu.memory_space<vmem>>, vector<1x32x32xf32>
    %25 = vector.shape_cast %24 : vector<1x32x32xf32> to vector<32x32xf32>
    %c0_14 = arith.constant 0 : index
    %c0_15 = arith.constant 0 : index
    %c0_16 = arith.constant 0 : index
    %26 = vector.load %arg2[%c0_14, %c0_15, %c0_16] : memref<4x16x16xf32, #tpu.memory_space<vmem>>, vector<4x16x16xf32>
    %27 = vector.extract_strided_slice %21 {offsets = [0, 0], sizes = [16, 8], strides = [1, 1]} : vector<16x32xf32> to vector<16x8xf32>
    %28 = vector.extract_strided_slice %21 {offsets = [0, 8], sizes = [16, 8], strides = [1, 1]} : vector<16x32xf32> to vector<16x8xf32>
    %29 = vector.extract_strided_slice %21 {offsets = [0, 16], sizes = [16, 8], strides = [1, 1]} : vector<16x32xf32> to vector<16x8xf32>
    %30 = vector.extract_strided_slice %21 {offsets = [0, 24], sizes = [16, 8], strides = [1, 1]} : vector<16x32xf32> to vector<16x8xf32>
    %31 = vector.shape_cast %27 : vector<16x8xf32> to vector<1x16x8xf32>
    %32 = vector.shape_cast %28 : vector<16x8xf32> to vector<1x16x8xf32>
    %33 = vector.shape_cast %29 : vector<16x8xf32> to vector<1x16x8xf32>
    %34 = vector.shape_cast %30 : vector<16x8xf32> to vector<1x16x8xf32>
    %35 = tpu.concatenate %31, %32, %33, %34 in 0 : vector<1x16x8xf32>, vector<1x16x8xf32>, vector<1x16x8xf32>, vector<1x16x8xf32> -> vector<4x16x8xf32>
    %36 = vector.extract_strided_slice %22 {offsets = [0, 0], sizes = [16, 8], strides = [1, 1]} : vector<16x32xf32> to vector<16x8xf32>
    %37 = vector.extract_strided_slice %22 {offsets = [0, 8], sizes = [16, 8], strides = [1, 1]} : vector<16x32xf32> to vector<16x8xf32>
    %38 = vector.extract_strided_slice %22 {offsets = [0, 16], sizes = [16, 8], strides = [1, 1]} : vector<16x32xf32> to vector<16x8xf32>
    %39 = vector.extract_strided_slice %22 {offsets = [0, 24], sizes = [16, 8], strides = [1, 1]} : vector<16x32xf32> to vector<16x8xf32>
    %40 = vector.shape_cast %36 : vector<16x8xf32> to vector<1x16x8xf32>
    %41 = vector.shape_cast %37 : vector<16x8xf32> to vector<1x16x8xf32>
    %42 = vector.shape_cast %38 : vector<16x8xf32> to vector<1x16x8xf32>
    %43 = vector.shape_cast %39 : vector<16x8xf32> to vector<1x16x8xf32>
    %44 = tpu.concatenate %40, %41, %42, %43 in 0 : vector<1x16x8xf32>, vector<1x16x8xf32>, vector<1x16x8xf32>, vector<1x16x8xf32> -> vector<4x16x8xf32>
    %45 = vector.extract_strided_slice %23 {offsets = [0, 0], sizes = [16, 8], strides = [1, 1]} : vector<16x32xf32> to vector<16x8xf32>
    %46 = vector.extract_strided_slice %23 {offsets = [0, 8], sizes = [16, 8], strides = [1, 1]} : vector<16x32xf32> to vector<16x8xf32>
    %47 = vector.extract_strided_slice %23 {offsets = [0, 16], sizes = [16, 8], strides = [1, 1]} : vector<16x32xf32> to vector<16x8xf32>
    %48 = vector.extract_strided_slice %23 {offsets = [0, 24], sizes = [16, 8], strides = [1, 1]} : vector<16x32xf32> to vector<16x8xf32>
    %49 = vector.shape_cast %45 : vector<16x8xf32> to vector<1x16x8xf32>
    %50 = vector.shape_cast %46 : vector<16x8xf32> to vector<1x16x8xf32>
    %51 = vector.shape_cast %47 : vector<16x8xf32> to vector<1x16x8xf32>
    %52 = vector.shape_cast %48 : vector<16x8xf32> to vector<1x16x8xf32>
    %53 = tpu.concatenate %49, %50, %51, %52 in 0 : vector<1x16x8xf32>, vector<1x16x8xf32>, vector<1x16x8xf32>, vector<1x16x8xf32> -> vector<4x16x8xf32>
    "tpu.trace_start"() <{level = 10 : i32, message = "hmd,hnd->hmn"}> : () -> ()
    %cst_17 = arith.constant dense<0.000000e+00> : vector<4x16x16xf32>
    %54 = tpu.matmul %35, %44, %cst_17 {dimension_numbers = #tpu.dot_dimension_numbers<[2], [2], [1], [1], [0, 0, 0, 1, 1, 1], [0], [0]>} : vector<4x16x8xf32>, vector<4x16x8xf32>, vector<4x16x16xf32> -> vector<4x16x16xf32>
    "tpu.trace_stop"() : () -> ()
    %55 = arith.addf %54, %26 : vector<4x16x16xf32>
    %cst_18 = arith.constant dense<0xFF800000> : vector<4x16xf32>
    %56 = vector.multi_reduction <maximumf>, %55, %cst_18 [2] : vector<4x16x16xf32> to vector<4x16xf32>
    %57 = vector.shape_cast %56 : vector<4x16xf32> to vector<4x16x1xf32>
    %58 = vector.broadcast %57 : vector<4x16x1xf32> to vector<4x16x16xf32>
    %59 = arith.subf %55, %58 : vector<4x16x16xf32>
    %60 = math.exp %59 : vector<4x16x16xf32>
    %cst_19 = arith.constant dense<0.000000e+00> : vector<4x16xf32>
    %61 = vector.multi_reduction <add>, %60, %cst_19 [2] : vector<4x16x16xf32> to vector<4x16xf32>
    %62 = vector.shape_cast %61 : vector<4x16xf32> to vector<4x16x1xf32>
    %63 = vector.broadcast %62 : vector<4x16x1xf32> to vector<4x16x16xf32>
    %64 = arith.divf %60, %63 : vector<4x16x16xf32>
    "tpu.trace_start"() <{level = 10 : i32, message = "hmn,hnd->hmd"}> : () -> ()
    %cst_20 = arith.constant dense<0.000000e+00> : vector<4x16x8xf32>
    %65 = tpu.matmul %64, %53, %cst_20 {dimension_numbers = #tpu.dot_dimension_numbers<[2], [1], [1], [2], [0, 0, 0, 1, 1, 2], [0], [0]>} : vector<4x16x16xf32>, vector<4x16x8xf32>, vector<4x16x8xf32> -> vector<4x16x8xf32>
    "tpu.trace_stop"() : () -> ()
    %66 = vector.extract_strided_slice %65 {offsets = [0, 0, 0], sizes = [1, 16, 8], strides = [1, 1, 1]} : vector<4x16x8xf32> to vector<1x16x8xf32>
    %67 = vector.shape_cast %66 : vector<1x16x8xf32> to vector<16x8xf32>
    %68 = vector.extract_strided_slice %65 {offsets = [1, 0, 0], sizes = [1, 16, 8], strides = [1, 1, 1]} : vector<4x16x8xf32> to vector<1x16x8xf32>
    %69 = vector.shape_cast %68 : vector<1x16x8xf32> to vector<16x8xf32>
    %70 = vector.extract_strided_slice %65 {offsets = [2, 0, 0], sizes = [1, 16, 8], strides = [1, 1, 1]} : vector<4x16x8xf32> to vector<1x16x8xf32>
    %71 = vector.shape_cast %70 : vector<1x16x8xf32> to vector<16x8xf32>
    %72 = vector.extract_strided_slice %65 {offsets = [3, 0, 0], sizes = [1, 16, 8], strides = [1, 1, 1]} : vector<4x16x8xf32> to vector<1x16x8xf32>
    %73 = vector.shape_cast %72 : vector<1x16x8xf32> to vector<16x8xf32>
    %74 = tpu.concatenate %67, %69, %71, %73 in 1 : vector<16x8xf32>, vector<16x8xf32>, vector<16x8xf32>, vector<16x8xf32> -> vector<16x32xf32>
    %cst_21 = arith.constant dense<0.000000e+00> : vector<16x32xf32>
    %75 = tpu.matmul %74, %25, %cst_21 {dimension_numbers = #tpu.dot_dimension_numbers<[1], [0], [0], [1], [0, 0, 1, 1], [], []>} : vector<16x32xf32>, vector<32x32xf32>, vector<16x32xf32> -> vector<16x32xf32>
    %76 = arith.addf %3, %75 : vector<16x32xf32>
    %c0_22 = arith.constant 0 : index
    %c0_23 = arith.constant 0 : index
    %c0_24 = arith.constant 0 : index
    %77 = vector.load %arg6[%c0_22, %c0_23, %c0_24] : memref<1x1x32xf32, #tpu.memory_space<vmem>>, vector<1x1x32xf32>
    %78 = vector.shape_cast %77 : vector<1x1x32xf32> to vector<1x32xf32>
    %79 = arith.mulf %76, %76 : vector<16x32xf32>
    %cst_25 = arith.constant dense<0.000000e+00> : vector<16xf32>
    %80 = vector.multi_reduction <add>, %79, %cst_25 [1] : vector<16x32xf32> to vector<16xf32>
    %81 = vector.shape_cast %80 : vector<16xf32> to vector<16x1xf32>
    %cst_26 = arith.constant 3.200000e+01 : f32
    %82 = vector.broadcast %cst_26 : f32 to vector<16x1xf32>
    %83 = arith.divf %81, %82 : vector<16x1xf32>
    %cst_27 = arith.constant 9.99999997E-7 : f32
    %84 = vector.broadcast %cst_27 : f32 to vector<16x1xf32>
    %85 = arith.addf %83, %84 : vector<16x1xf32>
    %86 = math.rsqrt %85 : vector<16x1xf32>
    %87 = vector.broadcast %86 : vector<16x1xf32> to vector<16x32xf32>
    %88 = arith.mulf %76, %87 : vector<16x32xf32>
    %89 = vector.broadcast %78 : vector<1x32xf32> to vector<16x32xf32>
    %90 = arith.mulf %88, %89 : vector<16x32xf32>
    %c0_28 = arith.constant 0 : index
    %c0_29 = arith.constant 0 : index
    %c0_30 = arith.constant 0 : index
    %91 = vector.load %arg7[%c0_28, %c0_29, %c0_30] : memref<1x32x64xf32, #tpu.memory_space<vmem>>, vector<1x32x64xf32>
    %92 = vector.shape_cast %91 : vector<1x32x64xf32> to vector<32x64xf32>
    %cst_31 = arith.constant dense<0.000000e+00> : vector<16x64xf32>
    %93 = tpu.matmul %90, %92, %cst_31 {dimension_numbers = #tpu.dot_dimension_numbers<[1], [0], [0], [1], [0, 0, 1, 1], [], []>} : vector<16x32xf32>, vector<32x64xf32>, vector<16x64xf32> -> vector<16x64xf32>
    %cst_32 = arith.constant 0.000000e+00 : f32
    %94 = vector.broadcast %cst_32 : f32 to vector<16x64xf32>
    %95 = arith.maximumf %93, %94 : vector<16x64xf32>
    %c0_33 = arith.constant 0 : index
    %c0_34 = arith.constant 0 : index
    %c0_35 = arith.constant 0 : index
    %96 = vector.load %arg8[%c0_33, %c0_34, %c0_35] : memref<1x64x32xf32, #tpu.memory_space<vmem>>, vector<1x64x32xf32>
    %97 = vector.shape_cast %96 : vector<1x64x32xf32> to vector<64x32xf32>
    %cst_36 = arith.constant dense<0.000000e+00> : vector<16x32xf32>
    %98 = tpu.matmul %95, %97, %cst_36 {dimension_numbers = #tpu.dot_dimension_numbers<[1], [0], [0], [1], [0, 0, 1, 1], [], []>} : vector<16x64xf32>, vector<64x32xf32>, vector<16x32xf32> -> vector<16x32xf32>
    %99 = arith.addf %76, %98 : vector<16x32xf32>
    %c0_37 = arith.constant 0 : index
    %c0_38 = arith.constant 0 : index
    %100 = vector.load %arg11[%c0_37, %c0_38] : memref<16x32xf32, #tpu.memory_space<vmem>>, vector<16x32xf32>
    tpu.vector_store %arg11[%c0_37, %c0_38], %99 {strides = array<i32>} : memref<16x32xf32, #tpu.memory_space<vmem>>, vector<16x32xf32>,
    %c1_i32 = arith.constant 1 : i32
    %101 = arith.cmpi eq, %arg0, %c1_i32 : i32
    %102 = arith.extui %101 : i1 to i32
    %c0_i32_39 = arith.constant 0 : i32
    %103 = arith.cmpi ne, %102, %c0_i32_39 : i32
    scf.if %103 {
      %c0_40 = arith.constant 0 : index
      %c0_41 = arith.constant 0 : index
      %104 = vector.load %arg9[%c0_40, %c0_41] : memref<1x32xf32, #tpu.memory_space<vmem>>, vector<1x32xf32>
      %105 = arith.mulf %99, %99 : vector<16x32xf32>
      %cst_42 = arith.constant dense<0.000000e+00> : vector<16xf32>
      %106 = vector.multi_reduction <add>, %105, %cst_42 [1] : vector<16x32xf32> to vector<16xf32>
      %107 = vector.shape_cast %106 : vector<16xf32> to vector<16x1xf32>
      %cst_43 = arith.constant 3.200000e+01 : f32
      %108 = vector.broadcast %cst_43 : f32 to vector<16x1xf32>
      %109 = arith.divf %107, %108 : vector<16x1xf32>
      %cst_44 = arith.constant 9.99999997E-7 : f32
      %110 = vector.broadcast %cst_44 : f32 to vector<16x1xf32>
      %111 = arith.addf %109, %110 : vector<16x1xf32>
      %112 = math.rsqrt %111 : vector<16x1xf32>
      %113 = vector.broadcast %112 : vector<16x1xf32> to vector<16x32xf32>
      %114 = arith.mulf %99, %113 : vector<16x32xf32>
      %115 = vector.broadcast %104 : vector<1x32xf32> to vector<16x32xf32>
      %116 = arith.mulf %114, %115 : vector<16x32xf32>
      %c0_45 = arith.constant 0 : index
      %c0_46 = arith.constant 0 : index
      %117 = vector.load %arg10[%c0_45, %c0_46] : memref<16x32xf32, #tpu.memory_space<vmem>>, vector<16x32xf32>
      tpu.vector_store %arg10[%c0_45, %c0_46], %116 {strides = array<i32>} : memref<16x32xf32, #tpu.memory_space<vmem>>, vector<16x32xf32>,
    } else {
    }
    return
  }
  func.func @transform_0(%arg0: i32) -> (i32, i32) {
    %c0_i32 = arith.constant 0 : i32
    %c0_i32_0 = arith.constant 0 : i32
    %c0_i32_1 = arith.constant 0 : i32
    return %c0_i32, %c0_i32_0 : i32, i32
  }
  func.func @transform_1(%arg0: i32) -> (i32, i32, i32) {
    %c0_i32 = arith.constant 0 : i32
    %c0_i32_0 = arith.constant 0 : i32
    %c0_i32_1 = arith.constant 0 : i32
    %c0_i32_2 = arith.constant 0 : i32
    return %c0_i32, %c0_i32_0, %c0_i32_1 : i32, i32, i32
  }
  func.func @transform_2(%arg0: i32) -> (i32, i32, i32) {
    %c0_i32 = arith.constant 0 : i32
    %c0_i32_0 = arith.constant 0 : i32
    %c0_i32_1 = arith.constant 0 : i32
    return %arg0, %c0_i32, %c0_i32_0 : i32, i32, i32
  }
  func.func @transform_3(%arg0: i32) -> (i32, i32, i32) {
    %c0_i32 = arith.constant 0 : i32
    %c0_i32_0 = arith.constant 0 : i32
    %c0_i32_1 = arith.constant 0 : i32
    return %arg0, %c0_i32, %c0_i32_0 : i32, i32, i32
  }
  func.func @transform_4(%arg0: i32) -> (i32, i32, i32) {
    %c0_i32 = arith.constant 0 : i32
    %c0_i32_0 = arith.constant 0 : i32
    %c0_i32_1 = arith.constant 0 : i32
    return %arg0, %c0_i32, %c0_i32_0 : i32, i32, i32
  }
  func.func @transform_5(%arg0: i32) -> (i32, i32, i32) {
    %c0_i32 = arith.constant 0 : i32
    %c0_i32_0 = arith.constant 0 : i32
    %c0_i32_1 = arith.constant 0 : i32
    return %arg0, %c0_i32, %c0_i32_0 : i32, i32, i32
  }
  func.func @transform_6(%arg0: i32) -> (i32, i32, i32) {
    %c0_i32 = arith.constant 0 : i32
    %c0_i32_0 = arith.constant 0 : i32
    %c0_i32_1 = arith.constant 0 : i32
    return %arg0, %c0_i32, %c0_i32_0 : i32, i32, i32
  }
  func.func @transform_7(%arg0: i32) -> (i32, i32, i32) {
    %c0_i32 = arith.constant 0 : i32
    %c0_i32_0 = arith.constant 0 : i32
    %c0_i32_1 = arith.constant 0 : i32
    return %arg0, %c0_i32, %c0_i32_0 : i32, i32, i32
  }
  func.func @transform_8(%arg0: i32) -> (i32, i32) {
    %c0_i32 = arith.constant 0 : i32
    %c0_i32_0 = arith.constant 0 : i32
    %c0_i32_1 = arith.constant 0 : i32
    return %c0_i32, %c0_i32_0 : i32, i32
  }
  func.func @transform_9(%arg0: i32) -> (i32, i32) {
    %c0_i32 = arith.constant 0 : i32
    %c0_i32_0 = arith.constant 0 : i32
    %c0_i32_1 = arith.constant 0 : i32
    return %c0_i32, %c0_i32_0 : i32, i32
  }
}

module attributes {stable_mosaic.version = 11 : i64} {
  func.func @_dec_stack_kernel(%arg0: i32, %arg1: memref<16x32xf32, #tpu.memory_space<vmem>>, %arg2: memref<16x32xf32, #tpu.memory_space<vmem>>, %arg3: memref<4x16x16xf32, #tpu.memory_space<vmem>>, %arg4: memref<4x16x16xf32, #tpu.memory_space<vmem>>, %arg5: memref<1x1x32xf32, #tpu.memory_space<vmem>>, %arg6: memref<1x32x96xf32, #tpu.memory_space<vmem>>, %arg7: memref<1x32x32xf32, #tpu.memory_space<vmem>>, %arg8: memref<1x1x32xf32, #tpu.memory_space<vmem>>, %arg9: memref<1x32x32xf32, #tpu.memory_space<vmem>>, %arg10: memref<1x32x64xf32, #tpu.memory_space<vmem>>, %arg11: memref<1x32x32xf32, #tpu.memory_space<vmem>>, %arg12: memref<1x1x32xf32, #tpu.memory_space<vmem>>, %arg13: memref<1x32x64xf32, #tpu.memory_space<vmem>>, %arg14: memref<1x64x32xf32, #tpu.memory_space<vmem>>, %arg15: memref<1x32xf32, #tpu.memory_space<vmem>>, %arg16: memref<32x128xf32, #tpu.memory_space<vmem>>, %arg17: memref<1x128xf32, #tpu.memory_space<vmem>>, %arg18: memref<16x128xf32, #tpu.memory_space<vmem>>, %arg19: memref<16x32xf32, #tpu.memory_space<vmem>>) attributes {dimension_semantics = [#tpu.dimension_semantics<arbitrary>], iteration_bounds = array<i64: 2>, scalar_prefetch = 0 : i64, scratch_operands = 1 : i64, tpu.core_type = #tpu.core_type<tc>, window_params = [{pipeline_mode = #tpu.pipeline_mode<synchronous>, transform_indices = @transform_0, window_bounds = array<i64: 16, 32>}, {pipeline_mode = #tpu.pipeline_mode<synchronous>, transform_indices = @transform_1, window_bounds = array<i64: 16, 32>}, {pipeline_mode = #tpu.pipeline_mode<synchronous>, transform_indices = @transform_2, window_bounds = array<i64: 4, 16, 16>}, {pipeline_mode = #tpu.pipeline_mode<synchronous>, transform_indices = @transform_3, window_bounds = array<i64: 4, 16, 16>}, {transform_indices = @transform_4, window_bounds = array<i64: 1, 1, 32>}, {transform_indices = @transform_5, window_bounds = array<i64: 1, 32, 96>}, {transform_indices = @transform_6, window_bounds = array<i64: 1, 32, 32>}, {transform_indices = @transform_7, window_bounds = array<i64: 1, 1, 32>}, {transform_indices = @transform_8, window_bounds = array<i64: 1, 32, 32>}, {transform_indices = @transform_9, window_bounds = array<i64: 1, 32, 64>}, {transform_indices = @transform_10, window_bounds = array<i64: 1, 32, 32>}, {transform_indices = @transform_11, window_bounds = array<i64: 1, 1, 32>}, {transform_indices = @transform_12, window_bounds = array<i64: 1, 32, 64>}, {transform_indices = @transform_13, window_bounds = array<i64: 1, 64, 32>}, {pipeline_mode = #tpu.pipeline_mode<synchronous>, transform_indices = @transform_14, window_bounds = array<i64: 1, 32>}, {pipeline_mode = #tpu.pipeline_mode<synchronous>, transform_indices = @transform_15, window_bounds = array<i64: 32, 128>}, {pipeline_mode = #tpu.pipeline_mode<synchronous>, transform_indices = @transform_16, window_bounds = array<i64: 1, 128>}, {pipeline_mode = #tpu.pipeline_mode<synchronous>, transform_indices = @transform_17, window_bounds = array<i64: 16, 128>}]} {
    %c0_i32 = arith.constant 0 : i32
    %0 = arith.cmpi eq, %arg0, %c0_i32 : i32
    %1 = arith.extui %0 : i1 to i32
    %c0_i32_0 = arith.constant 0 : i32
    %2 = arith.cmpi ne, %1, %c0_i32_0 : i32
    scf.if %2 {
      %c0_67 = arith.constant 0 : index
      %c0_68 = arith.constant 0 : index
      %180 = vector.load %arg1[%c0_67, %c0_68] : memref<16x32xf32, #tpu.memory_space<vmem>>, vector<16x32xf32>
      %c0_69 = arith.constant 0 : index
      %c0_70 = arith.constant 0 : index
      %181 = vector.load %arg19[%c0_69, %c0_70] : memref<16x32xf32, #tpu.memory_space<vmem>>, vector<16x32xf32>
      tpu.vector_store %arg19[%c0_69, %c0_70], %180 {strides = array<i32>} : memref<16x32xf32, #tpu.memory_space<vmem>>, vector<16x32xf32>,
    } else {
    }
    %c0 = arith.constant 0 : index
    %c0_1 = arith.constant 0 : index
    %3 = vector.load %arg19[%c0, %c0_1] : memref<16x32xf32, #tpu.memory_space<vmem>>, vector<16x32xf32>
    %c0_2 = arith.constant 0 : index
    %c0_3 = arith.constant 0 : index
    %4 = vector.load %arg2[%c0_2, %c0_3] : memref<16x32xf32, #tpu.memory_space<vmem>>, vector<16x32xf32>
    %c0_4 = arith.constant 0 : index
    %c0_5 = arith.constant 0 : index
    %c0_6 = arith.constant 0 : index
    %5 = vector.load %arg5[%c0_4, %c0_5, %c0_6] : memref<1x1x32xf32, #tpu.memory_space<vmem>>, vector<1x1x32xf32>
    %6 = vector.shape_cast %5 : vector<1x1x32xf32> to vector<1x32xf32>
    %7 = arith.mulf %3, %3 : vector<16x32xf32>
    %cst = arith.constant dense<0.000000e+00> : vector<16xf32>
    %8 = vector.multi_reduction <add>, %7, %cst [1] : vector<16x32xf32> to vector<16xf32>
    %9 = vector.shape_cast %8 : vector<16xf32> to vector<16x1xf32>
    %cst_7 = arith.constant 3.200000e+01 : f32
    %10 = vector.broadcast %cst_7 : f32 to vector<16x1xf32>
    %11 = arith.divf %9, %10 : vector<16x1xf32>
    %cst_8 = arith.constant 9.99999997E-7 : f32
    %12 = vector.broadcast %cst_8 : f32 to vector<16x1xf32>
    %13 = arith.addf %11, %12 : vector<16x1xf32>
    %14 = math.rsqrt %13 : vector<16x1xf32>
    %15 = vector.broadcast %14 : vector<16x1xf32> to vector<16x32xf32>
    %16 = arith.mulf %3, %15 : vector<16x32xf32>
    %17 = vector.broadcast %6 : vector<1x32xf32> to vector<16x32xf32>
    %18 = arith.mulf %16, %17 : vector<16x32xf32>
    %c0_9 = arith.constant 0 : index
    %c0_10 = arith.constant 0 : index
    %c0_11 = arith.constant 0 : index
    %19 = vector.load %arg6[%c0_9, %c0_10, %c0_11] : memref<1x32x96xf32, #tpu.memory_space<vmem>>, vector<1x32x96xf32>
    %20 = vector.shape_cast %19 : vector<1x32x96xf32> to vector<32x96xf32>
    %cst_12 = arith.constant dense<0.000000e+00> : vector<16x96xf32>
    %21 = tpu.matmul %18, %20, %cst_12 {dimension_numbers = #tpu.dot_dimension_numbers<[1], [0], [0], [1], [0, 0, 1, 1], [], []>} : vector<16x32xf32>, vector<32x96xf32>, vector<16x96xf32> -> vector<16x96xf32>
    %22 = vector.extract_strided_slice %21 {offsets = [0, 0], sizes = [16, 32], strides = [1, 1]} : vector<16x96xf32> to vector<16x32xf32>
    %23 = vector.extract_strided_slice %21 {offsets = [0, 32], sizes = [16, 32], strides = [1, 1]} : vector<16x96xf32> to vector<16x32xf32>
    %24 = vector.extract_strided_slice %21 {offsets = [0, 64], sizes = [16, 32], strides = [1, 1]} : vector<16x96xf32> to vector<16x32xf32>
    %c0_13 = arith.constant 0 : index
    %c0_14 = arith.constant 0 : index
    %c0_15 = arith.constant 0 : index
    %25 = vector.load %arg7[%c0_13, %c0_14, %c0_15] : memref<1x32x32xf32, #tpu.memory_space<vmem>>, vector<1x32x32xf32>
    %26 = vector.shape_cast %25 : vector<1x32x32xf32> to vector<32x32xf32>
    %c0_16 = arith.constant 0 : index
    %c0_17 = arith.constant 0 : index
    %c0_18 = arith.constant 0 : index
    %27 = vector.load %arg3[%c0_16, %c0_17, %c0_18] : memref<4x16x16xf32, #tpu.memory_space<vmem>>, vector<4x16x16xf32>
    %28 = vector.extract_strided_slice %22 {offsets = [0, 0], sizes = [16, 8], strides = [1, 1]} : vector<16x32xf32> to vector<16x8xf32>
    %29 = vector.extract_strided_slice %22 {offsets = [0, 8], sizes = [16, 8], strides = [1, 1]} : vector<16x32xf32> to vector<16x8xf32>
    %30 = vector.extract_strided_slice %22 {offsets = [0, 16], sizes = [16, 8], strides = [1, 1]} : vector<16x32xf32> to vector<16x8xf32>
    %31 = vector.extract_strided_slice %22 {offsets = [0, 24], sizes = [16, 8], strides = [1, 1]} : vector<16x32xf32> to vector<16x8xf32>
    %32 = vector.shape_cast %28 : vector<16x8xf32> to vector<1x16x8xf32>
    %33 = vector.shape_cast %29 : vector<16x8xf32> to vector<1x16x8xf32>
    %34 = vector.shape_cast %30 : vector<16x8xf32> to vector<1x16x8xf32>
    %35 = vector.shape_cast %31 : vector<16x8xf32> to vector<1x16x8xf32>
    %36 = tpu.concatenate %32, %33, %34, %35 in 0 : vector<1x16x8xf32>, vector<1x16x8xf32>, vector<1x16x8xf32>, vector<1x16x8xf32> -> vector<4x16x8xf32>
    %37 = vector.extract_strided_slice %23 {offsets = [0, 0], sizes = [16, 8], strides = [1, 1]} : vector<16x32xf32> to vector<16x8xf32>
    %38 = vector.extract_strided_slice %23 {offsets = [0, 8], sizes = [16, 8], strides = [1, 1]} : vector<16x32xf32> to vector<16x8xf32>
    %39 = vector.extract_strided_slice %23 {offsets = [0, 16], sizes = [16, 8], strides = [1, 1]} : vector<16x32xf32> to vector<16x8xf32>
    %40 = vector.extract_strided_slice %23 {offsets = [0, 24], sizes = [16, 8], strides = [1, 1]} : vector<16x32xf32> to vector<16x8xf32>
    %41 = vector.shape_cast %37 : vector<16x8xf32> to vector<1x16x8xf32>
    %42 = vector.shape_cast %38 : vector<16x8xf32> to vector<1x16x8xf32>
    %43 = vector.shape_cast %39 : vector<16x8xf32> to vector<1x16x8xf32>
    %44 = vector.shape_cast %40 : vector<16x8xf32> to vector<1x16x8xf32>
    %45 = tpu.concatenate %41, %42, %43, %44 in 0 : vector<1x16x8xf32>, vector<1x16x8xf32>, vector<1x16x8xf32>, vector<1x16x8xf32> -> vector<4x16x8xf32>
    %46 = vector.extract_strided_slice %24 {offsets = [0, 0], sizes = [16, 8], strides = [1, 1]} : vector<16x32xf32> to vector<16x8xf32>
    %47 = vector.extract_strided_slice %24 {offsets = [0, 8], sizes = [16, 8], strides = [1, 1]} : vector<16x32xf32> to vector<16x8xf32>
    %48 = vector.extract_strided_slice %24 {offsets = [0, 16], sizes = [16, 8], strides = [1, 1]} : vector<16x32xf32> to vector<16x8xf32>
    %49 = vector.extract_strided_slice %24 {offsets = [0, 24], sizes = [16, 8], strides = [1, 1]} : vector<16x32xf32> to vector<16x8xf32>
    %50 = vector.shape_cast %46 : vector<16x8xf32> to vector<1x16x8xf32>
    %51 = vector.shape_cast %47 : vector<16x8xf32> to vector<1x16x8xf32>
    %52 = vector.shape_cast %48 : vector<16x8xf32> to vector<1x16x8xf32>
    %53 = vector.shape_cast %49 : vector<16x8xf32> to vector<1x16x8xf32>
    %54 = tpu.concatenate %50, %51, %52, %53 in 0 : vector<1x16x8xf32>, vector<1x16x8xf32>, vector<1x16x8xf32>, vector<1x16x8xf32> -> vector<4x16x8xf32>
    "tpu.trace_start"() <{level = 10 : i32, message = "hmd,hnd->hmn"}> : () -> ()
    %cst_19 = arith.constant dense<0.000000e+00> : vector<4x16x16xf32>
    %55 = tpu.matmul %36, %45, %cst_19 {dimension_numbers = #tpu.dot_dimension_numbers<[2], [2], [1], [1], [0, 0, 0, 1, 1, 1], [0], [0]>} : vector<4x16x8xf32>, vector<4x16x8xf32>, vector<4x16x16xf32> -> vector<4x16x16xf32>
    "tpu.trace_stop"() : () -> ()
    %56 = arith.addf %55, %27 : vector<4x16x16xf32>
    %cst_20 = arith.constant dense<0xFF800000> : vector<4x16xf32>
    %57 = vector.multi_reduction <maximumf>, %56, %cst_20 [2] : vector<4x16x16xf32> to vector<4x16xf32>
    %58 = vector.shape_cast %57 : vector<4x16xf32> to vector<4x16x1xf32>
    %59 = vector.broadcast %58 : vector<4x16x1xf32> to vector<4x16x16xf32>
    %60 = arith.subf %56, %59 : vector<4x16x16xf32>
    %61 = math.exp %60 : vector<4x16x16xf32>
    %cst_21 = arith.constant dense<0.000000e+00> : vector<4x16xf32>
    %62 = vector.multi_reduction <add>, %61, %cst_21 [2] : vector<4x16x16xf32> to vector<4x16xf32>
    %63 = vector.shape_cast %62 : vector<4x16xf32> to vector<4x16x1xf32>
    %64 = vector.broadcast %63 : vector<4x16x1xf32> to vector<4x16x16xf32>
    %65 = arith.divf %61, %64 : vector<4x16x16xf32>
    "tpu.trace_start"() <{level = 10 : i32, message = "hmn,hnd->hmd"}> : () -> ()
    %cst_22 = arith.constant dense<0.000000e+00> : vector<4x16x8xf32>
    %66 = tpu.matmul %65, %54, %cst_22 {dimension_numbers = #tpu.dot_dimension_numbers<[2], [1], [1], [2], [0, 0, 0, 1, 1, 2], [0], [0]>} : vector<4x16x16xf32>, vector<4x16x8xf32>, vector<4x16x8xf32> -> vector<4x16x8xf32>
    "tpu.trace_stop"() : () -> ()
    %67 = vector.extract_strided_slice %66 {offsets = [0, 0, 0], sizes = [1, 16, 8], strides = [1, 1, 1]} : vector<4x16x8xf32> to vector<1x16x8xf32>
    %68 = vector.shape_cast %67 : vector<1x16x8xf32> to vector<16x8xf32>
    %69 = vector.extract_strided_slice %66 {offsets = [1, 0, 0], sizes = [1, 16, 8], strides = [1, 1, 1]} : vector<4x16x8xf32> to vector<1x16x8xf32>
    %70 = vector.shape_cast %69 : vector<1x16x8xf32> to vector<16x8xf32>
    %71 = vector.extract_strided_slice %66 {offsets = [2, 0, 0], sizes = [1, 16, 8], strides = [1, 1, 1]} : vector<4x16x8xf32> to vector<1x16x8xf32>
    %72 = vector.shape_cast %71 : vector<1x16x8xf32> to vector<16x8xf32>
    %73 = vector.extract_strided_slice %66 {offsets = [3, 0, 0], sizes = [1, 16, 8], strides = [1, 1, 1]} : vector<4x16x8xf32> to vector<1x16x8xf32>
    %74 = vector.shape_cast %73 : vector<1x16x8xf32> to vector<16x8xf32>
    %75 = tpu.concatenate %68, %70, %72, %74 in 1 : vector<16x8xf32>, vector<16x8xf32>, vector<16x8xf32>, vector<16x8xf32> -> vector<16x32xf32>
    %cst_23 = arith.constant dense<0.000000e+00> : vector<16x32xf32>
    %76 = tpu.matmul %75, %26, %cst_23 {dimension_numbers = #tpu.dot_dimension_numbers<[1], [0], [0], [1], [0, 0, 1, 1], [], []>} : vector<16x32xf32>, vector<32x32xf32>, vector<16x32xf32> -> vector<16x32xf32>
    %77 = arith.addf %3, %76 : vector<16x32xf32>
    %c0_24 = arith.constant 0 : index
    %c0_25 = arith.constant 0 : index
    %c0_26 = arith.constant 0 : index
    %78 = vector.load %arg8[%c0_24, %c0_25, %c0_26] : memref<1x1x32xf32, #tpu.memory_space<vmem>>, vector<1x1x32xf32>
    %79 = vector.shape_cast %78 : vector<1x1x32xf32> to vector<1x32xf32>
    %80 = arith.mulf %77, %77 : vector<16x32xf32>
    %cst_27 = arith.constant dense<0.000000e+00> : vector<16xf32>
    %81 = vector.multi_reduction <add>, %80, %cst_27 [1] : vector<16x32xf32> to vector<16xf32>
    %82 = vector.shape_cast %81 : vector<16xf32> to vector<16x1xf32>
    %cst_28 = arith.constant 3.200000e+01 : f32
    %83 = vector.broadcast %cst_28 : f32 to vector<16x1xf32>
    %84 = arith.divf %82, %83 : vector<16x1xf32>
    %cst_29 = arith.constant 9.99999997E-7 : f32
    %85 = vector.broadcast %cst_29 : f32 to vector<16x1xf32>
    %86 = arith.addf %84, %85 : vector<16x1xf32>
    %87 = math.rsqrt %86 : vector<16x1xf32>
    %88 = vector.broadcast %87 : vector<16x1xf32> to vector<16x32xf32>
    %89 = arith.mulf %77, %88 : vector<16x32xf32>
    %90 = vector.broadcast %79 : vector<1x32xf32> to vector<16x32xf32>
    %91 = arith.mulf %89, %90 : vector<16x32xf32>
    %c0_30 = arith.constant 0 : index
    %c0_31 = arith.constant 0 : index
    %c0_32 = arith.constant 0 : index
    %92 = vector.load %arg9[%c0_30, %c0_31, %c0_32] : memref<1x32x32xf32, #tpu.memory_space<vmem>>, vector<1x32x32xf32>
    %93 = vector.shape_cast %92 : vector<1x32x32xf32> to vector<32x32xf32>
    %cst_33 = arith.constant dense<0.000000e+00> : vector<16x32xf32>
    %94 = tpu.matmul %91, %93, %cst_33 {dimension_numbers = #tpu.dot_dimension_numbers<[1], [0], [0], [1], [0, 0, 1, 1], [], []>} : vector<16x32xf32>, vector<32x32xf32>, vector<16x32xf32> -> vector<16x32xf32>
    %c0_34 = arith.constant 0 : index
    %c0_35 = arith.constant 0 : index
    %c0_36 = arith.constant 0 : index
    %95 = vector.load %arg10[%c0_34, %c0_35, %c0_36] : memref<1x32x64xf32, #tpu.memory_space<vmem>>, vector<1x32x64xf32>
    %96 = vector.shape_cast %95 : vector<1x32x64xf32> to vector<32x64xf32>
    %cst_37 = arith.constant dense<0.000000e+00> : vector<16x64xf32>
    %97 = tpu.matmul %4, %96, %cst_37 {dimension_numbers = #tpu.dot_dimension_numbers<[1], [0], [0], [1], [0, 0, 1, 1], [], []>} : vector<16x32xf32>, vector<32x64xf32>, vector<16x64xf32> -> vector<16x64xf32>
    %98 = vector.extract_strided_slice %97 {offsets = [0, 0], sizes = [16, 32], strides = [1, 1]} : vector<16x64xf32> to vector<16x32xf32>
    %99 = vector.extract_strided_slice %97 {offsets = [0, 32], sizes = [16, 32], strides = [1, 1]} : vector<16x64xf32> to vector<16x32xf32>
    %c0_38 = arith.constant 0 : index
    %c0_39 = arith.constant 0 : index
    %c0_40 = arith.constant 0 : index
    %100 = vector.load %arg11[%c0_38, %c0_39, %c0_40] : memref<1x32x32xf32, #tpu.memory_space<vmem>>, vector<1x32x32xf32>
    %101 = vector.shape_cast %100 : vector<1x32x32xf32> to vector<32x32xf32>
    %c0_41 = arith.constant 0 : index
    %c0_42 = arith.constant 0 : index
    %c0_43 = arith.constant 0 : index
    %102 = vector.load %arg4[%c0_41, %c0_42, %c0_43] : memref<4x16x16xf32, #tpu.memory_space<vmem>>, vector<4x16x16xf32>
    %103 = vector.extract_strided_slice %94 {offsets = [0, 0], sizes = [16, 8], strides = [1, 1]} : vector<16x32xf32> to vector<16x8xf32>
    %104 = vector.extract_strided_slice %94 {offsets = [0, 8], sizes = [16, 8], strides = [1, 1]} : vector<16x32xf32> to vector<16x8xf32>
    %105 = vector.extract_strided_slice %94 {offsets = [0, 16], sizes = [16, 8], strides = [1, 1]} : vector<16x32xf32> to vector<16x8xf32>
    %106 = vector.extract_strided_slice %94 {offsets = [0, 24], sizes = [16, 8], strides = [1, 1]} : vector<16x32xf32> to vector<16x8xf32>
    %107 = vector.shape_cast %103 : vector<16x8xf32> to vector<1x16x8xf32>
    %108 = vector.shape_cast %104 : vector<16x8xf32> to vector<1x16x8xf32>
    %109 = vector.shape_cast %105 : vector<16x8xf32> to vector<1x16x8xf32>
    %110 = vector.shape_cast %106 : vector<16x8xf32> to vector<1x16x8xf32>
    %111 = tpu.concatenate %107, %108, %109, %110 in 0 : vector<1x16x8xf32>, vector<1x16x8xf32>, vector<1x16x8xf32>, vector<1x16x8xf32> -> vector<4x16x8xf32>
    %112 = vector.extract_strided_slice %98 {offsets = [0, 0], sizes = [16, 8], strides = [1, 1]} : vector<16x32xf32> to vector<16x8xf32>
    %113 = vector.extract_strided_slice %98 {offsets = [0, 8], sizes = [16, 8], strides = [1, 1]} : vector<16x32xf32> to vector<16x8xf32>
    %114 = vector.extract_strided_slice %98 {offsets = [0, 16], sizes = [16, 8], strides = [1, 1]} : vector<16x32xf32> to vector<16x8xf32>
    %115 = vector.extract_strided_slice %98 {offsets = [0, 24], sizes = [16, 8], strides = [1, 1]} : vector<16x32xf32> to vector<16x8xf32>
    %116 = vector.shape_cast %112 : vector<16x8xf32> to vector<1x16x8xf32>
    %117 = vector.shape_cast %113 : vector<16x8xf32> to vector<1x16x8xf32>
    %118 = vector.shape_cast %114 : vector<16x8xf32> to vector<1x16x8xf32>
    %119 = vector.shape_cast %115 : vector<16x8xf32> to vector<1x16x8xf32>
    %120 = tpu.concatenate %116, %117, %118, %119 in 0 : vector<1x16x8xf32>, vector<1x16x8xf32>, vector<1x16x8xf32>, vector<1x16x8xf32> -> vector<4x16x8xf32>
    %121 = vector.extract_strided_slice %99 {offsets = [0, 0], sizes = [16, 8], strides = [1, 1]} : vector<16x32xf32> to vector<16x8xf32>
    %122 = vector.extract_strided_slice %99 {offsets = [0, 8], sizes = [16, 8], strides = [1, 1]} : vector<16x32xf32> to vector<16x8xf32>
    %123 = vector.extract_strided_slice %99 {offsets = [0, 16], sizes = [16, 8], strides = [1, 1]} : vector<16x32xf32> to vector<16x8xf32>
    %124 = vector.extract_strided_slice %99 {offsets = [0, 24], sizes = [16, 8], strides = [1, 1]} : vector<16x32xf32> to vector<16x8xf32>
    %125 = vector.shape_cast %121 : vector<16x8xf32> to vector<1x16x8xf32>
    %126 = vector.shape_cast %122 : vector<16x8xf32> to vector<1x16x8xf32>
    %127 = vector.shape_cast %123 : vector<16x8xf32> to vector<1x16x8xf32>
    %128 = vector.shape_cast %124 : vector<16x8xf32> to vector<1x16x8xf32>
    %129 = tpu.concatenate %125, %126, %127, %128 in 0 : vector<1x16x8xf32>, vector<1x16x8xf32>, vector<1x16x8xf32>, vector<1x16x8xf32> -> vector<4x16x8xf32>
    "tpu.trace_start"() <{level = 10 : i32, message = "hmd,hnd->hmn"}> : () -> ()
    %cst_44 = arith.constant dense<0.000000e+00> : vector<4x16x16xf32>
    %130 = tpu.matmul %111, %120, %cst_44 {dimension_numbers = #tpu.dot_dimension_numbers<[2], [2], [1], [1], [0, 0, 0, 1, 1, 1], [0], [0]>} : vector<4x16x8xf32>, vector<4x16x8xf32>, vector<4x16x16xf32> -> vector<4x16x16xf32>
    "tpu.trace_stop"() : () -> ()
    %131 = arith.addf %130, %102 : vector<4x16x16xf32>
    %cst_45 = arith.constant dense<0xFF800000> : vector<4x16xf32>
    %132 = vector.multi_reduction <maximumf>, %131, %cst_45 [2] : vector<4x16x16xf32> to vector<4x16xf32>
    %133 = vector.shape_cast %132 : vector<4x16xf32> to vector<4x16x1xf32>
    %134 = vector.broadcast %133 : vector<4x16x1xf32> to vector<4x16x16xf32>
    %135 = arith.subf %131, %134 : vector<4x16x16xf32>
    %136 = math.exp %135 : vector<4x16x16xf32>
    %cst_46 = arith.constant dense<0.000000e+00> : vector<4x16xf32>
    %137 = vector.multi_reduction <add>, %136, %cst_46 [2] : vector<4x16x16xf32> to vector<4x16xf32>
    %138 = vector.shape_cast %137 : vector<4x16xf32> to vector<4x16x1xf32>
    %139 = vector.broadcast %138 : vector<4x16x1xf32> to vector<4x16x16xf32>
    %140 = arith.divf %136, %139 : vector<4x16x16xf32>
    "tpu.trace_start"() <{level = 10 : i32, message = "hmn,hnd->hmd"}> : () -> ()
    %cst_47 = arith.constant dense<0.000000e+00> : vector<4x16x8xf32>
    %141 = tpu.matmul %140, %129, %cst_47 {dimension_numbers = #tpu.dot_dimension_numbers<[2], [1], [1], [2], [0, 0, 0, 1, 1, 2], [0], [0]>} : vector<4x16x16xf32>, vector<4x16x8xf32>, vector<4x16x8xf32> -> vector<4x16x8xf32>
    "tpu.trace_stop"() : () -> ()
    %142 = vector.extract_strided_slice %141 {offsets = [0, 0, 0], sizes = [1, 16, 8], strides = [1, 1, 1]} : vector<4x16x8xf32> to vector<1x16x8xf32>
    %143 = vector.shape_cast %142 : vector<1x16x8xf32> to vector<16x8xf32>
    %144 = vector.extract_strided_slice %141 {offsets = [1, 0, 0], sizes = [1, 16, 8], strides = [1, 1, 1]} : vector<4x16x8xf32> to vector<1x16x8xf32>
    %145 = vector.shape_cast %144 : vector<1x16x8xf32> to vector<16x8xf32>
    %146 = vector.extract_strided_slice %141 {offsets = [2, 0, 0], sizes = [1, 16, 8], strides = [1, 1, 1]} : vector<4x16x8xf32> to vector<1x16x8xf32>
    %147 = vector.shape_cast %146 : vector<1x16x8xf32> to vector<16x8xf32>
    %148 = vector.extract_strided_slice %141 {offsets = [3, 0, 0], sizes = [1, 16, 8], strides = [1, 1, 1]} : vector<4x16x8xf32> to vector<1x16x8xf32>
    %149 = vector.shape_cast %148 : vector<1x16x8xf32> to vector<16x8xf32>
    %150 = tpu.concatenate %143, %145, %147, %149 in 1 : vector<16x8xf32>, vector<16x8xf32>, vector<16x8xf32>, vector<16x8xf32> -> vector<16x32xf32>
    %cst_48 = arith.constant dense<0.000000e+00> : vector<16x32xf32>
    %151 = tpu.matmul %150, %101, %cst_48 {dimension_numbers = #tpu.dot_dimension_numbers<[1], [0], [0], [1], [0, 0, 1, 1], [], []>} : vector<16x32xf32>, vector<32x32xf32>, vector<16x32xf32> -> vector<16x32xf32>
    %152 = arith.addf %77, %151 : vector<16x32xf32>
    %c0_49 = arith.constant 0 : index
    %c0_50 = arith.constant 0 : index
    %c0_51 = arith.constant 0 : index
    %153 = vector.load %arg12[%c0_49, %c0_50, %c0_51] : memref<1x1x32xf32, #tpu.memory_space<vmem>>, vector<1x1x32xf32>
    %154 = vector.shape_cast %153 : vector<1x1x32xf32> to vector<1x32xf32>
    %155 = arith.mulf %152, %152 : vector<16x32xf32>
    %cst_52 = arith.constant dense<0.000000e+00> : vector<16xf32>
    %156 = vector.multi_reduction <add>, %155, %cst_52 [1] : vector<16x32xf32> to vector<16xf32>
    %157 = vector.shape_cast %156 : vector<16xf32> to vector<16x1xf32>
    %cst_53 = arith.constant 3.200000e+01 : f32
    %158 = vector.broadcast %cst_53 : f32 to vector<16x1xf32>
    %159 = arith.divf %157, %158 : vector<16x1xf32>
    %cst_54 = arith.constant 9.99999997E-7 : f32
    %160 = vector.broadcast %cst_54 : f32 to vector<16x1xf32>
    %161 = arith.addf %159, %160 : vector<16x1xf32>
    %162 = math.rsqrt %161 : vector<16x1xf32>
    %163 = vector.broadcast %162 : vector<16x1xf32> to vector<16x32xf32>
    %164 = arith.mulf %152, %163 : vector<16x32xf32>
    %165 = vector.broadcast %154 : vector<1x32xf32> to vector<16x32xf32>
    %166 = arith.mulf %164, %165 : vector<16x32xf32>
    %c0_55 = arith.constant 0 : index
    %c0_56 = arith.constant 0 : index
    %c0_57 = arith.constant 0 : index
    %167 = vector.load %arg13[%c0_55, %c0_56, %c0_57] : memref<1x32x64xf32, #tpu.memory_space<vmem>>, vector<1x32x64xf32>
    %168 = vector.shape_cast %167 : vector<1x32x64xf32> to vector<32x64xf32>
    %cst_58 = arith.constant dense<0.000000e+00> : vector<16x64xf32>
    %169 = tpu.matmul %166, %168, %cst_58 {dimension_numbers = #tpu.dot_dimension_numbers<[1], [0], [0], [1], [0, 0, 1, 1], [], []>} : vector<16x32xf32>, vector<32x64xf32>, vector<16x64xf32> -> vector<16x64xf32>
    %cst_59 = arith.constant 0.000000e+00 : f32
    %170 = vector.broadcast %cst_59 : f32 to vector<16x64xf32>
    %171 = arith.maximumf %169, %170 : vector<16x64xf32>
    %c0_60 = arith.constant 0 : index
    %c0_61 = arith.constant 0 : index
    %c0_62 = arith.constant 0 : index
    %172 = vector.load %arg14[%c0_60, %c0_61, %c0_62] : memref<1x64x32xf32, #tpu.memory_space<vmem>>, vector<1x64x32xf32>
    %173 = vector.shape_cast %172 : vector<1x64x32xf32> to vector<64x32xf32>
    %cst_63 = arith.constant dense<0.000000e+00> : vector<16x32xf32>
    %174 = tpu.matmul %171, %173, %cst_63 {dimension_numbers = #tpu.dot_dimension_numbers<[1], [0], [0], [1], [0, 0, 1, 1], [], []>} : vector<16x64xf32>, vector<64x32xf32>, vector<16x32xf32> -> vector<16x32xf32>
    %175 = arith.addf %152, %174 : vector<16x32xf32>
    %c0_64 = arith.constant 0 : index
    %c0_65 = arith.constant 0 : index
    %176 = vector.load %arg19[%c0_64, %c0_65] : memref<16x32xf32, #tpu.memory_space<vmem>>, vector<16x32xf32>
    tpu.vector_store %arg19[%c0_64, %c0_65], %175 {strides = array<i32>} : memref<16x32xf32, #tpu.memory_space<vmem>>, vector<16x32xf32>,
    %c1_i32 = arith.constant 1 : i32
    %177 = arith.cmpi eq, %arg0, %c1_i32 : i32
    %178 = arith.extui %177 : i1 to i32
    %c0_i32_66 = arith.constant 0 : i32
    %179 = arith.cmpi ne, %178, %c0_i32_66 : i32
    scf.if %179 {
      %c0_67 = arith.constant 0 : index
      %c0_68 = arith.constant 0 : index
      %180 = vector.load %arg15[%c0_67, %c0_68] : memref<1x32xf32, #tpu.memory_space<vmem>>, vector<1x32xf32>
      %181 = arith.mulf %175, %175 : vector<16x32xf32>
      %cst_69 = arith.constant dense<0.000000e+00> : vector<16xf32>
      %182 = vector.multi_reduction <add>, %181, %cst_69 [1] : vector<16x32xf32> to vector<16xf32>
      %183 = vector.shape_cast %182 : vector<16xf32> to vector<16x1xf32>
      %cst_70 = arith.constant 3.200000e+01 : f32
      %184 = vector.broadcast %cst_70 : f32 to vector<16x1xf32>
      %185 = arith.divf %183, %184 : vector<16x1xf32>
      %cst_71 = arith.constant 9.99999997E-7 : f32
      %186 = vector.broadcast %cst_71 : f32 to vector<16x1xf32>
      %187 = arith.addf %185, %186 : vector<16x1xf32>
      %188 = math.rsqrt %187 : vector<16x1xf32>
      %189 = vector.broadcast %188 : vector<16x1xf32> to vector<16x32xf32>
      %190 = arith.mulf %175, %189 : vector<16x32xf32>
      %191 = vector.broadcast %180 : vector<1x32xf32> to vector<16x32xf32>
      %192 = arith.mulf %190, %191 : vector<16x32xf32>
      %cst_72 = arith.constant 0.176776692 : f32
      %193 = vector.broadcast %cst_72 : f32 to vector<16x32xf32>
      %194 = arith.mulf %192, %193 : vector<16x32xf32>
      %c0_73 = arith.constant 0 : index
      %c0_74 = arith.constant 0 : index
      %195 = vector.load %arg16[%c0_73, %c0_74] : memref<32x128xf32, #tpu.memory_space<vmem>>, vector<32x128xf32>
      %cst_75 = arith.constant dense<0.000000e+00> : vector<16x128xf32>
      %196 = tpu.matmul %194, %195, %cst_75 {dimension_numbers = #tpu.dot_dimension_numbers<[1], [0], [0], [1], [0, 0, 1, 1], [], []>} : vector<16x32xf32>, vector<32x128xf32>, vector<16x128xf32> -> vector<16x128xf32>
      %c0_76 = arith.constant 0 : index
      %c0_77 = arith.constant 0 : index
      %197 = vector.load %arg17[%c0_76, %c0_77] : memref<1x128xf32, #tpu.memory_space<vmem>>, vector<1x128xf32>
      %198 = vector.broadcast %197 : vector<1x128xf32> to vector<16x128xf32>
      %199 = arith.addf %196, %198 : vector<16x128xf32>
      %c0_78 = arith.constant 0 : index
      %c0_79 = arith.constant 0 : index
      %200 = vector.load %arg18[%c0_78, %c0_79] : memref<16x128xf32, #tpu.memory_space<vmem>>, vector<16x128xf32>
      tpu.vector_store %arg18[%c0_78, %c0_79], %199 {strides = array<i32>} : memref<16x128xf32, #tpu.memory_space<vmem>>, vector<16x128xf32>,
    } else {
    }
    return
  }
  func.func @transform_0(%arg0: i32) -> (i32, i32) {
    %c0_i32 = arith.constant 0 : i32
    %c0_i32_0 = arith.constant 0 : i32
    %c0_i32_1 = arith.constant 0 : i32
    return %c0_i32, %c0_i32_0 : i32, i32
  }
  func.func @transform_1(%arg0: i32) -> (i32, i32) {
    %c0_i32 = arith.constant 0 : i32
    %c0_i32_0 = arith.constant 0 : i32
    %c0_i32_1 = arith.constant 0 : i32
    return %c0_i32, %c0_i32_0 : i32, i32
  }
  func.func @transform_2(%arg0: i32) -> (i32, i32, i32) {
    %c0_i32 = arith.constant 0 : i32
    %c0_i32_0 = arith.constant 0 : i32
    %c0_i32_1 = arith.constant 0 : i32
    %c0_i32_2 = arith.constant 0 : i32
    return %c0_i32, %c0_i32_0, %c0_i32_1 : i32, i32, i32
  }
  func.func @transform_3(%arg0: i32) -> (i32, i32, i32) {
    %c0_i32 = arith.constant 0 : i32
    %c0_i32_0 = arith.constant 0 : i32
    %c0_i32_1 = arith.constant 0 : i32
    %c0_i32_2 = arith.constant 0 : i32
    return %c0_i32, %c0_i32_0, %c0_i32_1 : i32, i32, i32
  }
  func.func @transform_4(%arg0: i32) -> (i32, i32, i32) {
    %c0_i32 = arith.constant 0 : i32
    %c0_i32_0 = arith.constant 0 : i32
    %c0_i32_1 = arith.constant 0 : i32
    return %arg0, %c0_i32, %c0_i32_0 : i32, i32, i32
  }
  func.func @transform_5(%arg0: i32) -> (i32, i32, i32) {
    %c0_i32 = arith.constant 0 : i32
    %c0_i32_0 = arith.constant 0 : i32
    %c0_i32_1 = arith.constant 0 : i32
    return %arg0, %c0_i32, %c0_i32_0 : i32, i32, i32
  }
  func.func @transform_6(%arg0: i32) -> (i32, i32, i32) {
    %c0_i32 = arith.constant 0 : i32
    %c0_i32_0 = arith.constant 0 : i32
    %c0_i32_1 = arith.constant 0 : i32
    return %arg0, %c0_i32, %c0_i32_0 : i32, i32, i32
  }
  func.func @transform_7(%arg0: i32) -> (i32, i32, i32) {
    %c0_i32 = arith.constant 0 : i32
    %c0_i32_0 = arith.constant 0 : i32
    %c0_i32_1 = arith.constant 0 : i32
    return %arg0, %c0_i32, %c0_i32_0 : i32, i32, i32
  }
  func.func @transform_8(%arg0: i32) -> (i32, i32, i32) {
    %c0_i32 = arith.constant 0 : i32
    %c0_i32_0 = arith.constant 0 : i32
    %c0_i32_1 = arith.constant 0 : i32
    return %arg0, %c0_i32, %c0_i32_0 : i32, i32, i32
  }
  func.func @transform_9(%arg0: i32) -> (i32, i32, i32) {
    %c0_i32 = arith.constant 0 : i32
    %c0_i32_0 = arith.constant 0 : i32
    %c0_i32_1 = arith.constant 0 : i32
    return %arg0, %c0_i32, %c0_i32_0 : i32, i32, i32
  }
  func.func @transform_10(%arg0: i32) -> (i32, i32, i32) {
    %c0_i32 = arith.constant 0 : i32
    %c0_i32_0 = arith.constant 0 : i32
    %c0_i32_1 = arith.constant 0 : i32
    return %arg0, %c0_i32, %c0_i32_0 : i32, i32, i32
  }
  func.func @transform_11(%arg0: i32) -> (i32, i32, i32) {
    %c0_i32 = arith.constant 0 : i32
    %c0_i32_0 = arith.constant 0 : i32
    %c0_i32_1 = arith.constant 0 : i32
    return %arg0, %c0_i32, %c0_i32_0 : i32, i32, i32
  }
  func.func @transform_12(%arg0: i32) -> (i32, i32, i32) {
    %c0_i32 = arith.constant 0 : i32
    %c0_i32_0 = arith.constant 0 : i32
    %c0_i32_1 = arith.constant 0 : i32
    return %arg0, %c0_i32, %c0_i32_0 : i32, i32, i32
  }
  func.func @transform_13(%arg0: i32) -> (i32, i32, i32) {
    %c0_i32 = arith.constant 0 : i32
    %c0_i32_0 = arith.constant 0 : i32
    %c0_i32_1 = arith.constant 0 : i32
    return %arg0, %c0_i32, %c0_i32_0 : i32, i32, i32
  }
  func.func @transform_14(%arg0: i32) -> (i32, i32) {
    %c0_i32 = arith.constant 0 : i32
    %c0_i32_0 = arith.constant 0 : i32
    %c0_i32_1 = arith.constant 0 : i32
    return %c0_i32, %c0_i32_0 : i32, i32
  }
  func.func @transform_15(%arg0: i32) -> (i32, i32) {
    %c0_i32 = arith.constant 0 : i32
    %c0_i32_0 = arith.constant 0 : i32
    %c0_i32_1 = arith.constant 0 : i32
    return %c0_i32, %c0_i32_0 : i32, i32
  }
  func.func @transform_16(%arg0: i32) -> (i32, i32) {
    %c0_i32 = arith.constant 0 : i32
    %c0_i32_0 = arith.constant 0 : i32
    %c0_i32_1 = arith.constant 0 : i32
    return %c0_i32, %c0_i32_0 : i32, i32
  }
  func.func @transform_17(%arg0: i32) -> (i32, i32) {
    %c0_i32 = arith.constant 0 : i32
    %c0_i32_0 = arith.constant 0 : i32
    %c0_i32_1 = arith.constant 0 : i32
    return %c0_i32, %c0_i32_0 : i32, i32
  }
}

</mosaic_0001>

<bundles_post_ra>
// kernel: t5_forward.2
= control target key start
LH: loop header
LB: loop body
LE: loop exit
PB: predicated region body
PF: predicated region fallthrough
CT: control target
= control target key end

     0   :  { %s2243_s30 = smov 0   ;;  %s2485_s0 = inlined_call_operand.vmem [shape: f32[16,32], index: 0, kind: input, shape index: {}]   ;;  %s2486_s1 = inlined_call_operand.vmem [shape: f32[4,16,16], index: 1, kind: input, shape index: {}]   ;;  %s2487_s2 = inlined_call_operand.vmem [shape: f32[2,1,32], index: 2, kind: input, shape index: {}]   ;;  %s2488_s3 = inlined_call_operand.vmem [shape: f32[2,32,96], index: 3, kind: input, shape index: {}]   ;;  %s2489_s4 = inlined_call_operand.vmem [shape: f32[2,32,32], index: 4, kind: input, shape index: {}]   ;;  %s2490_s5 = inlined_call_operand.vmem [shape: f32[2,1,32], index: 5, kind: input, shape index: {}]   ;;  %s2491_s6 = inlined_call_operand.vmem [shape: f32[2,32,64], index: 6, kind: input, shape index: {}]   ;;  %s2492_s7 = inlined_call_operand.vmem [shape: f32[2,64,32], index: 7, kind: input, shape index: {}]   ;;  %s2493_s8 = inlined_call_operand.vmem [shape: f32[1,32], index: 8, kind: input, shape index: {}]   ;;  %s2494_s9 = inlined_call_operand.vmem [shape: f32[16,32], index: 9, kind: output, shape index: {}]  }
   0x1 LB: > { %s2249_s10 = sadd.s32 4294967295, %s2183_s30   ;;  %p1777_p0 = scmp.ge.s32.totalorder %s2183_s30, 1  ;;  %s2183_s30 = sphi %s2243_s30, %s19_s30  }
   0x2   : > { %p328_p1 = scmp.lt.s32.totalorder %s2183_s30, 3 }
   0x4   : > { %p329_p2 = pnand %p1777_p0, %p328_p1 }
   0x5   : > { %p380_p3 = scmp.lt.s32.totalorder (!%p329_p2), %s2249_s10, 1  ;;  %p1786_p4 = scmp.ne.s32.totalorder (!%p329_p2), %s2249_s10, 0 }
   0x6   : > { %332 = sbr.rel (%p329_p2) target bundleno = 2504 (0x9c8), region = 56 }
   0xd   : > { %s2255_s11 = scalar_select %p380_p3, %s2249_s10, 1 }
   0xe   : > { %409 = sbr.rel (%p1786_p4) target bundleno = 21 (0x15), region = 60  ;;  %v410_v0 = vld [vmem:[%s2485_s0] sm:$0xff] (!%p1786_p4)  ;;  %vm412_vm0 = vcmask (!%p1786_p4), 261120   ;;  %v411_v1 = vld [vmem:[%s2485_s0 + $0x8] sm:$0xff] (!%p1786_p4) }
   0xf   : > { %s382_s14 = scalar_lea.vmem %s2487_s2, %s2255_s11  ;;  %s1825_s15 = sshll.u32 %s2255_s11, 5  ;;  %413 = vst.msk [vmem:[#allocation2] sm:$0xff] (!%p1786_p4), %vm412_vm0, %v410_v0  ;;  %414 = vst.msk [vmem:[#allocation2 + $0x8] sm:$0xff] (!%p1786_p4), %vm412_vm0, %v411_v1 }
  0x10   : > { %s387_s18 = scalar_lea.vmem %s2488_s3, %s1825_s15  ;;  %s2268_s21 = scalar_lea.vmem %s2489_s4, %s1825_s15 }
  0x11   : > { %s395_s24 = scalar_lea.vmem %s2490_s5, %s2255_s11  ;;  %s2277_s27 = scalar_lea.vmem %s2491_s6, %s1825_s15 }
  0x12   : > { %s1828_s28 = sshll.u32 %s2255_s11, 6 }
  0x13   : > { %s2283_s13 = scalar_lea.vmem %s2492_s7, %s1828_s28 }
  0x15 PF: > { %vm420_vm1 = vcmask 261120   ;;  %v444_v8 = vld [vmem:[%s387_s18] sm:$0xff]  ;;  %v445_v9 = vld [vmem:[%s387_s18 + $0x8] sm:$0xff]  ;;  %v446_v10 = vld [vmem:[%s387_s18 + $0x10] sm:$0xff]  ;;  %vm559_vm2 = vcmask 64512   ;;  %s2186_s23 = smov 112  }
  0x16   : > { %v2292_v2 = vld [vmem:[#allocation2] sm:$0xff]  ;;  %v2294_v3 = vld [vmem:[#allocation2 + $0x8] sm:$0xff]  ;;  %v1997_v11 = vpack.c.bf16 %v445_v9, %v444_v8  ;;  %v447_v12 = vld [vmem:[%s387_s18 + $0x18] sm:$0xff]  ;;  %s2185_s18 = smov 120   ;;  %s2188_s25 = smov 96   ;;  %vm904_vm4 = vcmask 130048  }
  0x17   : > { %v418_v4 = vmul.f32 %v2292_v2, %v2292_v2  ;;  %v419_v5 = vmul.f32 %v2294_v3, %v2294_v3  ;;  %v2001_v13 = vpack.c.bf16 %v447_v12, %v446_v10  ;;  %v1787_v21 = vld [vmem:[%s382_s14] ss:$0 sm:$0xff]  ;;  %s2187_s14 = smov 104   ;;  %vm2327_vm3 = vmpackc.low %vm559_vm2, %vm559_vm2  ;;  %v534_v56 = vld [vmem:[%s2486_s1 + $0x8] sm:$0xff]  ;;  %s2189_s29 = smov 64   ;;  %vm1369_vm5 = vcmask 195584  }
  0x18   : > { %1998 = vmatprep.subr.bf16.mxu1 %v1997_v11  ;;  %v533_v57 = vld [vmem:[%s2486_s1] sm:$0xff]  ;;  %v536_v0 = vld [vmem:[%s2486_s1 + $0x18] sm:$0xff]  ;;  %v535_v1 = vld [vmem:[%s2486_s1 + $0x10] sm:$0xff]  ;;  %s2190_s12 = smov 8   ;;  %s2191_s16 = smov 16   ;;  %vm1575_vm6 = vcmask 523264  }
  0x19   : > { %v421_v6 = vsel %vm420_vm1, %v418_v4, 0.0  ;;  %v424_v7 = vsel %vm420_vm1, %v419_v5, 0.0  ;;  %2000 = vmatpush3.bf16.msra.mxu1 %v1997_v11  ;;  %v538_v8 = vld [vmem:[%s2486_s1 + $0x28] sm:$0xff]  ;;  %v537_v10 = vld [vmem:[%s2486_s1 + $0x20] sm:$0xff]  ;;  %s2192_s17 = smov 24   ;;  %p1821_p5 = scmp.ne.s32.totalorder %s2249_s10, 1 }
  0x1a   : > { %422 = vadd.xlane.f32.xlu0 %v421_v6  ;;  %2002 = vmatprep.subr.bf16.mxu1 %v2001_v13 }
  0x1d   : > { %2004 = vmatpush3.bf16.msra.mxu1 %v2001_v13 }
  0x1e   : > { %425 = vadd.xlane.f32.xlu0 %v424_v7 }
  0xa7   : > { %v423_v14 = vpop.xlane.xlu0 %422 }
  0xa8   : > { %v428_v15 = vmul.f32 0.03125, %v423_v14 }
  0xaa   : > { %v430_v16 = vadd.f32 1e-06, %v428_v15 }
  0xab   : > { %v426_v17 = vpop.xlane.xlu0 %425 }
  0xac   : > { %2133 = vrsqrt.f32 %v430_v16  ;;  %v429_v18 = vmul.f32 0.03125, %v426_v17 }
  0xae   : > { %v431_v19 = vadd.f32 1e-06, %v429_v18  ;;  %v540_v18 = vld [vmem:[%s2486_s1 + $0x38] sm:$0xff] }
  0xb0   : > { %2135 = vrsqrt.f32 %v431_v19  ;;  %v539_v19 = vld [vmem:[%s2486_s1 + $0x30] sm:$0xff] }
  0xb6   : > { %v2134_v20 = vpop.eup %2133 }
  0xb7   : > { %v434_v22 = vmul.f32 %v2134_v20, %v2292_v2 }
  0xb9   : > { %v442_v23 = vmul.f32 %v1787_v21, %v434_v22 }
  0xba   : > { %v2136_v24 = vpop.eup %2135 }
  0xbb   : > { %v435_v25 = vmul.f32 %v2136_v24, %v2294_v3  ;;  %1897 = vmatprep.mubr.msk.f32.mxu1 %vm420_vm1, %v442_v23 }
  0xbd   : > { %v443_v26 = vmul.f32 %v1787_v21, %v435_v25 }
  0xbf   : > { %1898 = vmatmul.mubr.msk.f32.vlgmr.msra.gmra.mrb[0].mxu1 %vm420_vm1, %v443_v26 }
 0x192   : > { %v1899_v27 = vpop.f32.mrb[0].mxu1 }
 0x193   : > { %545 = vrot.lane.b32.xlu1 %v1899_v27, %s2185_s18  ;;  %v520_v28 = vpop.f32.mrb[1].mxu1 }
 0x194   : > { %547 = vrot.lane.b32.xlu0 %v520_v28, %s2186_s23  ;;  %1904 = vmatprep.mubr.msk.f32.mxu1 %vm559_vm2, %v520_v28  ;;  %v2312_v29 = vpack.i.bf16 %v1899_v27, %v520_v28 }
 0x197   : > { %543 = vrot.lane.b32.xlu1 %v520_v28, %s2185_s18 }
 0x19b   : > { %549 = vrot.lane.b32.xlu1 %v1899_v27, %s2186_s23 }
 0x19f   : > { %551 = vrot.lane.b32.xlu1 %v520_v28, %s2187_s14 }
 0x1a3   : > { %553 = vrot.lane.b32.xlu1 %v1899_v27, %s2187_s14 }
 0x1a7   : > { %2094 = vrot.lane.b32.xlu1 %v2312_v29, %s2188_s25 }
 0x205   : > { %v546_v30 = vpop.permute.xlu1 %545 }
 0x206   : > { %v548_v33 = vpop.permute.xlu0 %547 }
 0x209   : > { %v544_v31 = vpop.permute.xlu1 %543 }
 0x20a   : > { %v2315_v32 = vpack.i.bf16 %v546_v30, %v544_v31  ;;  %1911 = vmatprep.mubr.msk.f32.mxu0 %vm559_vm2, %v544_v31 }
 0x20c   : > { %2099 = vrot.lane.b32.xlu1 %v2315_v32, %s2188_s25 }
 0x20d   : > { %v550_v34 = vpop.permute.xlu1 %549 }
 0x20e   : > { %v2319_v35 = vpack.i.bf16 %v550_v34, %v548_v33 }
 0x210   : > { %2104 = vrot.lane.b32.xlu1 %v2319_v35, %s2188_s25 }
 0x211   : > { %v552_v36 = vpop.permute.xlu1 %551 }
 0x215   : > { %v554_v37 = vpop.permute.xlu1 %553 }
 0x216   : > { %v2322_v38 = vpack.i.bf16 %v554_v37, %v552_v36 }
 0x218   : > { %2109 = vrot.lane.b32.xlu0 %v2322_v38, %s2188_s25 }
 0x219   : > { %v2095_v39 = vpop.permute.xlu1 %2094 }
 0x21a   : > { %v2097_v40 = vunpack.i.h.bf16 %v2095_v39  ;;  %v2096_v41 = vunpack.i.l.bf16 %v2095_v39 }
 0x21c   : > { %v2005_v43 = vpack.c.bf16 %v2097_v40, %v2096_v41 }
 0x21e   : > { %2007 = vmatprep.subr.msk.bf16.mxu1 %vm2327_vm3, %v2005_v43 }
 0x21f   : > { %2010 = vmatpush3.bf16.xpose.msk.msra.mxu1 %vm2327_vm3, %v2005_v43 }
 0x226   : > { %1905 = vmatmul.mubr.msk.f32.vlgmr.msra.gmra.mrb[2].mxu1 %vm559_vm2, %v1899_v27 }
 0x227   : > { %1918 = vmatprep.mubr.msk.f32.mxu1 %vm559_vm2, %v548_v33 }
 0x27e   : > { %v2100_v44 = vpop.permute.xlu1 %2099 }
 0x27f   : > { %v2102_v45 = vunpack.i.h.bf16 %v2100_v44  ;;  %v2101_v46 = vunpack.i.l.bf16 %v2100_v44 }
 0x281   : > { %v2011_v47 = vpack.c.bf16 %v2102_v45, %v2101_v46 }
 0x282   : > { %v2105_v48 = vpop.permute.xlu1 %2104 }
 0x283   : > { %v2107_v49 = vunpack.i.h.bf16 %v2105_v48  ;;  %v2106_v50 = vunpack.i.l.bf16 %v2105_v48  ;;  %2013 = vmatprep.subr.msk.bf16.mxu0 %vm2327_vm3, %v2011_v47 }
 0x284   : > { %2016 = vmatpush3.bf16.xpose.msk.msra.mxu0 %vm2327_vm3, %v2011_v47 }
 0x285   : > { %v2017_v51 = vpack.c.bf16 %v2107_v49, %v2106_v50 }
 0x287   : > { %2019 = vmatprep.subr.msk.bf16.mxu1 %vm2327_vm3, %v2017_v51 }
 0x288   : > { %2022 = vmatpush3.bf16.xpose.msk.msra.mxu1 %vm2327_vm3, %v2017_v51 }
 0x28a   : > { %v2110_v52 = vpop.permute.xlu0 %2109 }
 0x28b   : > { %v2112_v53 = vunpack.i.h.bf16 %v2110_v52  ;;  %v2111_v54 = vunpack.i.l.bf16 %v2110_v52  ;;  %1912 = vmatmul.mubr.msk.f32.vlgmr.msra.gmra.mrb[0].mxu0 %vm559_vm2, %v546_v30 }
 0x28c   : > { %1925 = vmatprep.mubr.msk.f32.mxu0 %vm559_vm2, %v552_v36 }
 0x28d   : > { %v2023_v55 = vpack.c.bf16 %v2112_v53, %v2111_v54 }
 0x28f   : > { %1919 = vmatmul.mubr.msk.f32.vlgmr.msra.gmra.mrb[4].mxu1 %vm559_vm2, %v550_v34  ;;  %2025 = vmatprep.subr.msk.bf16.mxu0 %vm2327_vm3, %v2023_v55 }
 0x290   : > { %2028 = vmatpush3.bf16.xpose.msk.msra.mxu0 %vm2327_vm3, %v2023_v55 }
 0x297   : > { %1926 = vmatmul.mubr.msk.f32.vlgmr.msra.gmra.mrb[2].mxu0 %vm559_vm2, %v554_v37 }
 0x2f9   : > { %v1906_v58 = vpop.f32.mrb[2].mxu1 }
 0x2fa   : > { %v640_v59 = vadd.f32 %v1906_v58, %v534_v56  ;;  %v634_v60 = vpop.f32.mrb[3].mxu1 }
 0x2fb   : > { %v635_v61 = vadd.f32 %v634_v60, %v533_v57 }
 0x2fc   : > { %v908_v62 = vsel %vm904_vm4, %v640_v59, -inf }
 0x2fd   : > { %909 = vmax.xlane.f32.xlu0 %v908_v62  ;;  %v905_v63 = vsel %vm904_vm4, %v635_v61, -inf }
 0x2fe   : > { %906 = vmax.xlane.f32.xlu1 %v905_v63 }
 0x35e   : > { %v1913_v4 = vpop.f32.mrb[0].mxu0 }
 0x35f   : > { %v727_v5 = vadd.f32 %v1913_v4, %v536_v0  ;;  %v721_v6 = vpop.f32.mrb[1].mxu0 }
 0x360   : > { %v722_v7 = vadd.f32 %v721_v6, %v535_v1 }
 0x361   : > { %v914_v9 = vsel %vm904_vm4, %v727_v5, -inf }
 0x362   : > { %v1920_v11 = vpop.f32.mrb[4].mxu1  ;;  %915 = vmax.xlane.f32.xlu1 %v914_v9  ;;  %v911_v12 = vsel %vm904_vm4, %v722_v7, -inf }
 0x363   : > { %v814_v13 = vadd.f32 %v1920_v11, %v538_v8  ;;  %912 = vmax.xlane.f32.xlu0 %v911_v12  ;;  %v808_v14 = vpop.f32.mrb[5].mxu1 }
 0x364   : > { %v809_v15 = vadd.f32 %v808_v14, %v537_v10 }
 0x365   : > { %v920_v16 = vsel %vm904_vm4, %v814_v13, -inf }
 0x366   : > { %921 = vmax.xlane.f32.xlu1 %v920_v16  ;;  %v917_v17 = vsel %vm904_vm4, %v809_v15, -inf }
 0x367   : > { %918 = vmax.xlane.f32.xlu0 %v917_v17 }
 0x36a   : > { %v1927_v20 = vpop.f32.mrb[2].mxu0 }
 0x36b   : > { %v901_v21 = vadd.f32 %v1927_v20, %v540_v18  ;;  %v895_v22 = vpop.f32.mrb[3].mxu0 }
 0x36c   : > { %v896_v23 = vadd.f32 %v895_v22, %v539_v19 }
 0x36d   : > { %v926_v24 = vsel %vm904_vm4, %v901_v21, -inf }
 0x36e   : > { %927 = vmax.xlane.f32.xlu1 %v926_v24  ;;  %v923_v25 = vsel %vm904_vm4, %v896_v23, -inf }
 0x36f   : > { %924 = vmax.xlane.f32.xlu0 %v923_v25 }
 0x37f   : > { %2119 = vrot.lane.b32.xlu1 %v2315_v32, %s2189_s29 }
 0x385   : > { %2114 = vrot.lane.b32.xlu0 %v2312_v29, %s2189_s29 }
 0x38a   : > { %v910_v26 = vpop.xlane.xlu0 %909 }
 0x38b   : > { %v907_v27 = vpop.xlane.xlu1 %906  ;;  %v930_v28 = vsub.f32 %v640_v59, %v910_v26 }
 0x38c   : > { %v929_v30 = vsub.f32 %v635_v61, %v907_v27 }
 0x38d   : > { %v939_v31 = vmul.f32 1.442695, %v930_v28 }
 0x38e   : > { %v937_v33 = vmul.f32 1.442695, %v929_v30 }
 0x38f   : > { %2137 = vpow2.f32 %v939_v31 }
 0x390   : > { %2139 = vpow2.f32 %v937_v33 }
 0x399   : > { %v2389_v34 = vpop.eup %2137 }
 0x39a   : > { %v2391_v36 = vpop.eup %2139  ;;  %v956_v37 = vsel %vm904_vm4, %v2389_v34, 0.0 }
 0x39b   : > { %v953_v32 = vsel %vm904_vm4, %v2391_v36, 0.0 }
 0x3a3   : > { %957 = vadd.xlane.f32.xlu1 %v956_v37 }
 0x3a4   : > { %954 = vadd.xlane.f32.xlu0 %v953_v32 }
 0x3ef   : > { %v916_v29 = vpop.xlane.xlu1 %915 }
 0x3f0   : > { %v932_v39 = vsub.f32 %v727_v5, %v916_v29  ;;  %v913_v40 = vpop.xlane.xlu0 %912 }
 0x3f1   : > { %v931_v41 = vsub.f32 %v722_v7, %v913_v40 }
 0x3f2   : > { %v943_v42 = vmul.f32 1.442695, %v932_v39 }
 0x3f3   : > { %v941_v43 = vmul.f32 1.442695, %v931_v41  ;;  %v922_v44 = vpop.xlane.xlu1 %921 }
 0x3f4   : > { %2141 = vpow2.f32 %v943_v42  ;;  %v934_v45 = vsub.f32 %v814_v13, %v922_v44  ;;  %v919_v46 = vpop.xlane.xlu0 %918 }
 0x3f5   : > { %2143 = vpow2.f32 %v941_v43  ;;  %v933_v47 = vsub.f32 %v809_v15, %v919_v46 }
 0x3f6   : > { %v947_v48 = vmul.f32 1.442695, %v934_v45 }
 0x3f7   : > { %v945_v49 = vmul.f32 1.442695, %v933_v47 }
 0x3f8   : > { %2145 = vpow2.f32 %v947_v48  ;;  %v529_v48 = vld [vmem:[%s2268_s21] sm:$0xff] }
 0x3f9   : > { %2147 = vpow2.f32 %v945_v49  ;;  %v530_v49 = vld [vmem:[%s2268_s21 + $0x8] sm:$0xff] }
 0x3fb   : > { %v928_v50 = vpop.xlane.xlu1 %927 }
 0x3fc   : > { %v936_v51 = vsub.f32 %v901_v21, %v928_v50  ;;  %v925_v52 = vpop.xlane.xlu0 %924  ;;  %v2045_v50 = vpack.c.bf16 %v530_v49, %v529_v48 }
 0x3fd   : > { %v935_v53 = vsub.f32 %v896_v23, %v925_v52  ;;  %v532_v52 = vld [vmem:[%s2268_s21 + $0x18] sm:$0xff] }
 0x3fe   : > { %v2142_v54 = vpop.eup %2141  ;;  %v951_v55 = vmul.f32 1.442695, %v936_v51  ;;  %v531_v51 = vld [vmem:[%s2268_s21 + $0x10] sm:$0xff] }
 0x3ff   : > { %v2144_v56 = vpop.eup %2143  ;;  %v949_v57 = vmul.f32 1.442695, %v935_v53  ;;  %v2120_v58 = vpop.permute.xlu1 %2119  ;;  %v962_v59 = vsel %vm904_vm4, %v2142_v54, 0.0  ;;  %v2049_v53 = vpack.c.bf16 %v532_v52, %v531_v51 }
 0x400   : > { %2149 = vpow2.f32 %v951_v55  ;;  %v2122_v60 = vunpack.i.h.bf16 %v2120_v58  ;;  %v2115_v61 = vpop.permute.xlu0 %2114  ;;  %963 = vadd.xlane.f32.xlu1 %v962_v59  ;;  %v959_v62 = vsel %vm904_vm4, %v2144_v56, 0.0  ;;  %v2121_v63 = vunpack.i.l.bf16 %v2120_v58 }
 0x401   : > { %2151 = vpow2.f32 %v949_v57  ;;  %v2117_v0 = vunpack.i.h.bf16 %v2115_v61  ;;  %v2116_v1 = vunpack.i.l.bf16 %v2115_v61  ;;  %960 = vadd.xlane.f32.xlu0 %v959_v62 }
 0x402   : > { %v2399_v4 = vpop.eup %2145  ;;  %v2033_v9 = vpack.c.bf16 %v2122_v60, %v2121_v63 }
 0x403   : > { %v2148_v5 = vpop.eup %2147  ;;  %v2029_v6 = vpack.c.bf16 %v2117_v0, %v2116_v1  ;;  %v968_v7 = vsel %vm904_vm4, %v2399_v4, 0.0 }
 0x404   : > { %969 = vadd.xlane.f32.xlu1 %v968_v7  ;;  %v965_v8 = vsel %vm904_vm4, %v2148_v5, 0.0 }
 0x405   : > { %2030 = vmatprep.subr.bf16.mxu1 %v2029_v6  ;;  %966 = vadd.xlane.f32.xlu0 %v965_v8 }
 0x406   : > { %2032 = vmatpush3.bf16.msra.mxu1 %v2029_v6 }
 0x407   : > { %2034 = vmatprep.subr.bf16.mxu1 %v2033_v9 }
 0x40a   : > { %v2150_v10 = vpop.eup %2149 }
 0x40b   : > { %v2152_v11 = vpop.eup %2151  ;;  %v974_v12 = vsel %vm904_vm4, %v2150_v10, 0.0 }
 0x40c   : > { %975 = vadd.xlane.f32.xlu1 %v974_v12  ;;  %v971_v13 = vsel %vm904_vm4, %v2152_v11, 0.0 }
 0x40d   : > { %972 = vadd.xlane.f32.xlu0 %v971_v13 }
 0x41d   : > { %2124 = vrot.lane.b32.xlu1 %v2319_v35, %s2189_s29 }
 0x423   : > { %2129 = vrot.lane.b32.xlu0 %v2322_v38, %s2189_s29 }
 0x430   : > { %v958_v14 = vpop.xlane.xlu1 %957 }
 0x431   : > { %2153 = vrcp.f32 %v958_v14  ;;  %v955_v15 = vpop.xlane.xlu0 %954 }
 0x432   : > { %2155 = vrcp.f32 %v955_v15 }
 0x43b   : > { %v2154_v16 = vpop.eup %2153 }
 0x43c   : > { %v2156_v17 = vpop.eup %2155  ;;  %v980_v19 = vmul.f32 %v2154_v16, %v2389_v34 }
 0x43d   : > { %v978_v18 = vmul.f32 %v2156_v17, %v2391_v36 }
 0x43f   : > { %1932 = vmatprep.mubr.msk.f32.mxu1 %vm904_vm4, %v978_v18  ;;  %v1482_v18 = vld [vmem:[%s2277_s27 + $0x10] sm:$0xff] }
 0x440   : > { %1933 = vmatmul.mubr.msk.f32.vlgmr.msra.gmra.mrb[6].mxu1 %vm904_vm4, %v980_v19 }
 0x441   : > { %2036 = vmatpush3.bf16.msra.mxu1 %v2033_v9 }
 0x48d   : > { %v964_v20 = vpop.xlane.xlu1 %963 }
 0x48e   : > { %2157 = vrcp.f32 %v964_v20  ;;  %v961_v35 = vpop.xlane.xlu0 %960  ;;  %v1483_v20 = vld [vmem:[%s2277_s27 + $0x18] sm:$0xff] }
 0x48f   : > { %2159 = vrcp.f32 %v961_v35  ;;  %v2057_v35 = vpack.c.bf16 %v1483_v20, %v1482_v18 }
 0x491   : > { %v970_v21 = vpop.xlane.xlu1 %969 }
 0x492   : > { %v967_v38 = vpop.xlane.xlu0 %966 }
 0x493   : > { %2161 = vrcp.f32 %v967_v38  ;;  %v1567_v38 = vld [vmem:[%s2283_s13] sm:$0xff] }
 0x494   : > { %2163 = vrcp.f32 %v970_v21  ;;  %v1568_v21 = vld [vmem:[%s2283_s13 + $0x8] sm:$0xff] }
 0x498   : > { %v2158_v22 = vpop.eup %2157 }
 0x499   : > { %v2160_v23 = vpop.eup %2159  ;;  %v976_v24 = vpop.xlane.xlu1 %975  ;;  %v984_v27 = vmul.f32 %v2158_v22, %v2142_v54  ;;  %v1569_v22 = vld [vmem:[%s2283_s13 + $0x10] sm:$0xff] }
 0x49a   : > { %2165 = vrcp.f32 %v976_v24  ;;  %v973_v25 = vpop.xlane.xlu0 %972  ;;  %v982_v26 = vmul.f32 %v2160_v23, %v2144_v56  ;;  %v2061_v23 = vpack.c.bf16 %v1568_v21, %v1567_v38  ;;  %v1570_v24 = vld [vmem:[%s2283_s13 + $0x18] sm:$0xff] }
 0x49b   : > { %2167 = vrcp.f32 %v973_v25  ;;  %v2065_v25 = vpack.c.bf16 %v1570_v24, %v1569_v22 }
 0x49c   : > { %1939 = vmatprep.mubr.msk.f32.mxu1 %vm904_vm4, %v982_v26  ;;  %v1571_v26 = vld [vmem:[%s2283_s13 + $0x20] sm:$0xff] }
 0x49d   : > { %v2162_v28 = vpop.eup %2161  ;;  %v2125_v30 = vpop.permute.xlu1 %2124  ;;  %1940 = vmatmul.mubr.msk.f32.vlgmr.msra.gmra.mrb[8].mxu1 %vm904_vm4, %v984_v27  ;;  %v1572_v27 = vld [vmem:[%s2283_s13 + $0x28] sm:$0xff] }
 0x49e   : > { %v2127_v31 = vunpack.i.h.bf16 %v2125_v30  ;;  %v2126_v33 = vunpack.i.l.bf16 %v2125_v30  ;;  %v2130_v34 = vpop.permute.xlu0 %2129  ;;  %v986_v36 = vmul.f32 %v2162_v28, %v2148_v5  ;;  %v2164_v39 = vpop.eup %2163  ;;  %v2069_v28 = vpack.c.bf16 %v1572_v27, %v1571_v26 }
 0x49f   : > { %v2132_v37 = vunpack.i.h.bf16 %v2130_v34  ;;  %v2131_v32 = vunpack.i.l.bf16 %v2130_v34  ;;  %v988_v42 = vmul.f32 %v2164_v39, %v2399_v4  ;;  %v1816_v39 = vld [vmem:[%s395_s24] ss:$0 sm:$0xff] }
 0x4a0   : > { %v2037_v29 = vpack.c.bf16 %v2127_v31, %v2126_v33  ;;  %1946 = vmatprep.mubr.msk.f32.mxu0 %vm904_vm4, %v986_v36 }
 0x4a1   : > { %v2041_v40 = vpack.c.bf16 %v2132_v37, %v2131_v32 }
 0x4a2   : > { %2038 = vmatprep.subr.bf16.mxu0 %v2037_v29 }
 0x4a3   : > { %2040 = vmatpush3.bf16.msra.mxu0 %v2037_v29  ;;  %2042 = vmatprep.subr.bf16.mxu1 %v2041_v40 }
 0x4a4   : > { %v2166_v41 = vpop.eup %2165  ;;  %2044 = vmatpush3.bf16.msra.mxu1 %v2041_v40  ;;  %2046 = vmatprep.subr.bf16.mxu0 %v2045_v50 }
 0x4a5   : > { %v2168_v43 = vpop.eup %2167  ;;  %v992_v45 = vmul.f32 %v2166_v41, %v2150_v10 }
 0x4a6   : > { %1947 = vmatmul.mubr.msk.f32.vlgmr.msra.gmra.mrb[4].mxu0 %vm904_vm4, %v988_v42  ;;  %v990_v44 = vmul.f32 %v2168_v43, %v2152_v11 }
 0x4a7   : > { %2048 = vmatpush3.bf16.msra.mxu0 %v2045_v50 }
 0x4a8   : > { %1953 = vmatprep.mubr.msk.f32.mxu1 %vm904_vm4, %v990_v44  ;;  %2050 = vmatprep.subr.bf16.mxu0 %v2049_v53  ;;  %v1573_v44 = vld [vmem:[%s2283_s13 + $0x30] sm:$0xff] }
 0x4a9   : > { %1954 = vmatmul.mubr.msk.f32.vlgmr.msra.gmra.mrb[10].mxu1 %vm904_vm4, %v992_v45  ;;  %v1574_v45 = vld [vmem:[%s2283_s13 + $0x38] sm:$0xff] }
 0x4ab   : > { %2052 = vmatpush3.bf16.msra.mxu0 %v2049_v53 }
 0x4ac   : > { %2062 = vmatprep.subr.bf16.mxu0 %v2061_v23 }
 0x513   : > { %v1934_v46 = vpop.f32.mrb[6].mxu1 }
 0x514   : > { %v1071_v47 = vpop.f32.mrb[7].mxu1 }
 0x570   : > { %v1941_v54 = vpop.f32.mrb[8].mxu1 }
 0x571   : > { %1345 = vrot.lane.b32.xlu0 %v1941_v54, %s2190_s12  ;;  %v1158_v55 = vpop.f32.mrb[9].mxu1 }
 0x572   : > { %1343 = vrot.lane.b32.xlu1 %v1158_v55, %s2190_s12 }
 0x579   : > { %v1948_v56 = vpop.f32.mrb[4].mxu0 }
 0x57a   : > { %v1245_v57 = vpop.f32.mrb[5].mxu0  ;;  %1353 = vrot.lane.b32.xlu0 %v1948_v56, %s2191_s16 }
 0x57b   : > { %1351 = vrot.lane.b32.xlu1 %v1245_v57, %s2191_s16 }
 0x57c   : > { %v1955_v58 = vpop.f32.mrb[10].mxu1 }
 0x57d   : > { %v1332_v59 = vpop.f32.mrb[11].mxu1 }
 0x57e   : > { %1361 = vrot.lane.b32.xlu0 %v1955_v58, %s2192_s17 }
 0x57f   : > { %1359 = vrot.lane.b32.xlu1 %v1332_v59, %s2192_s17 }
 0x5e3   : > { %v1346_v60 = vpop.permute.xlu0 %1345 }
 0x5e4   : > { %v1344_v61 = vpop.permute.xlu1 %1343  ;;  %v1366_v4 = vsel %vm559_vm2, %v1934_v46, %v1346_v60  ;;  %v2073_v46 = vpack.c.bf16 %v1574_v45, %v1573_v44 }
 0x5e5   : > { %v1365_v0 = vsel %vm559_vm2, %v1071_v47, %v1344_v61 }
 0x5ec   : > { %v1354_v62 = vpop.permute.xlu0 %1353 }
 0x5ed   : > { %v1352_v63 = vpop.permute.xlu1 %1351  ;;  %v1368_v7 = vsel %vm904_vm4, %v1366_v4, %v1354_v62  ;;  %v1822_v4 = vld [vmem:[%s2493_s8] ss:$0 sm:$0xff] (!%p1821_p5) }
 0x5ee   : > { %v1367_v5 = vsel %vm904_vm4, %v1365_v0, %v1352_v63 }
 0x5f0   : > { %v1362_v1 = vpop.permute.xlu0 %1361 }
 0x5f1   : > { %v1360_v6 = vpop.permute.xlu1 %1359  ;;  %v1371_v9 = vsel %vm1369_vm5, %v1368_v7, %v1362_v1 }
 0x5f2   : > { %v1370_v8 = vsel %vm1369_vm5, %v1367_v5, %v1360_v6 }
 0x5f3   : > { %1964 = vmatprep.mubr.msk.f32.mxu0 %vm420_vm1, %v1370_v8 }
 0x5f4   : > { %1965 = vmatmul.mubr.msk.f32.vlgmr.msra.gmra.mrb[6].mxu0 %vm420_vm1, %v1371_v9 }
 0x5f5   : > { %2064 = vmatpush3.bf16.msra.mxu0 %v2061_v23 }
 0x5f6   : > { %2066 = vmatprep.subr.bf16.mxu0 %v2065_v25 }
 0x5f9   : > { %2068 = vmatpush3.bf16.msra.mxu0 %v2065_v25 }
 0x5fa   : > { %2070 = vmatprep.subr.bf16.mxu0 %v2069_v28 }
 0x5fd   : > { %2072 = vmatpush3.bf16.msra.mxu0 %v2069_v28 }
 0x5fe   : > { %2074 = vmatprep.subr.bf16.mxu0 %v2073_v46 }
 0x601   : > { %2076 = vmatpush3.bf16.msra.mxu0 %v2073_v46 }
 0x6c7   : > { %v1966_v10 = vpop.f32.mrb[6].mxu0 }
 0x6c8   : > { %v2432_v11 = vadd.f32 %v1966_v10, %v2294_v3  ;;  %v1444_v12 = vpop.f32.mrb[7].mxu0  ;;  %v1480_v3 = vld [vmem:[%s2277_s27] sm:$0xff] }
 0x6c9   : > { %v2435_v13 = vadd.f32 %v1444_v12, %v2292_v2  ;;  %v1481_v2 = vld [vmem:[%s2277_s27 + $0x8] sm:$0xff] }
 0x6ca   : > { %v1457_v14 = vmul.f32 %v2432_v11, %v2432_v11  ;;  %v2053_v19 = vpack.c.bf16 %v1481_v2, %v1480_v3 }
 0x6cb   : > { %v1456_v15 = vmul.f32 %v2435_v13, %v2435_v13 }
 0x6cc   : > { %v1461_v16 = vsel %vm420_vm1, %v1457_v14, 0.0  ;;  %2054 = vmatprep.subr.bf16.mxu1 %v2053_v19 }
 0x6cd   : > { %1462 = vadd.xlane.f32.xlu0 %v1461_v16  ;;  %v1458_v17 = vsel %vm420_vm1, %v1456_v15, 0.0  ;;  %2056 = vmatpush3.bf16.msra.mxu1 %v2053_v19 }
 0x6ce   : > { %1459 = vadd.xlane.f32.xlu1 %v1458_v17  ;;  %2058 = vmatprep.subr.bf16.mxu1 %v2057_v35 }
 0x6d1   : > { %2060 = vmatpush3.bf16.msra.mxu1 %v2057_v35 }
 0x75a   : > { %v1463_v30 = vpop.xlane.xlu0 %1462 }
 0x75b   : > { %v1465_v31 = vmul.f32 0.03125, %v1463_v30  ;;  %v1460_v33 = vpop.xlane.xlu1 %1459 }
 0x75c   : > { %v1464_v34 = vmul.f32 0.03125, %v1460_v33 }
 0x75d   : > { %v1467_v36 = vadd.f32 1e-06, %v1465_v31 }
 0x75e   : > { %v1466_v37 = vadd.f32 1e-06, %v1464_v34 }
 0x75f   : > { %2169 = vrsqrt.f32 %v1467_v36 }
 0x760   : > { %2171 = vrsqrt.f32 %v1466_v37 }
 0x769   : > { %v2170_v32 = vpop.eup %2169 }
 0x76a   : > { %v2172_v29 = vpop.eup %2171  ;;  %v1471_v40 = vmul.f32 %v2170_v32, %v2432_v11 }
 0x76b   : > { %v1470_v41 = vmul.f32 %v2172_v29, %v2435_v13 }
 0x76c   : > { %v1479_v43 = vmul.f32 %v1816_v39, %v1471_v40 }
 0x76d   : > { %v1478_v42 = vmul.f32 %v1816_v39, %v1470_v41 }
 0x76f   : > { %1975 = vmatprep.mubr.msk.f32.mxu1 %vm420_vm1, %v1478_v42 }
 0x770   : > { %1976 = vmatmul.mubr.msk.f32.vlgmr.msra.gmra.mrb[12].mxu1 %vm420_vm1, %v1479_v43 }
 0x843   : > { %v1977_v47 = vpop.f32.mrb[12].mxu1 }
 0x844   : > { %v1556_v48 = vpop.f32.mrb[13].mxu1  ;;  %v1566_v50 = vmax.f32 %v1977_v47, 0.0 }
 0x845   : > { %v1565_v49 = vmax.f32 %v1556_v48, 0.0 }
 0x847   : > { %1994 = vmatprep.mubr.msk.f32.mxu0 %vm1575_vm6, %v1565_v49 }
 0x848   : > { %1995 = vmatmul.mubr.msk.f32.vlgmr.msra.gmra.mrb[8].mxu0 %vm1575_vm6, %v1566_v50 }
 0x919   : > { %1664 = sbr.rel (%p1821_p5) target bundleno = 2504 (0x9c8), region = 64 }
 0x91b   : > { %v1996_v51 = vpop.f32.mrb[8].mxu0 }
 0x91c   : > { %v1658_v52 = vadd.f32 %v1996_v51, %v2432_v11  ;;  %v1648_v53 = vpop.f32.mrb[9].mxu0 }
 0x91d   : > { %v1657_v54 = vadd.f32 %v1648_v53, %v2435_v13 }
 0x91e   : > { %1660 = vst.msk [vmem:[#allocation2 + $0x8] sm:$0xff] %vm420_vm1, %v1658_v52  ;;  %v1667_v56 = vmul.f32 (!%p1821_p5), %v1658_v52, %v1658_v52 }
 0x91f   : > { %1659 = vst.msk [vmem:[#allocation2] sm:$0xff] %vm420_vm1, %v1657_v54  ;;  %v1666_v55 = vmul.f32 (!%p1821_p5), %v1657_v54, %v1657_v54 }
 0x920   : > { %v1671_v58 = vsel %vm420_vm1, %v1667_v56, 0.0 }
 0x921   : > { %v1668_v57 = vsel %vm420_vm1, %v1666_v55, 0.0 }
 0x922   : > { %1669 = vadd.xlane.f32.xlu0 %v1668_v57 }
 0x926   : > { %1672 = vadd.xlane.f32.xlu0 %v1671_v58 }
 0x9af   : > { %v1670_v59 = vpop.xlane.xlu0 %1669 }
 0x9b0   : > { %v1674_v60 = vmul.f32 0.03125, %v1670_v59 }
 0x9b2   : > { %v1676_v61 = vadd.f32 1e-06, %v1674_v60 }
 0x9b3   : > { %v1673_v62 = vpop.xlane.xlu0 %1672 }
 0x9b4   : > { %2173 = vrsqrt.f32 %v1676_v61  ;;  %v1675_v63 = vmul.f32 0.03125, %v1673_v62 }
 0x9b6   : > { %v1677_v0 = vadd.f32 1e-06, %v1675_v63 }
 0x9b8   : > { %2175 = vrsqrt.f32 %v1677_v0 }
 0x9be   : > { %v2174_v1 = vpop.eup %2173 }
 0x9bf   : > { %v1680_v5 = vmul.f32 %v2174_v1, %v1657_v54 }
 0x9c1   : > { %v1688_v6 = vmul.f32 %v1822_v4, %v1680_v5 }
 0x9c2   : > { %v2176_v7 = vpop.eup %2175 }
 0x9c3   : > { %1690 = vst.msk [vmem:[%s2494_s9] sm:$0xff] %vm420_vm1, %v1688_v6  ;;  %v1681_v8 = vmul.f32 %v2176_v7, %v1658_v52 }
 0x9c5   : > { %v1689_v9 = vmul.f32 %v1822_v4, %v1681_v8 }
 0x9c7   : > { %1691 = vst.msk [vmem:[%s2494_s9 + $0x8] sm:$0xff] %vm420_vm1, %v1689_v9 }
 0x9c8 PF: > { %s19_s30 = sadd.s32 1, %s2183_s30  }
 0x9c9   : > { %p16_p6 = scmp.ge.s32.totalorder %s19_s30, 4  }
 0x9cb   :  { %18 = sbr.rel (!%p16_p6) target bundleno = 1 (0x1), region = 105 }

// kernel: t5_forward.3
= control target key start
LH: loop header
LB: loop body
LE: loop exit
PB: predicated region body
PF: predicated region fallthrough
CT: control target
= control target key end

     0   :  { %s4172_s24 = smov 0   ;;  %s4649_s0 = inlined_call_operand.vmem [shape: f32[16,32], index: 0, kind: input, shape index: {}]   ;;  %s4650_s1 = inlined_call_operand.vmem [shape: f32[16,32], index: 1, kind: input, shape index: {}]   ;;  %s4651_s2 = inlined_call_operand.vmem [shape: f32[4,16,16], index: 2, kind: input, shape index: {}]   ;;  %s4652_s3 = inlined_call_operand.vmem [shape: f32[4,16,16], index: 3, kind: input, shape index: {}]   ;;  %s4653_s4 = inlined_call_operand.vmem [shape: f32[2,1,32], index: 4, kind: input, shape index: {}]   ;;  %s4654_s5 = inlined_call_operand.vmem [shape: f32[2,32,96], index: 5, kind: input, shape index: {}]   ;;  %s4655_s6 = inlined_call_operand.vmem [shape: f32[2,32,32], index: 6, kind: input, shape index: {}]   ;;  %s4656_s7 = inlined_call_operand.vmem [shape: f32[2,1,32], index: 7, kind: input, shape index: {}]   ;;  %s4657_s8 = inlined_call_operand.vmem [shape: f32[2,32,32], index: 8, kind: input, shape index: {}]   ;;  %s4658_s9 = inlined_call_operand.vmem [shape: f32[2,32,64], index: 9, kind: input, shape index: {}]   ;;  %s4659_s10 = inlined_call_operand.vmem [shape: f32[2,32,32], index: 10, kind: input, shape index: {}]   ;;  %s4660_s11 = inlined_call_operand.vmem [shape: f32[2,1,32], index: 11, kind: input, shape index: {}]   ;;  %s4661_s12 = inlined_call_operand.vmem [shape: f32[2,32,64], index: 12, kind: input, shape index: {}]   ;;  %s4662_s13 = inlined_call_operand.vmem [shape: f32[2,64,32], index: 13, kind: input, shape index: {}]   ;;  %s4663_s14 = inlined_call_operand.vmem [shape: f32[1,32], index: 14, kind: input, shape index: {}]   ;;  %s4664_s15 = inlined_call_operand.vmem [shape: f32[32,128], index: 15, kind: input, shape index: {}]   ;;  %s4665_s16 = inlined_call_operand.vmem [shape: f32[1,128], index: 16, kind: input, shape index: {}]   ;;  %s4666_s17 = inlined_call_operand.vmem [shape: f32[16,128], index: 17, kind: output, shape index: {}]  }
   0x1   :  { %4671 = sst [smem:[#allocation4_spill]] %s4649_s0 }
   0x2   :  { %4672 = sst [smem:[#allocation5_spill]] %s4650_s1 }
   0x3   :  { %4673 = sst [smem:[#allocation6_spill]] %s4654_s5 }
   0x4   :  { %4674 = sst [smem:[#allocation7_spill]] %s4655_s6 }
   0x5   :  { %4675 = sst [smem:[#allocation8_spill]] %s4657_s8 }
   0x6   :  { %4676 = sst [smem:[#allocation9_spill]] %s4663_s14 }
   0x7   :  { %4677 = sst [smem:[#allocation10_spill]] %s4665_s16 }
   0x8   :  { %4678 = sst [smem:[#allocation11_spill]] %s4666_s17 }
   0x9 LB: > { %4679 = sst [smem:[#allocation3_spill]] %s4072_s24  ;;  %s4178_s25 = sadd.s32 4294967295, %s4072_s24   ;;  %s4072_s24 = sphi %s4172_s24, %s27_s24  }
   0xa   : > { %p3324_p0 = scmp.ge.s32.totalorder %s4072_s24, 1  ;;  %p566_p1 = scmp.lt.s32.totalorder %s4072_s24, 3 }
   0xc   : > { %p567_p2 = pnand %p3324_p0, %p566_p1 }
   0xd   : > { %p652_p3 = scmp.lt.s32.totalorder (!%p567_p2), %s4178_s25, 1  ;;  %s4680_s5 = sld [smem:[#allocation6_spill]] (!%p567_p2) }
   0xe   : > { %570 = sbr.rel (%p567_p2) target bundleno = 4364 (0x110c), region = 88  ;;  %s4681_s6 = sld [smem:[#allocation7_spill]] (!%p567_p2) }
   0xf   : > { %s4682_s8 = sld [smem:[#allocation8_spill]] (!%p567_p2)  ;;  %p3339_p4 = scmp.ne.s32.totalorder (!%p567_p2), %s4178_s25, 0 }
  0x15   : > { %s4184_s26 = scalar_select %p652_p3, %s4178_s25, 1 }
  0x16   : > { %699 = sbr.rel (%p3339_p4) target bundleno = 30 (0x1e), region = 92  ;;  %s4683_s18 = sld [smem:[#allocation4_spill]] (!%p3339_p4)  ;;  %vm702_vm0 = vcmask (!%p3339_p4), 261120  }
  0x17   : > { %s3412_s0 = sshll.u32 %s4184_s26, 5  ;;  %s3418_s28 = sshll.u32 %s4184_s26, 6 }
  0x18   : > { %s4194_s19 = scalar_lea.vmem %s4680_s5, %s3412_s0  ;;  %s4199_s21 = scalar_lea.vmem %s4681_s6, %s3412_s0 }
  0x19   : > { %s4208_s17 = scalar_lea.vmem %s4682_s8, %s3412_s0  ;;  %s4213_s30 = scalar_lea.vmem %s4658_s9, %s3412_s0 }
  0x1a   : > { %s4218_s1 = scalar_lea.vmem %s4659_s10, %s3412_s0  ;;  %s4227_s24 = scalar_lea.vmem %s4661_s12, %s3412_s0 }
  0x1b   : > { %s4233_s16 = scalar_lea.vmem %s4662_s13, %s3418_s28 }
  0x1c   : > { %v700_v0 = vld [vmem:[%s4683_s18] sm:$0xff] (!%p3339_p4)  ;;  %v701_v1 = vld [vmem:[%s4683_s18 + $0x8] sm:$0xff] (!%p3339_p4) }
  0x1d   : > { %703 = vst.msk [vmem:[#allocation2] sm:$0xff] %vm702_vm0, %v700_v0  ;;  %704 = vst.msk [vmem:[#allocation2 + $0x8] sm:$0xff] %vm702_vm0, %v701_v1 }
  0x1e PF: > { %vm712_vm1 = vcmask 261120   ;;  %v736_v8 = vld [vmem:[%s4194_s19] sm:$0xff]  ;;  %v737_v9 = vld [vmem:[%s4194_s19 + $0x8] sm:$0xff]  ;;  %v738_v10 = vld [vmem:[%s4194_s19 + $0x10] sm:$0xff]  ;;  %s4684_s0 = scalar_lea.vmem %s4653_s4, %s4184_s26  ;;  %vm851_vm2 = vcmask 64512   ;;  %s4075_s27 = smov 112  }
  0x1f   : > { %v3743_v11 = vpack.c.bf16 %v737_v9, %v736_v8  ;;  %v739_v12 = vld [vmem:[%s4194_s19 + $0x18] sm:$0xff]  ;;  %v3340_v21 = vld [vmem:[%s4684_s0] ss:$0 sm:$0xff]  ;;  %s4074_s19 = smov 120   ;;  %s4076_s23 = smov 104   ;;  %vm4291_vm3 = vmpackc.low %vm851_vm2, %vm851_vm2  ;;  %vm1196_vm4 = vcmask 130048  }
  0x20   : > { %v3747_v13 = vpack.c.bf16 %v739_v12, %v738_v10  ;;  %s4077_s28 = smov 96   ;;  %v826_v56 = vld [vmem:[%s4651_s2 + $0x8] sm:$0xff]  ;;  %v825_v57 = vld [vmem:[%s4651_s2] sm:$0xff]  ;;  %v828_v0 = vld [vmem:[%s4651_s2 + $0x18] sm:$0xff]  ;;  %s4078_s5 = smov 64   ;;  %vm1661_vm5 = vcmask 195584  }
  0x21   : > { %3744 = vmatprep.subr.bf16.mxu1 %v3743_v11  ;;  %v827_v1 = vld [vmem:[%s4651_s2 + $0x10] sm:$0xff]  ;;  %v830_v8 = vld [vmem:[%s4651_s2 + $0x28] sm:$0xff]  ;;  %v829_v10 = vld [vmem:[%s4651_s2 + $0x20] sm:$0xff]  ;;  %s4079_s29 = smov 8   ;;  %s4080_s6 = smov 16   ;;  %vm2983_vm6 = vcmask 523264  }
  0x22   : > { %3746 = vmatpush3.bf16.msra.mxu1 %v3743_v11  ;;  %s4687_s14 = sld [smem:[#allocation5_spill]]  ;;  %v1946_v42 = vld [vmem:[%s4652_s3] sm:$0xff]  ;;  %p3405_p5 = scmp.ne.s32.totalorder %s4178_s25, 1 }
  0x23   : > { %3748 = vmatprep.subr.bf16.mxu1 %v3747_v13  ;;  %s4691_s20 = sld [smem:[#allocation10_spill]] (!%p3405_p5) }
  0x24   : > { %v4242_v2 = vld [vmem:[#allocation2] sm:$0xff]  ;;  %v4244_v3 = vld [vmem:[#allocation2 + $0x8] sm:$0xff] }
  0x25   : > { %v710_v4 = vmul.f32 %v4242_v2, %v4242_v2  ;;  %v711_v5 = vmul.f32 %v4244_v3, %v4244_v3 }
  0x26   : > { %3750 = vmatpush3.bf16.msra.mxu1 %v3747_v13 }
  0x27   : > { %v713_v6 = vsel %vm712_vm1, %v710_v4, 0.0  ;;  %v716_v7 = vsel %vm712_vm1, %v711_v5, 0.0 }
  0x28   : > { %714 = vadd.xlane.f32.xlu0 %v713_v6 }
  0x2c   : > { %717 = vadd.xlane.f32.xlu0 %v716_v7 }
  0xb5   : > { %v715_v14 = vpop.xlane.xlu0 %714 }
  0xb6   : > { %v720_v15 = vmul.f32 0.03125, %v715_v14 }
  0xb8   : > { %v722_v16 = vadd.f32 1e-06, %v720_v15 }
  0xb9   : > { %v718_v17 = vpop.xlane.xlu0 %717 }
  0xba   : > { %3986 = vrsqrt.f32 %v722_v16  ;;  %v721_v18 = vmul.f32 0.03125, %v718_v17 }
  0xbc   : > { %v723_v19 = vadd.f32 1e-06, %v721_v18  ;;  %v832_v18 = vld [vmem:[%s4651_s2 + $0x38] sm:$0xff] }
  0xbe   : > { %3988 = vrsqrt.f32 %v723_v19  ;;  %v831_v19 = vld [vmem:[%s4651_s2 + $0x30] sm:$0xff] }
  0xc4   : > { %v3987_v20 = vpop.eup %3986 }
  0xc5   : > { %v726_v22 = vmul.f32 %v3987_v20, %v4242_v2 }
  0xc7   : > { %v734_v23 = vmul.f32 %v3340_v21, %v726_v22 }
  0xc8   : > { %v3989_v24 = vpop.eup %3988 }
  0xc9   : > { %v727_v25 = vmul.f32 %v3989_v24, %v4244_v3  ;;  %3543 = vmatprep.mubr.msk.f32.mxu1 %vm712_vm1, %v734_v23 }
  0xcb   : > { %v735_v26 = vmul.f32 %v3340_v21, %v727_v25 }
  0xcd   : > { %3544 = vmatmul.mubr.msk.f32.vlgmr.msra.gmra.mrb[0].mxu1 %vm712_vm1, %v735_v26 }
 0x1a0   : > { %v3545_v27 = vpop.f32.mrb[0].mxu1 }
 0x1a1   : > { %837 = vrot.lane.b32.xlu1 %v3545_v27, %s4074_s19  ;;  %v812_v28 = vpop.f32.mrb[1].mxu1 }
 0x1a2   : > { %839 = vrot.lane.b32.xlu0 %v812_v28, %s4075_s27  ;;  %3550 = vmatprep.mubr.msk.f32.mxu1 %vm851_vm2, %v812_v28  ;;  %v4268_v29 = vpack.i.bf16 %v3545_v27, %v812_v28 }
 0x1a5   : > { %835 = vrot.lane.b32.xlu1 %v812_v28, %s4074_s19 }
 0x1a9   : > { %841 = vrot.lane.b32.xlu1 %v3545_v27, %s4075_s27 }
 0x1ad   : > { %843 = vrot.lane.b32.xlu1 %v812_v28, %s4076_s23 }
 0x1b1   : > { %845 = vrot.lane.b32.xlu1 %v3545_v27, %s4076_s23 }
 0x1b5   : > { %3912 = vrot.lane.b32.xlu1 %v4268_v29, %s4077_s28 }
 0x213   : > { %v838_v30 = vpop.permute.xlu1 %837 }
 0x214   : > { %v840_v33 = vpop.permute.xlu0 %839 }
 0x217   : > { %v836_v31 = vpop.permute.xlu1 %835 }
 0x218   : > { %v4276_v32 = vpack.i.bf16 %v838_v30, %v836_v31  ;;  %3557 = vmatprep.mubr.msk.f32.mxu0 %vm851_vm2, %v836_v31 }
 0x21a   : > { %3917 = vrot.lane.b32.xlu1 %v4276_v32, %s4077_s28 }
 0x21b   : > { %v842_v34 = vpop.permute.xlu1 %841 }
 0x21c   : > { %v4281_v35 = vpack.i.bf16 %v842_v34, %v840_v33 }
 0x21e   : > { %3922 = vrot.lane.b32.xlu1 %v4281_v35, %s4077_s28 }
 0x21f   : > { %v844_v36 = vpop.permute.xlu1 %843 }
 0x223   : > { %v846_v37 = vpop.permute.xlu1 %845 }
 0x224   : > { %v4285_v38 = vpack.i.bf16 %v846_v37, %v844_v36 }
 0x226   : > { %3927 = vrot.lane.b32.xlu0 %v4285_v38, %s4077_s28 }
 0x227   : > { %v3913_v39 = vpop.permute.xlu1 %3912 }
 0x228   : > { %v3915_v40 = vunpack.i.h.bf16 %v3913_v39  ;;  %v3914_v41 = vunpack.i.l.bf16 %v3913_v39 }
 0x22a   : > { %v3751_v43 = vpack.c.bf16 %v3915_v40, %v3914_v41 }
 0x22c   : > { %3753 = vmatprep.subr.msk.bf16.mxu1 %vm4291_vm3, %v3751_v43 }
 0x22d   : > { %3756 = vmatpush3.bf16.xpose.msk.msra.mxu1 %vm4291_vm3, %v3751_v43 }
 0x234   : > { %3551 = vmatmul.mubr.msk.f32.vlgmr.msra.gmra.mrb[2].mxu1 %vm851_vm2, %v3545_v27 }
 0x235   : > { %3564 = vmatprep.mubr.msk.f32.mxu1 %vm851_vm2, %v840_v33 }
 0x28c   : > { %v3918_v44 = vpop.permute.xlu1 %3917 }
 0x28d   : > { %v3920_v45 = vunpack.i.h.bf16 %v3918_v44  ;;  %v3919_v46 = vunpack.i.l.bf16 %v3918_v44 }
 0x28f   : > { %v3757_v47 = vpack.c.bf16 %v3920_v45, %v3919_v46 }
 0x290   : > { %v3923_v48 = vpop.permute.xlu1 %3922 }
 0x291   : > { %v3925_v49 = vunpack.i.h.bf16 %v3923_v48  ;;  %v3924_v50 = vunpack.i.l.bf16 %v3923_v48  ;;  %3759 = vmatprep.subr.msk.bf16.mxu0 %vm4291_vm3, %v3757_v47 }
 0x292   : > { %3762 = vmatpush3.bf16.xpose.msk.msra.mxu0 %vm4291_vm3, %v3757_v47 }
 0x293   : > { %v3763_v51 = vpack.c.bf16 %v3925_v49, %v3924_v50 }
 0x295   : > { %3765 = vmatprep.subr.msk.bf16.mxu1 %vm4291_vm3, %v3763_v51 }
 0x296   : > { %3768 = vmatpush3.bf16.xpose.msk.msra.mxu1 %vm4291_vm3, %v3763_v51 }
 0x298   : > { %v3928_v52 = vpop.permute.xlu0 %3927 }
 0x299   : > { %v3930_v53 = vunpack.i.h.bf16 %v3928_v52  ;;  %v3929_v54 = vunpack.i.l.bf16 %v3928_v52  ;;  %3558 = vmatmul.mubr.msk.f32.vlgmr.msra.gmra.mrb[0].mxu0 %vm851_vm2, %v838_v30 }
 0x29a   : > { %3571 = vmatprep.mubr.msk.f32.mxu0 %vm851_vm2, %v844_v36 }
 0x29b   : > { %v3769_v55 = vpack.c.bf16 %v3930_v53, %v3929_v54 }
 0x29d   : > { %3565 = vmatmul.mubr.msk.f32.vlgmr.msra.gmra.mrb[4].mxu1 %vm851_vm2, %v842_v34  ;;  %3771 = vmatprep.subr.msk.bf16.mxu0 %vm4291_vm3, %v3769_v55 }
 0x29e   : > { %3774 = vmatpush3.bf16.xpose.msk.msra.mxu0 %vm4291_vm3, %v3769_v55 }
 0x2a5   : > { %3572 = vmatmul.mubr.msk.f32.vlgmr.msra.gmra.mrb[2].mxu0 %vm851_vm2, %v846_v37 }
 0x307   : > { %v3552_v58 = vpop.f32.mrb[2].mxu1 }
 0x308   : > { %v932_v59 = vadd.f32 %v3552_v58, %v826_v56  ;;  %v926_v60 = vpop.f32.mrb[3].mxu1 }
 0x309   : > { %v927_v61 = vadd.f32 %v926_v60, %v825_v57 }
 0x30a   : > { %v1200_v62 = vsel %vm1196_vm4, %v932_v59, -inf }
 0x30b   : > { %1201 = vmax.xlane.f32.xlu0 %v1200_v62  ;;  %v1197_v63 = vsel %vm1196_vm4, %v927_v61, -inf }
 0x30c   : > { %1198 = vmax.xlane.f32.xlu1 %v1197_v63 }
 0x36c   : > { %v3559_v4 = vpop.f32.mrb[0].mxu0 }
 0x36d   : > { %v1019_v5 = vadd.f32 %v3559_v4, %v828_v0  ;;  %v1013_v6 = vpop.f32.mrb[1].mxu0 }
 0x36e   : > { %v1014_v7 = vadd.f32 %v1013_v6, %v827_v1 }
 0x36f   : > { %v1206_v9 = vsel %vm1196_vm4, %v1019_v5, -inf }
 0x370   : > { %v3566_v11 = vpop.f32.mrb[4].mxu1  ;;  %1207 = vmax.xlane.f32.xlu1 %v1206_v9  ;;  %v1203_v12 = vsel %vm1196_vm4, %v1014_v7, -inf }
 0x371   : > { %v1106_v13 = vadd.f32 %v3566_v11, %v830_v8  ;;  %1204 = vmax.xlane.f32.xlu0 %v1203_v12  ;;  %v1100_v14 = vpop.f32.mrb[5].mxu1 }
 0x372   : > { %v1101_v15 = vadd.f32 %v1100_v14, %v829_v10 }
 0x373   : > { %v1212_v16 = vsel %vm1196_vm4, %v1106_v13, -inf }
 0x374   : > { %1213 = vmax.xlane.f32.xlu1 %v1212_v16  ;;  %v1209_v17 = vsel %vm1196_vm4, %v1101_v15, -inf }
 0x375   : > { %1210 = vmax.xlane.f32.xlu0 %v1209_v17 }
 0x378   : > { %v3573_v20 = vpop.f32.mrb[2].mxu0 }
 0x379   : > { %v1193_v21 = vadd.f32 %v3573_v20, %v832_v18  ;;  %v1187_v22 = vpop.f32.mrb[3].mxu0 }
 0x37a   : > { %v1188_v23 = vadd.f32 %v1187_v22, %v831_v19 }
 0x37b   : > { %v1218_v24 = vsel %vm1196_vm4, %v1193_v21, -inf }
 0x37c   : > { %1219 = vmax.xlane.f32.xlu1 %v1218_v24  ;;  %v1215_v25 = vsel %vm1196_vm4, %v1188_v23, -inf }
 0x37d   : > { %1216 = vmax.xlane.f32.xlu0 %v1215_v25 }
 0x38d   : > { %3937 = vrot.lane.b32.xlu1 %v4276_v32, %s4078_s5 }
 0x393   : > { %3932 = vrot.lane.b32.xlu0 %v4268_v29, %s4078_s5 }
 0x398   : > { %v1202_v26 = vpop.xlane.xlu0 %1201 }
 0x399   : > { %v1199_v27 = vpop.xlane.xlu1 %1198  ;;  %v1222_v28 = vsub.f32 %v932_v59, %v1202_v26 }
 0x39a   : > { %v1221_v30 = vsub.f32 %v927_v61, %v1199_v27 }
 0x39b   : > { %v1231_v31 = vmul.f32 1.442695, %v1222_v28 }
 0x39c   : > { %v1229_v33 = vmul.f32 1.442695, %v1221_v30 }
 0x39d   : > { %3990 = vpow2.f32 %v1231_v31 }
 0x39e   : > { %3992 = vpow2.f32 %v1229_v33 }
 0x3a7   : > { %v4353_v34 = vpop.eup %3990 }
 0x3a8   : > { %v4355_v36 = vpop.eup %3992  ;;  %v1248_v37 = vsel %vm1196_vm4, %v4353_v34, 0.0 }
 0x3a9   : > { %v1245_v32 = vsel %vm1196_vm4, %v4355_v36, 0.0 }
 0x3b1   : > { %1249 = vadd.xlane.f32.xlu1 %v1248_v37 }
 0x3b2   : > { %1246 = vadd.xlane.f32.xlu0 %v1245_v32 }
 0x3fd   : > { %v1208_v29 = vpop.xlane.xlu1 %1207 }
 0x3fe   : > { %v1224_v39 = vsub.f32 %v1019_v5, %v1208_v29  ;;  %v1205_v40 = vpop.xlane.xlu0 %1204 }
 0x3ff   : > { %v1223_v41 = vsub.f32 %v1014_v7, %v1205_v40 }
 0x400   : > { %v1235_v43 = vmul.f32 1.442695, %v1224_v39 }
 0x401   : > { %v1233_v44 = vmul.f32 1.442695, %v1223_v41  ;;  %v1214_v45 = vpop.xlane.xlu1 %1213 }
 0x402   : > { %3994 = vpow2.f32 %v1235_v43  ;;  %v1226_v46 = vsub.f32 %v1106_v13, %v1214_v45  ;;  %v1211_v47 = vpop.xlane.xlu0 %1210 }
 0x403   : > { %3996 = vpow2.f32 %v1233_v44  ;;  %v1225_v48 = vsub.f32 %v1101_v15, %v1211_v47 }
 0x404   : > { %v1239_v49 = vmul.f32 1.442695, %v1226_v46 }
 0x405   : > { %v1237_v50 = vmul.f32 1.442695, %v1225_v48 }
 0x406   : > { %3998 = vpow2.f32 %v1239_v49 }
 0x407   : > { %4000 = vpow2.f32 %v1237_v50  ;;  %v821_v50 = vld [vmem:[%s4199_s21] sm:$0xff] }
 0x409   : > { %v1220_v51 = vpop.xlane.xlu1 %1219 }
 0x40a   : > { %v1228_v52 = vsub.f32 %v1193_v21, %v1220_v51  ;;  %v1217_v53 = vpop.xlane.xlu0 %1216  ;;  %v822_v51 = vld [vmem:[%s4199_s21 + $0x8] sm:$0xff] }
 0x40b   : > { %v1227_v54 = vsub.f32 %v1188_v23, %v1217_v53  ;;  %v823_v53 = vld [vmem:[%s4199_s21 + $0x10] sm:$0xff] }
 0x40c   : > { %v3995_v55 = vpop.eup %3994  ;;  %v1243_v56 = vmul.f32 1.442695, %v1228_v52  ;;  %v3791_v52 = vpack.c.bf16 %v822_v51, %v821_v50 }
 0x40d   : > { %v3997_v57 = vpop.eup %3996  ;;  %v1241_v58 = vmul.f32 1.442695, %v1227_v54  ;;  %v3938_v59 = vpop.permute.xlu1 %3937  ;;  %v1254_v60 = vsel %vm1196_vm4, %v3995_v55, 0.0  ;;  %v824_v54 = vld [vmem:[%s4199_s21 + $0x18] sm:$0xff]  ;;  %s4081_s21 = smov 24  }
 0x40e   : > { %4002 = vpow2.f32 %v1243_v56  ;;  %v3940_v61 = vunpack.i.h.bf16 %v3938_v59  ;;  %v3933_v62 = vpop.permute.xlu0 %3932  ;;  %1255 = vadd.xlane.f32.xlu1 %v1254_v60  ;;  %v1251_v63 = vsel %vm1196_vm4, %v3997_v57, 0.0  ;;  %v3939_v0 = vunpack.i.l.bf16 %v3938_v59 }
 0x40f   : > { %4004 = vpow2.f32 %v1241_v58  ;;  %v3935_v1 = vunpack.i.h.bf16 %v3933_v62  ;;  %v3934_v4 = vunpack.i.l.bf16 %v3933_v62  ;;  %1252 = vadd.xlane.f32.xlu0 %v1251_v63 }
 0x410   : > { %v4363_v5 = vpop.eup %3998  ;;  %v3779_v10 = vpack.c.bf16 %v3940_v61, %v3939_v0 }
 0x411   : > { %v4001_v6 = vpop.eup %4000  ;;  %v3775_v7 = vpack.c.bf16 %v3935_v1, %v3934_v4  ;;  %v1260_v8 = vsel %vm1196_vm4, %v4363_v5, 0.0 }
 0x412   : > { %1261 = vadd.xlane.f32.xlu1 %v1260_v8  ;;  %v1257_v9 = vsel %vm1196_vm4, %v4001_v6, 0.0 }
 0x413   : > { %3776 = vmatprep.subr.bf16.mxu1 %v3775_v7  ;;  %1258 = vadd.xlane.f32.xlu0 %v1257_v9 }
 0x414   : > { %3778 = vmatpush3.bf16.msra.mxu1 %v3775_v7 }
 0x415   : > { %3780 = vmatprep.subr.bf16.mxu1 %v3779_v10 }
 0x418   : > { %v4003_v11 = vpop.eup %4002 }
 0x419   : > { %v4005_v12 = vpop.eup %4004  ;;  %v1266_v13 = vsel %vm1196_vm4, %v4003_v11, 0.0 }
 0x41a   : > { %1267 = vadd.xlane.f32.xlu1 %v1266_v13  ;;  %v1263_v14 = vsel %vm1196_vm4, %v4005_v12, 0.0  ;;  %v1858_v13 = vld [vmem:[%s4213_s30 + $0x8] sm:$0xff] }
 0x41b   : > { %1264 = vadd.xlane.f32.xlu0 %v1263_v14 }
 0x42b   : > { %3942 = vrot.lane.b32.xlu1 %v4281_v35, %s4078_s5 }
 0x431   : > { %3947 = vrot.lane.b32.xlu0 %v4285_v38, %s4078_s5 }
 0x43e   : > { %v1250_v15 = vpop.xlane.xlu1 %1249 }
 0x43f   : > { %4006 = vrcp.f32 %v1250_v15  ;;  %v1247_v16 = vpop.xlane.xlu0 %1246 }
 0x440   : > { %4008 = vrcp.f32 %v1247_v16 }
 0x449   : > { %v4007_v17 = vpop.eup %4006 }
 0x44a   : > { %v4009_v18 = vpop.eup %4008  ;;  %v1272_v20 = vmul.f32 %v4007_v17, %v4353_v34 }
 0x44b   : > { %v1270_v19 = vmul.f32 %v4009_v18, %v4355_v36 }
 0x44d   : > { %3578 = vmatprep.mubr.msk.f32.mxu1 %vm1196_vm4, %v1270_v19 }
 0x44e   : > { %3579 = vmatmul.mubr.msk.f32.vlgmr.msra.gmra.mrb[6].mxu1 %vm1196_vm4, %v1272_v20 }
 0x44f   : > { %3782 = vmatpush3.bf16.msra.mxu1 %v3779_v10 }
 0x49b   : > { %v1256_v21 = vpop.xlane.xlu1 %1255 }
 0x49c   : > { %4010 = vrcp.f32 %v1256_v21  ;;  %v1253_v35 = vpop.xlane.xlu0 %1252 }
 0x49d   : > { %4012 = vrcp.f32 %v1253_v35  ;;  %v1859_v35 = vld [vmem:[%s4213_s30 + $0x10] sm:$0xff] }
 0x49f   : > { %v1262_v22 = vpop.xlane.xlu1 %1261 }
 0x4a0   : > { %v1259_v38 = vpop.xlane.xlu0 %1258 }
 0x4a1   : > { %4014 = vrcp.f32 %v1259_v38  ;;  %v1860_v38 = vld [vmem:[%s4213_s30 + $0x18] sm:$0xff] }
 0x4a2   : > { %4016 = vrcp.f32 %v1262_v22  ;;  %v707_v22 = vld [vmem:[%s4687_s14] sm:$0xff] }
 0x4a6   : > { %v4011_v23 = vpop.eup %4010 }
 0x4a7   : > { %v4013_v24 = vpop.eup %4012  ;;  %v1268_v25 = vpop.xlane.xlu1 %1267  ;;  %v1276_v28 = vmul.f32 %v4011_v23, %v3995_v55  ;;  %v3795_v55 = vpack.c.bf16 %v824_v54, %v823_v53  ;;  %v708_v23 = vld [vmem:[%s4687_s14 + $0x8] sm:$0xff] }
 0x4a8   : > { %4018 = vrcp.f32 %v1268_v25  ;;  %v1265_v26 = vpop.xlane.xlu0 %1264  ;;  %v1274_v27 = vmul.f32 %v4013_v24, %v3997_v57  ;;  %v1772_v24 = vld [vmem:[%s4208_s17] sm:$0xff]  ;;  %v1773_v25 = vld [vmem:[%s4208_s17 + $0x8] sm:$0xff] }
 0x4a9   : > { %4020 = vrcp.f32 %v1265_v26  ;;  %v1774_v26 = vld [vmem:[%s4208_s17 + $0x10] sm:$0xff] }
 0x4aa   : > { %3585 = vmatprep.mubr.msk.f32.mxu1 %vm1196_vm4, %v1274_v27  ;;  %v3799_v27 = vpack.c.bf16 %v1773_v25, %v1772_v24 }
 0x4ab   : > { %v4015_v30 = vpop.eup %4014  ;;  %v3943_v31 = vpop.permute.xlu1 %3942  ;;  %3586 = vmatmul.mubr.msk.f32.vlgmr.msra.gmra.mrb[8].mxu1 %vm1196_vm4, %v1276_v28  ;;  %v1775_v28 = vld [vmem:[%s4208_s17 + $0x18] sm:$0xff]  ;;  %s4688_s17 = scalar_lea.vmem %s4656_s7, %s4184_s26 }
 0x4ac   : > { %v3945_v33 = vunpack.i.h.bf16 %v3943_v31  ;;  %v3944_v34 = vunpack.i.l.bf16 %v3943_v31  ;;  %v3948_v36 = vpop.permute.xlu0 %3947  ;;  %v1278_v37 = vmul.f32 %v4015_v30, %v4001_v6  ;;  %v4017_v40 = vpop.eup %4016  ;;  %v3803_v30 = vpack.c.bf16 %v1775_v28, %v1774_v26  ;;  %v1953_v28 = vld [vmem:[%s4652_s3 + $0x38] sm:$0xff] }
 0x4ad   : > { %v3950_v32 = vunpack.i.h.bf16 %v3948_v36  ;;  %v3949_v29 = vunpack.i.l.bf16 %v3948_v36  ;;  %v1280_v44 = vmul.f32 %v4017_v40, %v4363_v5  ;;  %v3369_v40 = vld [vmem:[%s4688_s17] ss:$0 sm:$0xff] }
 0x4ae   : > { %v3783_v39 = vpack.c.bf16 %v3945_v33, %v3944_v34  ;;  %3592 = vmatprep.mubr.msk.f32.mxu0 %vm1196_vm4, %v1278_v37 }
 0x4af   : > { %v3787_v41 = vpack.c.bf16 %v3950_v32, %v3949_v29 }
 0x4b0   : > { %3784 = vmatprep.subr.bf16.mxu0 %v3783_v39 }
 0x4b1   : > { %3786 = vmatpush3.bf16.msra.mxu0 %v3783_v39  ;;  %3788 = vmatprep.subr.bf16.mxu1 %v3787_v41 }
 0x4b2   : > { %v4019_v43 = vpop.eup %4018  ;;  %3790 = vmatpush3.bf16.msra.mxu1 %v3787_v41  ;;  %3792 = vmatprep.subr.bf16.mxu0 %v3791_v52 }
 0x4b3   : > { %v4021_v45 = vpop.eup %4020  ;;  %v1284_v47 = vmul.f32 %v4019_v43, %v4003_v11  ;;  %3800 = vmatprep.subr.bf16.mxu1 %v3799_v27 }
 0x4b4   : > { %3593 = vmatmul.mubr.msk.f32.vlgmr.msra.gmra.mrb[4].mxu0 %vm1196_vm4, %v1280_v44  ;;  %v1282_v46 = vmul.f32 %v4021_v45, %v4005_v12  ;;  %v1857_v12 = vld [vmem:[%s4213_s30] sm:$0xff] }
 0x4b5   : > { %3794 = vmatpush3.bf16.msra.mxu0 %v3791_v52  ;;  %v3807_v14 = vpack.c.bf16 %v1858_v13, %v1857_v12 }
 0x4b6   : > { %3599 = vmatprep.mubr.msk.f32.mxu1 %vm1196_vm4, %v1282_v46  ;;  %3796 = vmatprep.subr.bf16.mxu0 %v3795_v55 }
 0x4b7   : > { %3600 = vmatmul.mubr.msk.f32.vlgmr.msra.gmra.mrb[10].mxu1 %vm1196_vm4, %v1284_v47 }
 0x4b8   : > { %3802 = vmatpush3.bf16.msra.mxu1 %v3799_v27  ;;  %v1952_v27 = vld [vmem:[%s4652_s3 + $0x30] sm:$0xff] }
 0x4b9   : > { %3798 = vmatpush3.bf16.msra.mxu0 %v3795_v55  ;;  %3804 = vmatprep.subr.bf16.mxu1 %v3803_v30 }
 0x4ba   : > { %3808 = vmatprep.subr.bf16.mxu0 %v3807_v14 }
 0x4bc   : > { %3806 = vmatpush3.bf16.msra.mxu1 %v3803_v30 }
 0x521   : > { %v3580_v48 = vpop.f32.mrb[6].mxu1 }
 0x522   : > { %v1363_v49 = vpop.f32.mrb[7].mxu1 }
 0x57e   : > { %v3587_v56 = vpop.f32.mrb[8].mxu1 }
 0x57f   : > { %1637 = vrot.lane.b32.xlu0 %v3587_v56, %s4079_s29  ;;  %v1450_v57 = vpop.f32.mrb[9].mxu1 }
 0x580   : > { %1635 = vrot.lane.b32.xlu1 %v1450_v57, %s4079_s29 }
 0x587   : > { %v3594_v58 = vpop.f32.mrb[4].mxu0 }
 0x588   : > { %v1537_v59 = vpop.f32.mrb[5].mxu0  ;;  %1645 = vrot.lane.b32.xlu0 %v3594_v58, %s4080_s6 }
 0x589   : > { %1643 = vrot.lane.b32.xlu1 %v1537_v59, %s4080_s6 }
 0x58a   : > { %v3601_v60 = vpop.f32.mrb[10].mxu1 }
 0x58b   : > { %v1624_v61 = vpop.f32.mrb[11].mxu1 }
 0x58c   : > { %1653 = vrot.lane.b32.xlu0 %v3601_v60, %s4081_s21 }
 0x58d   : > { %1651 = vrot.lane.b32.xlu1 %v1624_v61, %s4081_s21 }
 0x5f1   : > { %v1638_v62 = vpop.permute.xlu0 %1637 }
 0x5f2   : > { %v1636_v63 = vpop.permute.xlu1 %1635  ;;  %v1658_v6 = vsel %vm851_vm2, %v3580_v48, %v1638_v62 }
 0x5f3   : > { %v1657_v4 = vsel %vm851_vm2, %v1363_v49, %v1636_v63 }
 0x5fa   : > { %v1646_v0 = vpop.permute.xlu0 %1645 }
 0x5fb   : > { %v1644_v1 = vpop.permute.xlu1 %1643  ;;  %v1660_v9 = vsel %vm1196_vm4, %v1658_v6, %v1646_v0 }
 0x5fc   : > { %v1659_v7 = vsel %vm1196_vm4, %v1657_v4, %v1644_v1 }
 0x5fe   : > { %v1654_v5 = vpop.permute.xlu0 %1653 }
 0x5ff   : > { %v1652_v8 = vpop.permute.xlu1 %1651  ;;  %v1663_v11 = vsel %vm1661_vm5, %v1660_v9, %v1654_v5 }
 0x600   : > { %v1662_v10 = vsel %vm1661_vm5, %v1659_v7, %v1652_v8  ;;  %v1947_v8 = vld [vmem:[%s4652_s3 + $0x8] sm:$0xff] }
 0x601   : > { %3610 = vmatprep.mubr.msk.f32.mxu0 %vm712_vm1, %v1662_v10 }
 0x602   : > { %3611 = vmatmul.mubr.msk.f32.vlgmr.msra.gmra.mrb[6].mxu0 %vm712_vm1, %v1663_v11 }
 0x603   : > { %3810 = vmatpush3.bf16.msra.mxu0 %v3807_v14  ;;  %3632 = vmatprep.mubr.msk.f32.mxu0 %vm712_vm1, %v707_v22 }
 0x6d5   : > { %v3612_v15 = vpop.f32.mrb[6].mxu0 }
 0x6d6   : > { %v4406_v16 = vadd.f32 %v3612_v15, %v4244_v3  ;;  %v1736_v17 = vpop.f32.mrb[7].mxu0  ;;  %v1949_v15 = vld [vmem:[%s4652_s3 + $0x18] sm:$0xff] }
 0x6d7   : > { %v4409_v18 = vadd.f32 %v1736_v17, %v4242_v2  ;;  %v3811_v2 = vpack.c.bf16 %v1860_v38, %v1859_v35  ;;  %v1950_v38 = vld [vmem:[%s4652_s3 + $0x20] sm:$0xff] }
 0x6d8   : > { %v1749_v19 = vmul.f32 %v4406_v16, %v4406_v16 }
 0x6d9   : > { %v1748_v20 = vmul.f32 %v4409_v18, %v4409_v18  ;;  %3812 = vmatprep.subr.bf16.mxu0 %v3811_v2 }
 0x6da   : > { %v1753_v21 = vsel %vm712_vm1, %v1749_v19, 0.0  ;;  %3814 = vmatpush3.bf16.msra.mxu0 %v3811_v2  ;;  %v1948_v19 = vld [vmem:[%s4652_s3 + $0x10] sm:$0xff]  ;;  %v1951_v2 = vld [vmem:[%s4652_s3 + $0x28] sm:$0xff] }
 0x6db   : > { %1754 = vadd.xlane.f32.xlu0 %v1753_v21  ;;  %v1750_v3 = vsel %vm712_vm1, %v1748_v20, 0.0 }
 0x6dc   : > { %1751 = vadd.xlane.f32.xlu1 %v1750_v3 }
 0x6dd   : > { %3633 = vmatmul.mubr.msk.f32.vlgmr.msra.gmra.mrb[8].mxu0 %vm712_vm1, %v708_v23 }
 0x768   : > { %v1755_v31 = vpop.xlane.xlu0 %1754 }
 0x769   : > { %v1757_v33 = vmul.f32 0.03125, %v1755_v31  ;;  %v1752_v34 = vpop.xlane.xlu1 %1751 }
 0x76a   : > { %v1756_v36 = vmul.f32 0.03125, %v1752_v34 }
 0x76b   : > { %v1759_v37 = vadd.f32 1e-06, %v1757_v33 }
 0x76c   : > { %v1758_v32 = vadd.f32 1e-06, %v1756_v36 }
 0x76d   : > { %4022 = vrsqrt.f32 %v1759_v37 }
 0x76e   : > { %4024 = vrsqrt.f32 %v1758_v32 }
 0x777   : > { %v4023_v29 = vpop.eup %4022 }
 0x778   : > { %v4025_v39 = vpop.eup %4024  ;;  %v1763_v41 = vmul.f32 %v4023_v29, %v4406_v16 }
 0x779   : > { %v1762_v43 = vmul.f32 %v4025_v39, %v4409_v18 }
 0x77a   : > { %v1771_v45 = vmul.f32 %v3369_v40, %v1763_v41 }
 0x77b   : > { %v1770_v44 = vmul.f32 %v3369_v40, %v1762_v43 }
 0x77d   : > { %3621 = vmatprep.mubr.msk.f32.mxu1 %vm712_vm1, %v1770_v44 }
 0x77e   : > { %3622 = vmatmul.mubr.msk.f32.vlgmr.msra.gmra.mrb[12].mxu1 %vm712_vm1, %v1771_v45 }
 0x7b0   : > { %v3634_v46 = vpop.f32.mrb[8].mxu0 }
 0x7b1   : > { %v1933_v47 = vpop.f32.mrb[9].mxu0 }
 0x7b2   : > { %v4440_v48 = vpack.i.bf16 %v3634_v46, %v1933_v47  ;;  %v3815_v49 = vpack.c.bf16 %v3634_v46, %v1933_v47 }
 0x7b4   : > { %3957 = vrot.lane.b32.xlu1 %v4440_v48, %s4075_s27  ;;  %3952 = vrot.lane.b32.xlu0 %v4440_v48, %s4074_s19 }
 0x7b5   : > { %3817 = vmatprep.subr.msk.bf16.mxu1 %vm4291_vm3, %v3815_v49 }
 0x7b6   : > { %3820 = vmatpush3.bf16.xpose.msk.msra.mxu1 %vm4291_vm3, %v3815_v49 }
 0x7b8   : > { %3962 = vrot.lane.b32.xlu1 %v4440_v48, %s4076_s23 }
 0x826   : > { %v4452_v50 = vpop.permute.xlu1 %3957  ;;  %v4454_v51 = vpop.permute.xlu0 %3952 }
 0x827   : > { %v3960_v52 = vunpack.i.h.bf16 %v4452_v50  ;;  %v3959_v53 = vunpack.i.l.bf16 %v4452_v50  ;;  %v3955_v54 = vunpack.i.h.bf16 %v4454_v51  ;;  %v3954_v55 = vunpack.i.l.bf16 %v4454_v51 }
 0x829   : > { %v3827_v56 = vpack.c.bf16 %v3960_v52, %v3959_v53  ;;  %v3821_v57 = vpack.c.bf16 %v3955_v54, %v3954_v55 }
 0x82a   : > { %v4460_v58 = vpop.permute.xlu1 %3962 }
 0x82b   : > { %v3965_v59 = vunpack.i.h.bf16 %v4460_v58  ;;  %v3964_v60 = vunpack.i.l.bf16 %v4460_v58  ;;  %3823 = vmatprep.subr.msk.bf16.mxu0 %vm4291_vm3, %v3821_v57  ;;  %3829 = vmatprep.subr.msk.bf16.mxu1 %vm4291_vm3, %v3827_v56 }
 0x82c   : > { %3826 = vmatpush3.bf16.xpose.msk.msra.mxu0 %vm4291_vm3, %v3821_v57 }
 0x82d   : > { %v3833_v61 = vpack.c.bf16 %v3965_v59, %v3964_v60 }
 0x82f   : > { %3835 = vmatprep.subr.msk.bf16.mxu0 %vm4291_vm3, %v3833_v61 }
 0x851   : > { %v3623_v62 = vpop.f32.mrb[12].mxu1 }
 0x852   : > { %1958 = vrot.lane.b32.xlu1 %v3623_v62, %s4074_s19  ;;  %v1848_v63 = vpop.f32.mrb[13].mxu1 }
 0x853   : > { %1956 = vrot.lane.b32.xlu0 %v1848_v63, %s4074_s19  ;;  %3639 = vmatprep.mubr.msk.f32.mxu1 %vm851_vm2, %v1848_v63  ;;  %s4690_s19 = sld [smem:[#allocation9_spill]] (!%p3405_p5) }
 0x854   : > { %3640 = vmatmul.mubr.msk.f32.vlgmr.msra.gmra.mrb[14].mxu1 %vm851_vm2, %v3623_v62 }
 0x855   : > { %3832 = vmatpush3.bf16.xpose.msk.msra.mxu1 %vm4291_vm3, %v3827_v56 }
 0x856   : > { %1962 = vrot.lane.b32.xlu1 %v3623_v62, %s4075_s27 }
 0x857   : > { %1960 = vrot.lane.b32.xlu0 %v1848_v63, %s4075_s27 }
 0x85a   : > { %1966 = vrot.lane.b32.xlu1 %v3623_v62, %s4076_s23 }
 0x85b   : > { %1964 = vrot.lane.b32.xlu0 %v1848_v63, %s4076_s23 }
 0x8c4   : > { %v1959_v0 = vpop.permute.xlu1 %1958 }
 0x8c5   : > { %v1957_v1 = vpop.permute.xlu0 %1956 }
 0x8c6   : > { %3646 = vmatprep.mubr.msk.f32.mxu0 %vm851_vm2, %v1957_v1 }
 0x8c7   : > { %3647 = vmatmul.mubr.msk.f32.vlgmr.msra.gmra.mrb[10].mxu0 %vm851_vm2, %v1959_v0 }
 0x8c8   : > { %3838 = vmatpush3.bf16.xpose.msk.msra.mxu0 %vm4291_vm3, %v3833_v61  ;;  %v1963_v4 = vpop.permute.xlu1 %1962 }
 0x8c9   : > { %v1961_v5 = vpop.permute.xlu0 %1960 }
 0x8ca   : > { %3653 = vmatprep.mubr.msk.f32.mxu1 %vm851_vm2, %v1961_v5 }
 0x8cb   : > { %3654 = vmatmul.mubr.msk.f32.vlgmr.msra.gmra.mrb[16].mxu1 %vm851_vm2, %v1963_v4 }
 0x8cc   : > { %v1967_v7 = vpop.permute.xlu1 %1966 }
 0x8cd   : > { %v1965_v6 = vpop.permute.xlu0 %1964 }
 0x8ce   : > { %3660 = vmatprep.mubr.msk.f32.mxu0 %vm851_vm2, %v1965_v6 }
 0x8cf   : > { %3661 = vmatmul.mubr.msk.f32.vlgmr.msra.gmra.mrb[12].mxu0 %vm851_vm2, %v1967_v7 }
 0x927   : > { %v3641_v9 = vpop.f32.mrb[14].mxu1 }
 0x928   : > { %v2062_v10 = vadd.f32 %v3641_v9, %v1947_v8  ;;  %v2056_v11 = vpop.f32.mrb[15].mxu1 }
 0x929   : > { %v2057_v12 = vadd.f32 %v2056_v11, %v1946_v42 }
 0x92a   : > { %v2317_v13 = vsel %vm1196_vm4, %v2062_v10, -inf }
 0x92b   : > { %2318 = vmax.xlane.f32.xlu1 %v2317_v13  ;;  %v2314_v14 = vsel %vm1196_vm4, %v2057_v12, -inf }
 0x92c   : > { %2315 = vmax.xlane.f32.xlu0 %v2314_v14 }
 0x99a   : > { %v3648_v17 = vpop.f32.mrb[10].mxu0 }
 0x99b   : > { %v2145_v20 = vadd.f32 %v3648_v17, %v1949_v15  ;;  %v2139_v21 = vpop.f32.mrb[11].mxu0 }
 0x99c   : > { %v2140_v3 = vadd.f32 %v2139_v21, %v1948_v19 }
 0x99d   : > { %v2323_v35 = vsel %vm1196_vm4, %v2145_v20, -inf }
 0x99e   : > { %2324 = vmax.xlane.f32.xlu0 %v2323_v35  ;;  %v3655_v22 = vpop.f32.mrb[16].mxu1  ;;  %v2320_v26 = vsel %vm1196_vm4, %v2140_v3, -inf }
 0x99f   : > { %v2222_v23 = vpop.f32.mrb[17].mxu1  ;;  %v2228_v25 = vadd.f32 %v3655_v22, %v1951_v2 }
 0x9a0   : > { %v2223_v24 = vadd.f32 %v2222_v23, %v1950_v38 }
 0x9a1   : > { %v2329_v37 = vsel %vm1196_vm4, %v2228_v25, -inf }
 0x9a2   : > { %2321 = vmax.xlane.f32.xlu0 %v2320_v26  ;;  %v3662_v30 = vpop.f32.mrb[12].mxu0  ;;  %v2326_v31 = vsel %vm1196_vm4, %v2223_v24, -inf }
 0x9a3   : > { %v2305_v33 = vpop.f32.mrb[13].mxu0  ;;  %2327 = vmax.xlane.f32.xlu1 %v2326_v31  ;;  %v2311_v36 = vadd.f32 %v3662_v30, %v1953_v28 }
 0x9a4   : > { %v4519_v34 = vadd.f32 %v2305_v33, %v1952_v27 }
 0x9a5   : > { %v2335_v29 = vsel %vm1196_vm4, %v2311_v36, -inf }
 0x9a6   : > { %2330 = vmax.xlane.f32.xlu0 %v2329_v37  ;;  %v2332_v32 = vsel %vm1196_vm4, %v4519_v34, -inf }
 0x9a7   : > { %2333 = vmax.xlane.f32.xlu1 %v2332_v32 }
 0x9aa   : > { %2336 = vmax.xlane.f32.xlu0 %v2335_v29 }
 0x9b8   : > { %v2319_v39 = vpop.xlane.xlu1 %2318  ;;  %3967 = vrot.lane.b32.xlu1 %v4440_v48, %s4077_s28 }
 0x9b9   : > { %v2339_v40 = vsub.f32 %v2062_v10, %v2319_v39  ;;  %v2316_v43 = vpop.xlane.xlu0 %2315 }
 0x9ba   : > { %v2338_v44 = vsub.f32 %v2057_v12, %v2316_v43 }
 0x9bb   : > { %v2348_v41 = vmul.f32 1.442695, %v2339_v40 }
 0x9bc   : > { %v2346_v47 = vmul.f32 1.442695, %v2338_v44 }
 0x9bd   : > { %4026 = vpow2.f32 %v2348_v41 }
 0x9be   : > { %4028 = vpow2.f32 %v2346_v47 }
 0x9c7   : > { %v4527_v45 = vpop.eup %4026 }
 0x9c8   : > { %v2365_v46 = vsel %vm1196_vm4, %v4527_v45, 0.0  ;;  %v4029_v49 = vpop.eup %4028 }
 0x9c9   : > { %2366 = vadd.xlane.f32.xlu0 %v2365_v46  ;;  %v2362_v52 = vsel %vm1196_vm4, %v4029_v49, 0.0 }
 0x9dc   : > { %2363 = vadd.xlane.f32.xlu1 %v2362_v52 }
 0xa2b   : > { %v2325_v53 = vpop.xlane.xlu0 %2324 }
 0xa2c   : > { %v2341_v54 = vsub.f32 %v2145_v20, %v2325_v53 }
 0xa2e   : > { %v2352_v48 = vmul.f32 1.442695, %v2341_v54 }
 0xa2f   : > { %v2322_v55 = vpop.xlane.xlu0 %2321 }
 0xa30   : > { %4030 = vpow2.f32 %v2352_v48  ;;  %v2340_v56 = vsub.f32 %v2140_v3, %v2322_v55  ;;  %v2328_v57 = vpop.xlane.xlu1 %2327 }
 0xa31   : > { %v2342_v59 = vsub.f32 %v2223_v24, %v2328_v57 }
 0xa32   : > { %v2350_v60 = vmul.f32 1.442695, %v2340_v56 }
 0xa33   : > { %v2354_v61 = vmul.f32 1.442695, %v2342_v59  ;;  %v2331_v62 = vpop.xlane.xlu0 %2330 }
 0xa34   : > { %4032 = vpow2.f32 %v2350_v60  ;;  %v2343_v63 = vsub.f32 %v2228_v25, %v2331_v62  ;;  %v2334_v0 = vpop.xlane.xlu1 %2333 }
 0xa35   : > { %4034 = vpow2.f32 %v2354_v61  ;;  %v2344_v3 = vsub.f32 %v4519_v34, %v2334_v0  ;;  %v1943_v0 = vld [vmem:[%s4218_s1 + $0x8] sm:$0xff] }
 0xa36   : > { %v2356_v1 = vmul.f32 1.442695, %v2343_v63  ;;  %v1942_v63 = vld [vmem:[%s4218_s1] sm:$0xff] }
 0xa37   : > { %v2337_v4 = vpop.xlane.xlu0 %2336  ;;  %v2358_v38 = vmul.f32 1.442695, %v2344_v3 }
 0xa38   : > { %4036 = vpow2.f32 %v2356_v1  ;;  %v2345_v5 = vsub.f32 %v2311_v36, %v2337_v4  ;;  %v3968_v6 = vpop.permute.xlu1 %3967  ;;  %v1944_v1 = vld [vmem:[%s4218_s1 + $0x10] sm:$0xff]  ;;  %v3855_v4 = vpack.c.bf16 %v1943_v0, %v1942_v63 }
 0xa39   : > { %v3970_v7 = vunpack.i.h.bf16 %v3968_v6  ;;  %v3969_v8 = vunpack.i.l.bf16 %v3968_v6 }
 0xa3a   : > { %v4532_v42 = vpop.eup %4030  ;;  %v2360_v9 = vmul.f32 1.442695, %v2345_v5  ;;  %v1945_v5 = vld [vmem:[%s4218_s1 + $0x18] sm:$0xff]  ;;  %s4692_s1 = sld [smem:[#allocation11_spill]] (!%p3405_p5) }
 0xa3b   : > { %v3839_v10 = vpack.c.bf16 %v3970_v7, %v3969_v8  ;;  %v2371_v11 = vsel %vm1196_vm4, %v4532_v42, 0.0  ;;  %v3859_v6 = vpack.c.bf16 %v1945_v5, %v1944_v1 }
 0xa3c   : > { %4038 = vpow2.f32 %v2360_v9  ;;  %2372 = vadd.xlane.f32.xlu0 %v2371_v11 }
 0xa3d   : > { %3840 = vmatprep.subr.bf16.mxu1 %v3839_v10 }
 0xa3e   : > { %v4033_v12 = vpop.eup %4032  ;;  %3842 = vmatpush3.bf16.msra.mxu1 %v3839_v10 }
 0xa3f   : > { %v2368_v13 = vsel %vm1196_vm4, %v4033_v12, 0.0  ;;  %v4035_v14 = vpop.eup %4034 }
 0xa40   : > { %2369 = vadd.xlane.f32.xlu1 %v2368_v13  ;;  %v2374_v19 = vsel %vm1196_vm4, %v4035_v14, 0.0 }
 0xa42   : > { %v4037_v15 = vpop.eup %4036 }
 0xa43   : > { %v2377_v17 = vsel %vm1196_vm4, %v4037_v15, 0.0 }
 0xa44   : > { %2378 = vadd.xlane.f32.xlu0 %v2377_v17  ;;  %2375 = vadd.xlane.f32.xlu1 %v2374_v19 }
 0xa46   : > { %v4539_v20 = vpop.eup %4038 }
 0xa47   : > { %v2383_v21 = vsel %vm1196_vm4, %v4539_v20, 0.0 }
 0xa48   : > { %2384 = vadd.xlane.f32.xlu0 %v2383_v21 }
 0xa55   : > { %3977 = vrot.lane.b32.xlu1 %v4452_v50, %s4077_s28 }
 0xa56   : > { %v2367_v35 = vpop.xlane.xlu0 %2366 }
 0xa57   : > { %4040 = vrcp.f32 %v2367_v35 }
 0xa5e   : > { %3972 = vrot.lane.b32.xlu0 %v4454_v51, %s4077_s28 }
 0xa61   : > { %v4041_v22 = vpop.eup %4040 }
 0xa62   : > { %v2389_v26 = vmul.f32 %v4041_v22, %v4527_v45 }
 0xa69   : > { %v2364_v2 = vpop.xlane.xlu1 %2363 }
 0xa6a   : > { %4042 = vrcp.f32 %v2364_v2 }
 0xa6b   : > { %4044 = vpow2.f32 %v2358_v38 }
 0xa74   : > { %v4043_v23 = vpop.eup %4042 }
 0xa75   : > { %v4045_v24 = vpop.eup %4044  ;;  %v2387_v25 = vmul.f32 %v4043_v23, %v4029_v49 }
 0xa76   : > { %v2380_v50 = vsel %vm1196_vm4, %v4045_v24, 0.0 }
 0xa77   : > { %3667 = vmatprep.mubr.msk.f32.mxu1 %vm1196_vm4, %v2387_v25 }
 0xa78   : > { %3668 = vmatmul.mubr.msk.f32.vlgmr.msra.gmra.mrb[18].mxu1 %vm1196_vm4, %v2389_v26 }
 0xa79   : > { %2381 = vadd.xlane.f32.xlu1 %v2380_v50 }
 0xa8a   : > { %3982 = vrot.lane.b32.xlu1 %v4460_v58, %s4077_s28  ;;  %s4689_s28 = scalar_lea.vmem %s4660_s11, %s4184_s26 }
 0xac9   : > { %v2373_v51 = vpop.xlane.xlu0 %2372 }
 0xacd   : > { %v2370_v27 = vpop.xlane.xlu1 %2369 }
 0xace   : > { %4046 = vrcp.f32 %v2370_v27 }
 0xacf   : > { %4048 = vrcp.f32 %v2373_v51 }
 0xad1   : > { %v2379_v28 = vpop.xlane.xlu0 %2378  ;;  %v2376_v30 = vpop.xlane.xlu1 %2375 }
 0xad2   : > { %4050 = vrcp.f32 %v2379_v28  ;;  %v2890_v28 = vld [vmem:[%s4227_s24 + $0x10] sm:$0xff] }
 0xad3   : > { %4052 = vrcp.f32 %v2376_v30 }
 0xad5   : > { %v2385_v31 = vpop.xlane.xlu0 %2384  ;;  %v3978_v33 = vpop.permute.xlu1 %3977 }
 0xad6   : > { %v3980_v34 = vunpack.i.h.bf16 %v3978_v33  ;;  %v3979_v36 = vunpack.i.l.bf16 %v3978_v33  ;;  %4054 = vrcp.f32 %v2385_v31  ;;  %v2891_v31 = vld [vmem:[%s4227_s24 + $0x18] sm:$0xff] }
 0xad7   : > { %v3867_v33 = vpack.c.bf16 %v2891_v31, %v2890_v28 }
 0xad8   : > { %v4047_v37 = vpop.eup %4046  ;;  %v3847_v32 = vpack.c.bf16 %v3980_v34, %v3979_v36  ;;  %v2975_v34 = vld [vmem:[%s4233_s16] sm:$0xff]  ;;  %v2976_v36 = vld [vmem:[%s4233_s16 + $0x8] sm:$0xff] }
 0xad9   : > { %v3973_v29 = vpop.permute.xlu0 %3972  ;;  %v2391_v39 = vmul.f32 %v4047_v37, %v4033_v12  ;;  %v4049_v58 = vpop.eup %4048  ;;  %v2977_v37 = vld [vmem:[%s4233_s16 + $0x10] sm:$0xff] }
 0xada   : > { %v3975_v40 = vunpack.i.h.bf16 %v3973_v29  ;;  %v3974_v41 = vunpack.i.l.bf16 %v3973_v29  ;;  %3848 = vmatprep.subr.bf16.mxu0 %v3847_v32  ;;  %v2393_v49 = vmul.f32 %v4049_v58, %v4532_v42  ;;  %v2978_v29 = vld [vmem:[%s4233_s16 + $0x18] sm:$0xff] }
 0xadb   : > { %3674 = vmatprep.mubr.msk.f32.mxu1 %vm1196_vm4, %v2391_v39  ;;  %3850 = vmatpush3.bf16.msra.mxu0 %v3847_v32  ;;  %v3871_v32 = vpack.c.bf16 %v2976_v36, %v2975_v34  ;;  %v3875_v39 = vpack.c.bf16 %v2978_v29, %v2977_v37 }
 0xadc   : > { %v4051_v43 = vpop.eup %4050  ;;  %v3843_v44 = vpack.c.bf16 %v3975_v40, %v3974_v41  ;;  %3856 = vmatprep.subr.bf16.mxu0 %v3855_v4  ;;  %v2979_v40 = vld [vmem:[%s4233_s16 + $0x20] sm:$0xff]  ;;  %v2980_v41 = vld [vmem:[%s4233_s16 + $0x28] sm:$0xff] }
 0xadd   : > { %v4053_v45 = vpop.eup %4052  ;;  %v2397_v46 = vmul.f32 %v4051_v43, %v4037_v15  ;;  %v3879_v58 = vpack.c.bf16 %v2980_v41, %v2979_v40 }
 0xade   : > { %3844 = vmatprep.subr.bf16.mxu1 %v3843_v44  ;;  %v2395_v47 = vmul.f32 %v4053_v45, %v4035_v14 }
 0xadf   : > { %3846 = vmatpush3.bf16.msra.mxu1 %v3843_v44 }
 0xae0   : > { %3681 = vmatprep.mubr.msk.f32.mxu0 %vm1196_vm4, %v2395_v47  ;;  %v4055_v56 = vpop.eup %4054 }
 0xae1   : > { %3682 = vmatmul.mubr.msk.f32.vlgmr.msra.gmra.mrb[14].mxu0 %vm1196_vm4, %v2397_v46  ;;  %v2401_v60 = vmul.f32 %v4055_v56, %v4539_v20 }
 0xae2   : > { %3675 = vmatmul.mubr.msk.f32.vlgmr.msra.gmra.mrb[20].mxu1 %vm1196_vm4, %v2393_v49  ;;  %3858 = vmatpush3.bf16.msra.mxu0 %v3855_v4 }
 0xae3   : > { %3860 = vmatprep.subr.bf16.mxu0 %v3859_v6 }
 0xae6   : > { %3862 = vmatpush3.bf16.msra.mxu0 %v3859_v6 }
 0xae7   : > { %3872 = vmatprep.subr.bf16.mxu0 %v3871_v32 }
 0xb06   : > { %v2382_v52 = vpop.xlane.xlu1 %2381 }
 0xb07   : > { %4056 = vrcp.f32 %v2382_v52 }
 0xb0a   : > { %v3983_v53 = vpop.permute.xlu1 %3982 }
 0xb0b   : > { %v3985_v54 = vunpack.i.h.bf16 %v3983_v53  ;;  %v3984_v48 = vunpack.i.l.bf16 %v3983_v53 }
 0xb0d   : > { %v3851_v55 = vpack.c.bf16 %v3985_v54, %v3984_v48  ;;  %v3400_v54 = vld [vmem:[%s4689_s28] ss:$0 sm:$0xff] }
 0xb0f   : > { %3852 = vmatprep.subr.bf16.mxu1 %v3851_v55 }
 0xb10   : > { %3854 = vmatpush3.bf16.msra.mxu1 %v3851_v55 }
 0xb11   : > { %v4057_v57 = vpop.eup %4056 }
 0xb12   : > { %v2399_v59 = vmul.f32 %v4057_v57, %v4045_v24 }
 0xb14   : > { %3688 = vmatprep.mubr.msk.f32.mxu1 %vm1196_vm4, %v2399_v59  ;;  %v2981_v59 = vld [vmem:[%s4233_s16 + $0x30] sm:$0xff] }
 0xb15   : > { %3689 = vmatmul.mubr.msk.f32.vlgmr.msra.gmra.mrb[22].mxu1 %vm1196_vm4, %v2401_v60  ;;  %v2982_v60 = vld [vmem:[%s4233_s16 + $0x38] sm:$0xff] }
 0xb4b   : > { %v3669_v61 = vpop.f32.mrb[18].mxu1 }
 0xb4c   : > { %v2480_v62 = vpop.f32.mrb[19].mxu1 }
 0xbb4   : > { %v3683_v7 = vpop.f32.mrb[14].mxu0 }
 0xbb5   : > { %v2654_v8 = vpop.f32.mrb[15].mxu0  ;;  %v3676_v42 = vpop.f32.mrb[20].mxu1 }
 0xbb6   : > { %v2567_v9 = vpop.f32.mrb[21].mxu1  ;;  %2754 = vrot.lane.b32.xlu1 %v3676_v42, %s4079_s29 }
 0xbb7   : > { %2752 = vrot.lane.b32.xlu0 %v2567_v9, %s4079_s29 }
 0xbba   : > { %2762 = vrot.lane.b32.xlu1 %v3683_v7, %s4080_s6 }
 0xbbb   : > { %2760 = vrot.lane.b32.xlu0 %v2654_v8, %s4080_s6 }
 0xbe8   : > { %v3690_v10 = vpop.f32.mrb[22].mxu1 }
 0xbe9   : > { %v2741_v11 = vpop.f32.mrb[23].mxu1  ;;  %2770 = vrot.lane.b32.xlu1 %v3690_v10, %s4081_s21 }
 0xbea   : > { %2768 = vrot.lane.b32.xlu0 %v2741_v11, %s4081_s21  ;;  %v3100_v11 = vld [vmem:[%s4664_s15] sm:$0xff] (!%p3405_p5) }
 0xc28   : > { %v2755_v12 = vpop.permute.xlu1 %2754 }
 0xc29   : > { %v2753_v13 = vpop.permute.xlu0 %2752  ;;  %v2775_v20 = vsel %vm851_vm2, %v3669_v61, %v2755_v12  ;;  %v3883_v61 = vpack.c.bf16 %v2982_v60, %v2981_v59  ;;  %v3101_v12 = vld [vmem:[%s4664_s15 + $0x8] sm:$0xff] (!%p3405_p5) }
 0xc2a   : > { %v2774_v17 = vsel %vm851_vm2, %v2480_v62, %v2753_v13  ;;  %v3887_v13 = vpack.c.bf16 (!%p3405_p5), %v3101_v12, %v3100_v11 }
 0xc2c   : > { %v2763_v14 = vpop.permute.xlu1 %2762 }
 0xc2d   : > { %v2761_v15 = vpop.permute.xlu0 %2760  ;;  %v2777_v35 = vsel %vm1196_vm4, %v2775_v20, %v2763_v14  ;;  %v3102_v14 = vld [vmem:[%s4664_s15 + $0x10] sm:$0xff] (!%p3405_p5) }
 0xc2e   : > { %v2776_v21 = vsel %vm1196_vm4, %v2774_v17, %v2761_v15  ;;  %v3103_v15 = vld [vmem:[%s4664_s15 + $0x18] sm:$0xff] (!%p3405_p5) }
 0xc2f   : > { %v3891_v17 = vpack.c.bf16 (!%p3405_p5), %v3103_v15, %v3102_v14 }
 0xc5b   : > { %v2771_v19 = vpop.permute.xlu1 %2770 }
 0xc5c   : > { %v2769_v3 = vpop.permute.xlu0 %2768  ;;  %v2779_v2 = vsel %vm1661_vm5, %v2777_v35, %v2771_v19 }
 0xc5d   : > { %v2778_v38 = vsel %vm1661_vm5, %v2776_v21, %v2769_v3 }
 0xc5e   : > { %3699 = vmatprep.mubr.msk.f32.mxu0 %vm712_vm1, %v2778_v38 }
 0xc5f   : > { %3700 = vmatmul.mubr.msk.f32.vlgmr.msra.gmra.mrb[16].mxu0 %vm712_vm1, %v2779_v2 }
 0xc60   : > { %3874 = vmatpush3.bf16.msra.mxu0 %v3871_v32 }
 0xc61   : > { %3876 = vmatprep.subr.bf16.mxu0 %v3875_v39 }
 0xc64   : > { %3878 = vmatpush3.bf16.msra.mxu0 %v3875_v39 }
 0xc65   : > { %3880 = vmatprep.subr.bf16.mxu0 %v3879_v58 }
 0xc68   : > { %3882 = vmatpush3.bf16.msra.mxu0 %v3879_v58 }
 0xc69   : > { %3884 = vmatprep.subr.bf16.mxu0 %v3883_v61 }
 0xc6c   : > { %3886 = vmatpush3.bf16.msra.mxu0 %v3883_v61 }
 0xc6d   : > { %3888 = vmatprep.subr.bf16.mxu0 (!%p3405_p5), %v3887_v13 }
 0xd32   : > { %v3701_v22 = vpop.f32.mrb[16].mxu0 }
 0xd33   : > { %v4581_v23 = vadd.f32 %v3701_v22, %v4406_v16  ;;  %v2852_v24 = vpop.f32.mrb[17].mxu0  ;;  %v2888_v16 = vld [vmem:[%s4227_s24] sm:$0xff] }
 0xd34   : > { %v4584_v25 = vadd.f32 %v2852_v24, %v4409_v18  ;;  %v2889_v18 = vld [vmem:[%s4227_s24 + $0x8] sm:$0xff]  ;;  %v3406_v22 = vld [vmem:[%s4690_s19] ss:$0 sm:$0xff] (!%p3405_p5) }
 0xd35   : > { %v2865_v26 = vmul.f32 %v4581_v23, %v4581_v23  ;;  %v3863_v30 = vpack.c.bf16 %v2889_v18, %v2888_v16  ;;  %v3407_v16 = vld [vmem:[%s4691_s20] ss:$0 sm:$0xff] (!%p3405_p5) }
 0xd36   : > { %v2864_v50 = vmul.f32 %v4584_v25, %v4584_v25 }
 0xd37   : > { %v2869_v51 = vsel %vm712_vm1, %v2865_v26, 0.0  ;;  %3864 = vmatprep.subr.bf16.mxu1 %v3863_v30 }
 0xd38   : > { %2870 = vadd.xlane.f32.xlu1 %v2869_v51  ;;  %v2866_v27 = vsel %vm712_vm1, %v2864_v50, 0.0  ;;  %3866 = vmatpush3.bf16.msra.mxu1 %v3863_v30 }
 0xd39   : > { %2867 = vadd.xlane.f32.xlu0 %v2866_v27  ;;  %3868 = vmatprep.subr.bf16.mxu1 %v3867_v33 }
 0xd3c   : > { %3870 = vmatpush3.bf16.msra.mxu1 %v3867_v33 }
 0xdc5   : > { %v2871_v43 = vpop.xlane.xlu1 %2870 }
 0xdc6   : > { %v2873_v44 = vmul.f32 0.03125, %v2871_v43  ;;  %v2868_v45 = vpop.xlane.xlu0 %2867 }
 0xdc7   : > { %v2872_v46 = vmul.f32 0.03125, %v2868_v45 }
 0xdc8   : > { %v2875_v47 = vadd.f32 1e-06, %v2873_v44 }
 0xdc9   : > { %v2874_v49 = vadd.f32 1e-06, %v2872_v46 }
 0xdca   : > { %4058 = vrsqrt.f32 %v2875_v47 }
 0xdcb   : > { %4060 = vrsqrt.f32 %v2874_v49 }
 0xdd4   : > { %v4059_v52 = vpop.eup %4058 }
 0xdd5   : > { %v4061_v53 = vpop.eup %4060  ;;  %v2879_v48 = vmul.f32 %v4059_v52, %v4581_v23 }
 0xdd6   : > { %v2878_v55 = vmul.f32 %v4061_v53, %v4584_v25 }
 0xdd7   : > { %v2887_v57 = vmul.f32 %v3400_v54, %v2879_v48 }
 0xdd8   : > { %v2886_v56 = vmul.f32 %v3400_v54, %v2878_v55 }
 0xdda   : > { %3710 = vmatprep.mubr.msk.f32.mxu1 %vm712_vm1, %v2886_v56 }
 0xddb   : > { %3711 = vmatmul.mubr.msk.f32.vlgmr.msra.gmra.mrb[24].mxu1 %vm712_vm1, %v2887_v57 }
 0xeae   : > { %v3712_v62 = vpop.f32.mrb[24].mxu1 }
 0xeaf   : > { %v2964_v63 = vpop.f32.mrb[25].mxu1  ;;  %v2974_v1 = vmax.f32 %v3712_v62, 0.0 }
 0xeb0   : > { %v2973_v0 = vmax.f32 %v2964_v63, 0.0 }
 0xeb2   : > { %3729 = vmatprep.mubr.msk.f32.mxu0 %vm2983_vm6, %v2973_v0 }
 0xeb3   : > { %3730 = vmatmul.mubr.msk.f32.vlgmr.msra.gmra.mrb[18].mxu0 %vm2983_vm6, %v2974_v1 }
 0xeb4   : > { %3890 = vmatpush3.bf16.msra.mxu0 (!%p3405_p5), %v3887_v13 }
 0xeb5   : > { %3892 = vmatprep.subr.bf16.mxu0 (!%p3405_p5), %v3891_v17 }
 0xeb8   : > { %3894 = vmatpush3.bf16.msra.mxu0 (!%p3405_p5), %v3891_v17 }
 0xf84   : > { %3072 = sbr.rel (%p3405_p5) target bundleno = 4364 (0x110c), region = 96 }
 0xf86   : > { %v3731_v4 = vpop.f32.mrb[18].mxu0 }
 0xf87   : > { %v3066_v5 = vadd.f32 %v3731_v4, %v4581_v23  ;;  %v3056_v6 = vpop.f32.mrb[19].mxu0 }
 0xf88   : > { %v3065_v7 = vadd.f32 %v3056_v6, %v4584_v25 }
 0xf89   : > { %3068 = vst.msk [vmem:[#allocation2 + $0x8] sm:$0xff] %vm712_vm1, %v3066_v5  ;;  %v3075_v42 = vmul.f32 (!%p3405_p5), %v3066_v5, %v3066_v5 }
 0xf8a   : > { %3067 = vst.msk [vmem:[#allocation2] sm:$0xff] %vm712_vm1, %v3065_v7  ;;  %v3074_v8 = vmul.f32 (!%p3405_p5), %v3065_v7, %v3065_v7 }
 0xf8b   : > { %v3079_v10 = vsel %vm712_vm1, %v3075_v42, 0.0 }
 0xf8c   : > { %v3076_v9 = vsel %vm712_vm1, %v3074_v8, 0.0 }
 0xf8d   : > { %3077 = vadd.xlane.f32.xlu0 %v3076_v9 }
 0xf91   : > { %3080 = vadd.xlane.f32.xlu0 %v3079_v10 }
0x101a   : > { %v3078_v19 = vpop.xlane.xlu0 %3077 }
0x101b   : > { %v3082_v20 = vmul.f32 0.03125, %v3078_v19 }
0x101d   : > { %v3084_v21 = vadd.f32 1e-06, %v3082_v20 }
0x101e   : > { %v3081_v3 = vpop.xlane.xlu0 %3080 }
0x101f   : > { %4062 = vrsqrt.f32 %v3084_v21  ;;  %v3083_v35 = vmul.f32 0.03125, %v3081_v3 }
0x1021   : > { %v3085_v38 = vadd.f32 1e-06, %v3083_v35 }
0x1023   : > { %4064 = vrsqrt.f32 %v3085_v38 }
0x1029   : > { %v4063_v2 = vpop.eup %4062 }
0x102a   : > { %v3088_v23 = vmul.f32 %v4063_v2, %v3065_v7 }
0x102c   : > { %v3096_v24 = vmul.f32 %v3406_v22, %v3088_v23 }
0x102d   : > { %v4065_v25 = vpop.eup %4064 }
0x102e   : > { %v3089_v26 = vmul.f32 %v4065_v25, %v3066_v5  ;;  %v3098_v50 = vmul.f32 0.17677669, %v3096_v24 }
0x1030   : > { %v3097_v51 = vmul.f32 %v3406_v22, %v3089_v26  ;;  %3740 = vmatprep.mubr.msk.f32.mxu0 %vm712_vm1, %v3098_v50 }
0x1032   : > { %v3099_v27 = vmul.f32 0.17677669, %v3097_v51 }
0x1034   : > { %3741 = vmatmul.mubr.msk.f32.vlgmr.msra.gmra.mrb[0].mxu0 %vm712_vm1, %v3099_v27 }
0x1107   : > { %v3742_v18 = vpop.f32.mrb[0].mxu0 }
0x1108   : > { %v3189_v28 = vadd.f32 %v3742_v18, %v3407_v16  ;;  %v3183_v30 = vpop.f32.mrb[1].mxu0 }
0x1109   : > { %v3184_v31 = vadd.f32 %v3407_v16, %v3183_v30 }
0x110a   : > { %3193 = vst [vmem:[%s4692_s1 + $0x8] sm:$0xff] %v3189_v28 }
0x110b   : > { %3192 = vst [vmem:[%s4692_s1] sm:$0xff] %v3184_v31 }
0x110c PF: > { %s4693_s26 = sld [smem:[#allocation3_spill]] }
0x1112   : > { %s27_s24 = sadd.s32 1, %s4693_s26  }
0x1113   : > { %p24_p6 = scmp.ge.s32.totalorder %s27_s24, 4  }
0x1115   :  { %26 = sbr.rel (!%p24_p6) target bundleno = 9 (0x9), region = 149 }

</bundles_post_ra>
